<compile_context>
chip_gen: v6e
topology: v6e:2x2x1
jax: 0.10.0
libtpu: 0.0.40
codegen_flags: <defaults>
</compile_context>

<pallas_src>
import numpy as np
import jax
import jax.numpy as jnp
from jax import lax
from jax.experimental import pallas as pl
from jax.experimental.pallas import tpu as pltpu

EPS = 1e-5


# ---------------------------------------------------------------------------
# small helpers
# ---------------------------------------------------------------------------
def _round_up(x, m):
    return ((x + m - 1) // m) * m


def _fold_bn(gamma, beta, mean, var):
    scale = gamma / jnp.sqrt(var + EPS)
    bias = beta - mean * scale
    return scale, bias


def _pick_row_tile(H, WP, N, target_rows=1024):
    """Even output-row tile height.

    Targets ~target_rows flattened rows per tile (larger tiles amortize the
    ~0.35us/grid-step overhead and keep the HBM pipeline near roofline) while
    keeping >= 2 parallel (batch x row-tile) units so both v7x TensorCores are
    fed.  Arbitrary H is supported: the wrapper pads H up to a multiple of the
    tile and the extra rows are discarded."""
    cap = max(2, (target_rows // WP) // 2 * 2)       # even, fits row budget
    th = min(_round_up(H, 2), cap)
    if N * pl.cdiv(H, th) < 2 and th > 2:
        th = max(2, _round_up(pl.cdiv(H, 2), 2))
    return th


# ---------------------------------------------------------------------------
# Linear spatial resampling matrices (match PyTorch semantics exactly)
# ---------------------------------------------------------------------------
def _adaptive_pool_matrix(in_size, out_size):
    """Rows average the exact regions used by nn.AdaptiveAvgPool2d."""
    P = np.zeros((out_size, in_size), dtype=np.float32)
    for i in range(out_size):
        start = (i * in_size) // out_size
        end = -((-(i + 1) * in_size) // out_size)  # ceil((i+1)*in/out)
        P[i, start:end] = 1.0 / (end - start)
    return P


def _bilinear_matrix(out_size, in_size):
    """Matches F.interpolate(mode='bilinear', align_corners=False) on one axis."""
    U = np.zeros((out_size, in_size), dtype=np.float32)
    scale = in_size / out_size
    for i in range(out_size):
        src = scale * (i + 0.5) - 0.5
        src = max(src, 0.0)
        x0 = min(int(np.floor(src)), in_size - 1)
        x1 = min(x0 + 1, in_size - 1)
        frac = src - x0
        U[i, x0] += 1.0 - frac
        U[i, x1] += frac
    return U


def _pool_nhwc(x, bin_sz):
    N, H, W, C = x.shape
    Ph = jnp.asarray(_adaptive_pool_matrix(H, bin_sz))
    Pw = jnp.asarray(_adaptive_pool_matrix(W, bin_sz))
    y = jnp.einsum("ih,nhwc->niwc", Ph, x)
    return jnp.einsum("jw,niwc->nijc", Pw, y)


def _upsample_nhwc(y, H, W):
    N, bh, bw, C = y.shape
    Uh = jnp.asarray(_bilinear_matrix(H, bh))
    Uw = jnp.asarray(_bilinear_matrix(W, bw))
    z = jnp.einsum("hi,nijc->nhjc", Uh, y)
    return jnp.einsum("wj,nhjc->nhwc", Uw, z)


# ---------------------------------------------------------------------------
# Pallas kernel: fused bottleneck
#   3x3 conv (pad=1, no bias) over channel-concat([x, upsampled stage outputs])
#   + folded BN + ReLU.  Upsample + channel concat are folded into the kernel,
#   so the big (Cin + S*Cout)-channel concat tensor never hits HBM.
# ---------------------------------------------------------------------------
def conv3x3_bn_relu_fused(x_nhwc, w_hwio, stage_ys, bin_sizes, scale, bias):
    """x_nhwc: (N,H,W,Cin) f32, w_hwio: (3,3,Cin+S*Cout,Cout),
    stage_ys: list of (N,b,b,Cout) post-1x1/BN/ReLU stage outputs (f32).
    Returns (N, H, W, Cout) float32."""
    N, H, W, Cin = x_nhwc.shape
    Cout = w_hwio.shape[-1]

    WP = _round_up(W + 2, 16)        # padded row width (bf16 sublane friendly)
    assert WP >= W + 2               # roll-wrap rows must land in discarded cols
    TH = _pick_row_tile(H, WP, N)    # output rows per tile (even)
    Hp = _round_up(H, TH)            # padded output height (extra rows discarded)
    NT = Hp // TH
    L = TH * WP                      # flattened rows per output tile
    B2 = sum(b * b for b in bin_sizes)

    # ---- zero-padded + row-flattened features, bf16 at the kernel boundary --
    xp = jnp.pad(x_nhwc, ((0, 0), (1, Hp - H + 1), (1, WP - W - 1), (0, 0)))
    x_flat = xp.reshape(N, (Hp + 2) * WP, Cin).astype(jnp.bfloat16)

    # ---- resident 3x3 weights for the x channels: (9, Cin, Cout) ------------
    w_x = w_hwio[:, :, :Cin, :].reshape(9, Cin, Cout).astype(jnp.bfloat16)

    # ---- pyramid branches ----------------------------------------------------
    # Fold the stage outputs with their weight slices (zbig) and pre-shift the
    # zero-padded bilinear upsample operator per conv tap (Ubig) on the host,
    # so the whole branch contribution of a tile is a single
    # (L, 9*B2) @ (9*B2, Cout) bf16 matmul -- no rolls, no resident full-u.
    u_blocks, z_blocks = [], []
    for s, b in enumerate(bin_sizes):
        uh = np.zeros((Hp + 2, b), np.float32)
        uh[1:H + 1] = _bilinear_matrix(H, b)          # zero rows = conv zero-pad
        uw = np.zeros((WP, b), np.float32)
        uw[1:W + 1] = _bilinear_matrix(W, b)
        u_blocks.append(np.kron(uh, uw))              # ((Hp+2)*WP, b*b)
        w_s = w_hwio[:, :, Cin + s * Cout:Cin + (s + 1) * Cout, :]
        w_s = w_s.reshape(9, Cout, Cout)
        y_flat = stage_ys[s].reshape(N, b * b, Cout)
        z_blocks.append(jnp.einsum("nic,tcd->ntid", y_flat, w_s))
    u_all = np.concatenate(u_blocks, axis=1)          # ((Hp+2)*WP, B2)

    G = Hp * WP
    ubig_np = np.zeros((G, 9 * B2), np.float32)
    for dy in range(3):
        for dx in range(3):
            tap = dy * 3 + dx
            off = dy * WP + dx
            nrows = min(G, (Hp + 2) * WP - off)       # clipped rows feed only pad cols
            ubig_np[:nrows, tap * B2:(tap + 1) * B2] = u_all[off:off + nrows]
    ubig = jnp.asarray(ubig_np).astype(jnp.bfloat16)                      # (G, 9*B2)
    zbig = jnp.concatenate(z_blocks, axis=2).reshape(N, 9 * B2, Cout)
    zbig = zbig.astype(jnp.bfloat16)                                      # (N, 9*B2, Cout)

    s2 = scale.reshape(1, Cout).astype(jnp.float32)
    b2 = bias.reshape(1, Cout).astype(jnp.float32)

    def kernel(xa_ref, xb_ref, u_ref, z_ref, w_ref, s_ref, b_ref, o_ref):
        # Pyramid-branch contribution: ONE matmul, dy/dx shifts baked into Ubig.
        acc = jnp.dot(u_ref[...], z_ref[...], preferred_element_type=jnp.float32)

        # 3x3 conv over the original features.  Window = L-row tile + 2-row
        # halo below (second BlockSpec on the same array).
        win = jnp.concatenate([xa_ref[...], xb_ref[...]], axis=0)  # (L+2*WP, Cin)
        for dx in range(3):
            t = None
            for dy in range(3):
                slab = win[dy * WP:dy * WP + L, :]     # contiguous, aligned rows
                c = jnp.dot(slab, w_ref[dy * 3 + dx],
                            preferred_element_type=jnp.float32)    # (L, Cout)
                t = c if t is None else t + c
            if dx:
                # one shift per dx on the dy-summed narrow output; wrapped rows
                # only land in discarded padding columns (WP >= W + 2).
                t = jnp.roll(t, -dx, axis=0)
            acc = acc + t

        # folded BN + ReLU, single store of the tile.
        o_ref[...] = jnp.maximum(
            acc * s_ref[...] + b_ref[...], 0.0).astype(o_ref.dtype)

    # VMEM budget derived from the actual block sizes (not a blind constant).
    bpe = 2  # bf16
    block_bytes = (
        2 * (L * Cin + 2 * WP * Cin + L * 9 * B2) * bpe   # pipelined bf16 inputs
        + 2 * (9 * B2 * Cout) * bpe                       # per-batch zbig block
        + 9 * Cin * Cout * bpe + 2 * 2 * Cout * 4         # resident weights + BN consts
        + 2 * L * Cout * 4)                               # output (double-buffered)
    interm_bytes = (L + 2 * WP) * Cin * bpe + 8 * L * Cout * 4
    vmem_limit = int(min(100 * 2 ** 20,
                         max(32 * 2 ** 20, 2 * (block_bytes + interm_bytes))))

    out_pad = pl.pallas_call(
        kernel,
        out_shape=jax.ShapeDtypeStruct((N, G, Cout), jnp.float32),
        grid_spec=pltpu.PrefetchScalarGridSpec(
            num_scalar_prefetch=0,
            grid=(N, NT),
            in_specs=[
                # L padded, flattened rows of the image for this tile
                pl.BlockSpec((None, L, Cin), lambda n, i: (n, i, 0)),
                # 2-row halo immediately below the tile
                pl.BlockSpec((None, 2 * WP, Cin),
                             lambda n, i: (n, (i + 1) * (TH // 2), 0)),
                # pre-shifted upsample operator rows for this tile
                pl.BlockSpec((L, 9 * B2), lambda n, i: (i, 0)),
                # stage outputs folded with the bottleneck weight slices
                pl.BlockSpec((None, 9 * B2, Cout), lambda n, i: (n, 0, 0)),
                # resident 3x3 weights (constant index -> fetched once)
                pl.BlockSpec((9, Cin, Cout), lambda n, i: (0, 0, 0)),
                pl.BlockSpec((1, Cout), lambda n, i: (0, 0)),
                pl.BlockSpec((1, Cout), lambda n, i: (0, 0)),
            ],
            out_specs=pl.BlockSpec((None, L, Cout), lambda n, i: (n, i, 0)),
        ),
        compiler_params=pltpu.CompilerParams(
            dimension_semantics=("parallel", "parallel"),
            vmem_limit_bytes=vmem_limit),
    )(x_flat, x_flat, ubig, zbig, w_x, s2, b2)

    # The reshape is metadata-only; the row/column de-padding slice fuses with
    # the caller's NHWC->NCHW transpose.
    return out_pad.reshape(N, Hp, WP, Cout)[:, :H, :W, :]


# ---------------------------------------------------------------------------
# Parameter init (deterministic, synthetic)
# ---------------------------------------------------------------------------
def init_psp_params(key, in_channels, bin_sizes):
    out_channels = in_channels // len(bin_sizes)
    keys = jax.random.split(key, len(bin_sizes) + 1)

    def bn_params(k, c):
        k1, k2, k3, k4 = jax.random.split(k, 4)
        return dict(
            gamma=1.0 + 0.1 * jax.random.normal(k1, (c,), jnp.float32),
            beta=0.1 * jax.random.normal(k2, (c,), jnp.float32),
            mean=0.1 * jax.random.normal(k3, (c,), jnp.float32),
            var=jnp.abs(jax.random.normal(k4, (c,), jnp.float32)) + 0.5,
        )

    stages = []
    for i in range(len(bin_sizes)):
        kw, kbn = jax.random.split(keys[i])
        stages.append(dict(
            w=0.1 * jax.random.normal(kw, (in_channels, out_channels), jnp.float32),
            **bn_params(kbn, out_channels)))

    c_total = in_channels + out_channels * len(bin_sizes)
    kw, kbn = jax.random.split(keys[-1])
    bottleneck = dict(
        w=0.05 * jax.random.normal(kw, (3, 3, c_total, out_channels), jnp.float32),
        **bn_params(kbn, out_channels))
    return dict(stages=stages, bottleneck=bottleneck)


# ---------------------------------------------------------------------------
# Forward pass (Pallas) and pure-JAX reference
# ---------------------------------------------------------------------------
def psp_forward(params, x_nchw, bin_sizes):
    N, Cin, H, W = x_nchw.shape
    x = jnp.transpose(x_nchw, (0, 2, 3, 1)).astype(jnp.float32)     # NHWC

    # Pyramid stages: adaptive avg pool + 1x1 conv + BN + ReLU.
    # Negligible FLOPs (N * sum(b^2) rows), so this stays f32 JAX glue -- a
    # dedicated Pallas launch here was pure overhead (perf review).
    stage_ys = []
    for p, b in zip(params["stages"], bin_sizes):
        pooled = _pool_nhwc(x, b)                                   # (N, b, b, Cin)
        sc, bi = _fold_bn(p["gamma"], p["beta"], p["mean"], p["var"])
        y = jnp.einsum("nijc,co->nijo", pooled, p["w"]) * sc + bi
        stage_ys.append(jnp.maximum(y, 0.0))

    # Fused bottleneck (bilinear upsample + concat folded into the conv kernel).
    pb = params["bottleneck"]
    sc, bi = _fold_bn(pb["gamma"], pb["beta"], pb["mean"], pb["var"])
    out = conv3x3_bn_relu_fused(x, pb["w"], stage_ys, bin_sizes, sc, bi)
    return jnp.transpose(out, (0, 3, 1, 2))                         # back to NCHW


def psp_reference(params, x_nchw, bin_sizes):
    N, C, H, W = x_nchw.shape
    x = jnp.transpose(x_nchw, (0, 2, 3, 1)).astype(jnp.float32)
    pyramids = [x]
    for p, b in zip(params["stages"], bin_sizes):
        pooled = _pool_nhwc(x, b)
        scale, bias = _fold_bn(p["gamma"], p["beta"], p["mean"], p["var"])
        y = jnp.maximum(jnp.einsum("nijc,co->nijo", pooled, p["w"]) * scale + bias, 0.0)
        pyramids.append(_upsample_nhwc(y, H, W))
    cat = jnp.concatenate(pyramids, axis=-1)
    pb = params["bottleneck"]
    scale, bias = _fold_bn(pb["gamma"], pb["beta"], pb["mean"], pb["var"])
    conv = lax.conv_general_dilated(
        cat, pb["w"], window_strides=(1, 1), padding="SAME",
        dimension_numbers=("NHWC", "HWIO", "NHWC"))
    out = jnp.maximum(conv * scale + bias, 0.0)
    return jnp.transpose(out, (0, 3, 1, 2))


# ---------------------------------------------------------------------------
if __name__ == "__main__":
    key = jax.random.PRNGKey(0)
    k_x, k_p = jax.random.split(key)

    N, C_IN, H, W = 2, 8, 16, 16
    BIN_SIZES = (1, 2, 3, 6)

    x = jax.random.normal(k_x, (N, C_IN, H, W), jnp.float32)        # NCHW input
    params = init_psp_params(k_p, C_IN, BIN_SIZES)

    fwd = jax.jit(lambda p, xx: psp_forward(p, xx, BIN_SIZES))
    out = jax.block_until_ready(fwd(params, x))

    ref = jax.block_until_ready(psp_reference(params, x, BIN_SIZES))

    expected_cout = C_IN // len(BIN_SIZES)
    assert out.shape == (N, expected_cout, H, W), out.shape
    max_err = float(np.max(np.abs(np.asarray(out) - np.asarray(ref))))
    # bf16 matmul operands (f32 accumulation) vs f32 reference -> loose-ish tol.
    assert np.allclose(np.asarray(out), np.asarray(ref), atol=3e-2, rtol=3e-2), max_err

    print("KERNEL_OK")
</pallas_src>

<mosaic_0001>
module attributes {stable_mosaic.version = 11 : i64} {
  func.func @kernel(%arg0: i32, %arg1: i32, %arg2: memref<1x512x8xbf16, #tpu.memory_space<vmem>>, %arg3: memref<1x64x8xbf16, #tpu.memory_space<vmem>>, %arg4: memref<512x450xbf16, #tpu.memory_space<vmem>>, %arg5: memref<1x450x2xbf16, #tpu.memory_space<vmem>>, %arg6: memref<9x8x2xbf16, #tpu.memory_space<vmem>>, %arg7: memref<1x2xf32, #tpu.memory_space<vmem>>, %arg8: memref<1x2xf32, #tpu.memory_space<vmem>>, %arg9: memref<1x512x2xf32, #tpu.memory_space<vmem>>) attributes {dimension_semantics = [#tpu.dimension_semantics<parallel>, #tpu.dimension_semantics<parallel>], iteration_bounds = array<i64: 2, 1>, scalar_prefetch = 0 : i64, scratch_operands = 0 : i64, tpu.core_type = #tpu.core_type<tc>, window_params = [{transform_indices = @transform_0, window_bounds = array<i64: 1, 512, 8>}, {transform_indices = @transform_1, window_bounds = array<i64: 1, 64, 8>}, {transform_indices = @transform_2, window_bounds = array<i64: 512, 450>}, {transform_indices = @transform_3, window_bounds = array<i64: 1, 450, 2>}, {pipeline_mode = #tpu.pipeline_mode<synchronous>, transform_indices = @transform_4, window_bounds = array<i64: 9, 8, 2>}, {pipeline_mode = #tpu.pipeline_mode<synchronous>, transform_indices = @transform_5, window_bounds = array<i64: 1, 2>}, {pipeline_mode = #tpu.pipeline_mode<synchronous>, transform_indices = @transform_6, window_bounds = array<i64: 1, 2>}, {transform_indices = @transform_7, window_bounds = array<i64: 1, 512, 2>}]} {
    %c0 = arith.constant 0 : index
    %c0_0 = arith.constant 0 : index
    %0 = vector.load %arg4[%c0, %c0_0] : memref<512x450xbf16, #tpu.memory_space<vmem>>, vector<512x450xbf16>
    %c0_1 = arith.constant 0 : index
    %c0_2 = arith.constant 0 : index
    %c0_3 = arith.constant 0 : index
    %1 = vector.load %arg5[%c0_1, %c0_2, %c0_3] : memref<1x450x2xbf16, #tpu.memory_space<vmem>>, vector<1x450x2xbf16>
    %2 = vector.shape_cast %1 : vector<1x450x2xbf16> to vector<450x2xbf16>
    %cst = arith.constant dense<0.000000e+00> : vector<512x2xf32>
    %3 = tpu.matmul %0, %2, %cst {dimension_numbers = #tpu.dot_dimension_numbers<[1], [0], [0], [1], [0, 0, 1, 1], [], []>} : vector<512x450xbf16>, vector<450x2xbf16>, vector<512x2xf32> -> vector<512x2xf32>
    %c0_4 = arith.constant 0 : index
    %c0_5 = arith.constant 0 : index
    %c0_6 = arith.constant 0 : index
    %4 = vector.load %arg2[%c0_4, %c0_5, %c0_6] : memref<1x512x8xbf16, #tpu.memory_space<vmem>>, vector<1x512x8xbf16>
    %5 = vector.shape_cast %4 : vector<1x512x8xbf16> to vector<512x8xbf16>
    %c0_7 = arith.constant 0 : index
    %c0_8 = arith.constant 0 : index
    %c0_9 = arith.constant 0 : index
    %6 = vector.load %arg3[%c0_7, %c0_8, %c0_9] : memref<1x64x8xbf16, #tpu.memory_space<vmem>>, vector<1x64x8xbf16>
    %7 = vector.shape_cast %6 : vector<1x64x8xbf16> to vector<64x8xbf16>
    %8 = tpu.concatenate %5, %7 in 0 : vector<512x8xbf16>, vector<64x8xbf16> -> vector<576x8xbf16>
    %9 = vector.extract_strided_slice %8 {offsets = [0, 0], sizes = [512, 8], strides = [1, 1]} : vector<576x8xbf16> to vector<512x8xbf16>
    %c0_10 = arith.constant 0 : index
    %c0_11 = arith.constant 0 : index
    %c0_12 = arith.constant 0 : index
    %10 = vector.load %arg6[%c0_10, %c0_11, %c0_12] : memref<9x8x2xbf16, #tpu.memory_space<vmem>>, vector<1x8x2xbf16>
    %11 = vector.shape_cast %10 : vector<1x8x2xbf16> to vector<8x2xbf16>
    %cst_13 = arith.constant dense<0.000000e+00> : vector<512x2xf32>
    %12 = tpu.matmul %9, %11, %cst_13 {dimension_numbers = #tpu.dot_dimension_numbers<[1], [0], [0], [1], [0, 0, 1, 1], [], []>} : vector<512x8xbf16>, vector<8x2xbf16>, vector<512x2xf32> -> vector<512x2xf32>
    %13 = vector.extract_strided_slice %8 {offsets = [32, 0], sizes = [512, 8], strides = [1, 1]} : vector<576x8xbf16> to vector<512x8xbf16>
    %c3 = arith.constant 3 : index
    %c0_14 = arith.constant 0 : index
    %c0_15 = arith.constant 0 : index
    %14 = vector.load %arg6[%c3, %c0_14, %c0_15] : memref<9x8x2xbf16, #tpu.memory_space<vmem>>, vector<1x8x2xbf16>
    %15 = vector.shape_cast %14 : vector<1x8x2xbf16> to vector<8x2xbf16>
    %cst_16 = arith.constant dense<0.000000e+00> : vector<512x2xf32>
    %16 = tpu.matmul %13, %15, %cst_16 {dimension_numbers = #tpu.dot_dimension_numbers<[1], [0], [0], [1], [0, 0, 1, 1], [], []>} : vector<512x8xbf16>, vector<8x2xbf16>, vector<512x2xf32> -> vector<512x2xf32>
    %17 = arith.addf %12, %16 : vector<512x2xf32>
    %18 = vector.extract_strided_slice %8 {offsets = [64, 0], sizes = [512, 8], strides = [1, 1]} : vector<576x8xbf16> to vector<512x8xbf16>
    %c6 = arith.constant 6 : index
    %c0_17 = arith.constant 0 : index
    %c0_18 = arith.constant 0 : index
    %19 = vector.load %arg6[%c6, %c0_17, %c0_18] : memref<9x8x2xbf16, #tpu.memory_space<vmem>>, vector<1x8x2xbf16>
    %20 = vector.shape_cast %19 : vector<1x8x2xbf16> to vector<8x2xbf16>
    %cst_19 = arith.constant dense<0.000000e+00> : vector<512x2xf32>
    %21 = tpu.matmul %18, %20, %cst_19 {dimension_numbers = #tpu.dot_dimension_numbers<[1], [0], [0], [1], [0, 0, 1, 1], [], []>} : vector<512x8xbf16>, vector<8x2xbf16>, vector<512x2xf32> -> vector<512x2xf32>
    %22 = arith.addf %17, %21 : vector<512x2xf32>
    %23 = arith.addf %3, %22 : vector<512x2xf32>
    %24 = vector.extract_strided_slice %8 {offsets = [0, 0], sizes = [512, 8], strides = [1, 1]} : vector<576x8xbf16> to vector<512x8xbf16>
    %c1 = arith.constant 1 : index
    %c0_20 = arith.constant 0 : index
    %c0_21 = arith.constant 0 : index
    %25 = vector.load %arg6[%c1, %c0_20, %c0_21] : memref<9x8x2xbf16, #tpu.memory_space<vmem>>, vector<1x8x2xbf16>
    %26 = vector.shape_cast %25 : vector<1x8x2xbf16> to vector<8x2xbf16>
    %cst_22 = arith.constant dense<0.000000e+00> : vector<512x2xf32>
    %27 = tpu.matmul %24, %26, %cst_22 {dimension_numbers = #tpu.dot_dimension_numbers<[1], [0], [0], [1], [0, 0, 1, 1], [], []>} : vector<512x8xbf16>, vector<8x2xbf16>, vector<512x2xf32> -> vector<512x2xf32>
    %28 = vector.extract_strided_slice %8 {offsets = [32, 0], sizes = [512, 8], strides = [1, 1]} : vector<576x8xbf16> to vector<512x8xbf16>
    %c4 = arith.constant 4 : index
    %c0_23 = arith.constant 0 : index
    %c0_24 = arith.constant 0 : index
    %29 = vector.load %arg6[%c4, %c0_23, %c0_24] : memref<9x8x2xbf16, #tpu.memory_space<vmem>>, vector<1x8x2xbf16>
    %30 = vector.shape_cast %29 : vector<1x8x2xbf16> to vector<8x2xbf16>
    %cst_25 = arith.constant dense<0.000000e+00> : vector<512x2xf32>
    %31 = tpu.matmul %28, %30, %cst_25 {dimension_numbers = #tpu.dot_dimension_numbers<[1], [0], [0], [1], [0, 0, 1, 1], [], []>} : vector<512x8xbf16>, vector<8x2xbf16>, vector<512x2xf32> -> vector<512x2xf32>
    %32 = arith.addf %27, %31 : vector<512x2xf32>
    %33 = vector.extract_strided_slice %8 {offsets = [64, 0], sizes = [512, 8], strides = [1, 1]} : vector<576x8xbf16> to vector<512x8xbf16>
    %c7 = arith.constant 7 : index
    %c0_26 = arith.constant 0 : index
    %c0_27 = arith.constant 0 : index
    %34 = vector.load %arg6[%c7, %c0_26, %c0_27] : memref<9x8x2xbf16, #tpu.memory_space<vmem>>, vector<1x8x2xbf16>
    %35 = vector.shape_cast %34 : vector<1x8x2xbf16> to vector<8x2xbf16>
    %cst_28 = arith.constant dense<0.000000e+00> : vector<512x2xf32>
    %36 = tpu.matmul %33, %35, %cst_28 {dimension_numbers = #tpu.dot_dimension_numbers<[1], [0], [0], [1], [0, 0, 1, 1], [], []>} : vector<512x8xbf16>, vector<8x2xbf16>, vector<512x2xf32> -> vector<512x2xf32>
    %37 = arith.addf %32, %36 : vector<512x2xf32>
    %38 = vector.extract_strided_slice %37 {offsets = [1, 0], sizes = [511, 2], strides = [1, 1]} : vector<512x2xf32> to vector<511x2xf32>
    %39 = vector.extract_strided_slice %37 {offsets = [0, 0], sizes = [1, 2], strides = [1, 1]} : vector<512x2xf32> to vector<1x2xf32>
    %40 = tpu.concatenate %38, %39 in 0 : vector<511x2xf32>, vector<1x2xf32> -> vector<512x2xf32>
    %41 = arith.addf %23, %40 : vector<512x2xf32>
    %42 = vector.extract_strided_slice %8 {offsets = [0, 0], sizes = [512, 8], strides = [1, 1]} : vector<576x8xbf16> to vector<512x8xbf16>
    %c2 = arith.constant 2 : index
    %c0_29 = arith.constant 0 : index
    %c0_30 = arith.constant 0 : index
    %43 = vector.load %arg6[%c2, %c0_29, %c0_30] : memref<9x8x2xbf16, #tpu.memory_space<vmem>>, vector<1x8x2xbf16>
    %44 = vector.shape_cast %43 : vector<1x8x2xbf16> to vector<8x2xbf16>
    %cst_31 = arith.constant dense<0.000000e+00> : vector<512x2xf32>
    %45 = tpu.matmul %42, %44, %cst_31 {dimension_numbers = #tpu.dot_dimension_numbers<[1], [0], [0], [1], [0, 0, 1, 1], [], []>} : vector<512x8xbf16>, vector<8x2xbf16>, vector<512x2xf32> -> vector<512x2xf32>
    %46 = vector.extract_strided_slice %8 {offsets = [32, 0], sizes = [512, 8], strides = [1, 1]} : vector<576x8xbf16> to vector<512x8xbf16>
    %c5 = arith.constant 5 : index
    %c0_32 = arith.constant 0 : index
    %c0_33 = arith.constant 0 : index
    %47 = vector.load %arg6[%c5, %c0_32, %c0_33] : memref<9x8x2xbf16, #tpu.memory_space<vmem>>, vector<1x8x2xbf16>
    %48 = vector.shape_cast %47 : vector<1x8x2xbf16> to vector<8x2xbf16>
    %cst_34 = arith.constant dense<0.000000e+00> : vector<512x2xf32>
    %49 = tpu.matmul %46, %48, %cst_34 {dimension_numbers = #tpu.dot_dimension_numbers<[1], [0], [0], [1], [0, 0, 1, 1], [], []>} : vector<512x8xbf16>, vector<8x2xbf16>, vector<512x2xf32> -> vector<512x2xf32>
    %50 = arith.addf %45, %49 : vector<512x2xf32>
    %51 = vector.extract_strided_slice %8 {offsets = [64, 0], sizes = [512, 8], strides = [1, 1]} : vector<576x8xbf16> to vector<512x8xbf16>
    %c8 = arith.constant 8 : index
    %c0_35 = arith.constant 0 : index
    %c0_36 = arith.constant 0 : index
    %52 = vector.load %arg6[%c8, %c0_35, %c0_36] : memref<9x8x2xbf16, #tpu.memory_space<vmem>>, vector<1x8x2xbf16>
    %53 = vector.shape_cast %52 : vector<1x8x2xbf16> to vector<8x2xbf16>
    %cst_37 = arith.constant dense<0.000000e+00> : vector<512x2xf32>
    %54 = tpu.matmul %51, %53, %cst_37 {dimension_numbers = #tpu.dot_dimension_numbers<[1], [0], [0], [1], [0, 0, 1, 1], [], []>} : vector<512x8xbf16>, vector<8x2xbf16>, vector<512x2xf32> -> vector<512x2xf32>
    %55 = arith.addf %50, %54 : vector<512x2xf32>
    %56 = vector.extract_strided_slice %55 {offsets = [2, 0], sizes = [510, 2], strides = [1, 1]} : vector<512x2xf32> to vector<510x2xf32>
    %57 = vector.extract_strided_slice %55 {offsets = [0, 0], sizes = [2, 2], strides = [1, 1]} : vector<512x2xf32> to vector<2x2xf32>
    %58 = tpu.concatenate %56, %57 in 0 : vector<510x2xf32>, vector<2x2xf32> -> vector<512x2xf32>
    %59 = arith.addf %41, %58 : vector<512x2xf32>
    %c0_38 = arith.constant 0 : index
    %c0_39 = arith.constant 0 : index
    %60 = vector.load %arg7[%c0_38, %c0_39] : memref<1x2xf32, #tpu.memory_space<vmem>>, vector<1x2xf32>
    %61 = vector.broadcast %60 : vector<1x2xf32> to vector<512x2xf32>
    %62 = arith.mulf %59, %61 : vector<512x2xf32>
    %c0_40 = arith.constant 0 : index
    %c0_41 = arith.constant 0 : index
    %63 = vector.load %arg8[%c0_40, %c0_41] : memref<1x2xf32, #tpu.memory_space<vmem>>, vector<1x2xf32>
    %64 = vector.broadcast %63 : vector<1x2xf32> to vector<512x2xf32>
    %65 = arith.addf %62, %64 : vector<512x2xf32>
    %cst_42 = arith.constant 0.000000e+00 : f32
    %66 = vector.broadcast %cst_42 : f32 to vector<512x2xf32>
    %67 = arith.maximumf %65, %66 : vector<512x2xf32>
    %c0_43 = arith.constant 0 : index
    %c0_44 = arith.constant 0 : index
    %c0_45 = arith.constant 0 : index
    %68 = vector.load %arg9[%c0_43, %c0_44, %c0_45] : memref<1x512x2xf32, #tpu.memory_space<vmem>>, vector<1x512x2xf32>
    %69 = vector.shape_cast %68 : vector<1x512x2xf32> to vector<512x2xf32>
    %70 = vector.shape_cast %67 : vector<512x2xf32> to vector<1x512x2xf32>
    tpu.vector_store %arg9[%c0_43, %c0_44, %c0_45], %70 {strides = array<i32>} : memref<1x512x2xf32, #tpu.memory_space<vmem>>, vector<1x512x2xf32>,
    return
  }
  func.func @transform_0(%arg0: i32, %arg1: i32) -> (i32, i32, i32) {
    %c0_i32 = arith.constant 0 : i32
    %c0_i32_0 = arith.constant 0 : i32
    return %arg0, %arg1, %c0_i32 : i32, i32, i32
  }
  func.func @transform_1(%arg0: i32, %arg1: i32) -> (i32, i32, i32) {
    %c1_i32 = arith.constant 1 : i32
    %0 = arith.addi %arg1, %c1_i32 : i32
    %c8_i32 = arith.constant 8 : i32
    %1 = arith.muli %0, %c8_i32 : i32
    %c0_i32 = arith.constant 0 : i32
    %c0_i32_0 = arith.constant 0 : i32
    return %arg0, %1, %c0_i32 : i32, i32, i32
  }
  func.func @transform_2(%arg0: i32, %arg1: i32) -> (i32, i32) {
    %c0_i32 = arith.constant 0 : i32
    %c0_i32_0 = arith.constant 0 : i32
    return %arg1, %c0_i32 : i32, i32
  }
  func.func @transform_3(%arg0: i32, %arg1: i32) -> (i32, i32, i32) {
    %c0_i32 = arith.constant 0 : i32
    %c0_i32_0 = arith.constant 0 : i32
    %c0_i32_1 = arith.constant 0 : i32
    return %arg0, %c0_i32, %c0_i32_0 : i32, i32, i32
  }
  func.func @transform_4(%arg0: i32, %arg1: i32) -> (i32, i32, i32) {
    %c0_i32 = arith.constant 0 : i32
    %c0_i32_0 = arith.constant 0 : i32
    %c0_i32_1 = arith.constant 0 : i32
    %c0_i32_2 = arith.constant 0 : i32
    return %c0_i32, %c0_i32_0, %c0_i32_1 : i32, i32, i32
  }
  func.func @transform_5(%arg0: i32, %arg1: i32) -> (i32, i32) {
    %c0_i32 = arith.constant 0 : i32
    %c0_i32_0 = arith.constant 0 : i32
    %c0_i32_1 = arith.constant 0 : i32
    return %c0_i32, %c0_i32_0 : i32, i32
  }
  func.func @transform_6(%arg0: i32, %arg1: i32) -> (i32, i32) {
    %c0_i32 = arith.constant 0 : i32
    %c0_i32_0 = arith.constant 0 : i32
    %c0_i32_1 = arith.constant 0 : i32
    return %c0_i32, %c0_i32_0 : i32, i32
  }
  func.func @transform_7(%arg0: i32, %arg1: i32) -> (i32, i32, i32) {
    %c0_i32 = arith.constant 0 : i32
    %c0_i32_0 = arith.constant 0 : i32
    return %arg0, %arg1, %c0_i32 : i32, i32, i32
  }
}

</mosaic_0001>

<bundles_post_ra>
// kernel: _lambda_.1
= control target key start
LH: loop header
LB: loop body
LE: loop exit
PB: predicated region body
PF: predicated region fallthrough
CT: control target
= control target key end

     0   :  { %s8188_s24 = smov 0   ;;  %s8190_s25 = smov 0   ;;  %s11174_s0 = inlined_call_operand.vmem [shape: bf16[2,576,8], index: 0, kind: input, shape index: {}, may-alias: {0,1}]   ;;  %s11175_s1 = inlined_call_operand.vmem [shape: bf16[2,576,8], index: 1, kind: input, shape index: {}, may-alias: {0,1}]   ;;  %s11176_s2 = inlined_call_operand.vmem [shape: bf16[512,450], index: 2, kind: input, shape index: {}]   ;;  %s11177_s3 = inlined_call_operand.vmem [shape: bf16[2,450,2], index: 3, kind: input, shape index: {}]   ;;  %s11178_s4 = inlined_call_operand.vmem [shape: bf16[9,8,2], index: 4, kind: input, shape index: {}]   ;;  %s11179_s5 = inlined_call_operand.vmem [shape: f32[1,2], index: 5, kind: input, shape index: {}]   ;;  %s11180_s6 = inlined_call_operand.vmem [shape: f32[1,2], index: 6, kind: input, shape index: {}]   ;;  %s11181_s7 = inlined_call_operand.vmem [shape: f32[2,512,2], index: 7, kind: output, shape index: {}]  }
   0x1   :  { %s8192_s26 = smov 0  }
   0x2 LB: > { %s29_s27 = sadd.s32 1, %s8141_s25  ;;  %p6328_p0 = scmp.ge.s32.totalorder %s8145_s26, 1  ;;  %s8145_s26 = sphi %s8192_s26, %s17_s26   ;;  %s8141_s25 = sphi %s8190_s25, %s11592_s25   ;;  %s8137_s24 = sphi %s8188_s24, %s11591_s24  }
   0x3   : > { %p31_p1 = scmp.ge.s32.totalorder %s29_s27, 2  ;;  %p313_p2 = scmp.lt.s32.totalorder %s8145_s26, 3 }
   0x5   : > { %s11594_s27 = smov (%p31_p1, %s29_s27), 0  ;;  %p314_p3 = pnand %p6328_p0, %p313_p2 }
   0x7   : > { %317 = sbr.rel (%p314_p3) target bundleno = 1066 (0x42a), region = 48 }
   0xc   : > { %v6370_v0 = vld [vmem:[%s11178_s4 + $0xc] sm:$0xf]  ;;  %vm971_vm0 = vcmask 1043456   ;;  %p384_p4 = scmp.lt.s32.totalorder %s8137_s24, 1  ;;  %v871_v2 = vld [vmem:[%s11178_s4] sm:$0xf] }
   0xd   : > { %7756 = vmatprep.subr.msk.bf16.mxu1 %vm971_vm0, %v6370_v0  ;;  %7755 = vmatprep.subr.msk.bf16.mxu0 %vm971_vm0, %v6370_v0  ;;  %v973_v1 = vsel %vm971_vm0, %v6370_v0, 0  ;;  %v6435_v3 = vld [vmem:[%s11178_s4 + $0x18] sm:$0xf]  ;;  %vm874_vm1 = vcmask 64512   ;;  %v1271_v9 = vsel %vm971_vm0, %v871_v2, 0  ;;  %v8147_v13 = vmov 0  }
   0xe   : > { %7754 = vmatpush3.bf16.msra.mxu1 %v973_v1  ;;  %7160 = vmatpush3.bf16.msra.mxu0 %v973_v1  ;;  %s11596_s24 = smov (!%p384_p4, %s8137_s24), 1  ;;  %v1571_v7 = vsel %vm971_vm0, %v6435_v3, 0  ;;  %vm2802_vm2 = vcmask 1040384   ;;  %vm2705_vm3 = vcmask 539648   ;;  %vm4394_vm4 = vcmask 1046528  }
   0xf   : > { %7757 = vmatprep.subr.msk.bf16.mxu1 %vm971_vm0, %v871_v2  ;;  %7758 = vmatprep.subr.msk.bf16.mxu0 %vm971_vm0, %v6435_v3  ;;  %s7765_s11 = smul.u32 288, %s11596_s24  ;;  %vm5662_vm5 = vcmask 1045504   ;;  %s6861_s21 = sshll.u32 %s11596_s24, 9  ;;  %vm6126_vm6 = vcmask 15360  }
  0x10   : > { %s7767_s19 = smul.u32 228, %s11596_s24  ;;  %s10688_s23 = scalar_lea.vmem %s11181_s7, %s6861_s21 }
  0x11   : > { %s8228_s14 = scalar_lea.vmem %s11174_s0, %s7765_s11  ;;  %s6860_s15 = sadd.s32 256, %s7765_s11 }
  0x12   : > { %v8231_v4 = vld [vmem:[%s8228_s14 + $0x10] sm:$0xff]   ;;  %v8239_v6 = vld [vmem:[%s8228_s14 + $0x18] sm:$0xff]   ;;  %v8251_v10 = vld [vmem:[%s8228_s14 + $0x20] sm:$0xff]   ;;  %s8323_s18 = scalar_lea.vmem %s11175_s1, %s6860_s15  ;;  %s8344_s22 = scalar_lea.vmem %s11177_s3, %s7767_s19 }
  0x13   : > { %v8234_v5 = vld [vmem:[%s8228_s14 + $0x90] sm:$0xff]   ;;  %7161 = vmatprep.mubr.msk.bf16.mxu0 %vm874_vm1, %v8231_v4  ;;  %v8245_v8 = vld [vmem:[%s8228_s14 + $0x98] sm:$0xff]   ;;  %v8256_v11 = vld [vmem:[%s8228_s14 + $0xa0] sm:$0xff]  }
  0x14   : > { %7193 = vmatprep.mubr.msk.bf16.mxu1 %vm874_vm1, %v8234_v5  ;;  %7162 = vmatmul.mubr.msk.bf16.vlgmr.msra.gmra.mxu0 %vm874_vm1, %v8239_v6  ;;  %v8263_v12 = vld [vmem:[%s8228_s14 + $0x28] sm:$0xff]   ;;  %v8271_v15 = vld [vmem:[%s8228_s14 + $0x30] sm:$0xff]   ;;  %v8285_v17 = vld [vmem:[%s8228_s14 + $0x38] sm:$0xff]  }
  0x15   : > { %7194 = vmatmul.mubr.msk.bf16.vlgmr.msra.gmra.mxu1 %vm874_vm1, %v8245_v8  ;;  %7292 = vmatpush3.bf16.msra.mxu0 %v1571_v7  ;;  %v8267_v14 = vld [vmem:[%s8228_s14 + $0xa8] sm:$0xff]   ;;  %v8274_v16 = vld [vmem:[%s8228_s14 + $0xb0] sm:$0xff]   ;;  %v8288_v18 = vld [vmem:[%s8228_s14 + $0xb8] sm:$0xff]  }
  0x16   : > { %7226 = vmatpush3.bf16.msra.mxu1 %v1271_v9  ;;  %7165 = vmatprep.mubr.msk.bf16.mxu0 %vm874_vm1, %v8251_v10  ;;  %v8291_v19 = vld [vmem:[%s8228_s14 + $0x40] sm:$0xff]   ;;  %v8305_v21 = vld [vmem:[%s8228_s14 + $0x48] sm:$0xff]   ;;  %v8311_v23 = vld [vmem:[%s8228_s14 + $0x50] sm:$0xff]  }
  0x17   : > { %7197 = vmatprep.mubr.msk.bf16.mxu1 %vm874_vm1, %v8256_v11  ;;  %2806 = vmatprep.subr.bf16.mxu1 %v8147_v13  ;;  %v8294_v20 = vld [vmem:[%s8228_s14 + $0xc0] sm:$0xff]   ;;  %v8308_v22 = vld [vmem:[%s8228_s14 + $0xc8] sm:$0xff]   ;;  %v8316_v24 = vld [vmem:[%s8228_s14 + $0xd0] sm:$0xff]  }
  0x18   : > { %3095 = vmatprep.subr.bf16.mxu0 %v8147_v13  ;;  %v8333_v25 = vld [vmem:[%s8228_s14 + $0x58] sm:$0xff]   ;;  %v8339_v27 = vld [vmem:[%s8228_s14 + $0x60] sm:$0xff]   ;;  %v8358_v29 = vld [vmem:[%s8228_s14 + $0x68] sm:$0xff]  }
  0x19   : > { %v8336_v26 = vld [vmem:[%s8228_s14 + $0xd8] sm:$0xff]   ;;  %v8347_v28 = vld [vmem:[%s8228_s14 + $0xe0] sm:$0xff]   ;;  %v8361_v30 = vld [vmem:[%s8228_s14 + $0xe8] sm:$0xff]  }
  0x1a   : > { %v8364_v31 = vld [vmem:[%s8228_s14 + $0x70] sm:$0xff]   ;;  %v8378_v33 = vld [vmem:[%s8228_s14 + $0x78] sm:$0xff]   ;;  %v8384_v35 = vld [vmem:[%s8228_s14 + $0x80] sm:$0xff]  }
  0x1b   : > { %v8367_v32 = vld [vmem:[%s8228_s14 + $0xf0] sm:$0xff]   ;;  %v8381_v34 = vld [vmem:[%s8228_s14 + $0xf8] sm:$0xff]   ;;  %v8387_v36 = vld [vmem:[%s8323_s18] sm:$0xff]  }
  0x1c   : > { %7166 = vmatmul.mubr.msk.bf16.gmra.mxu0 %vm874_vm1, %v8263_v12  ;;  %v8398_v37 = vld [vmem:[%s8228_s14 + $0x88] sm:$0xff]   ;;  %v7826_v39 = vld [vmem:[%s8228_s14] sm:$0xff]   ;;  %v7829_v41 = vld [vmem:[%s8344_s22 + $0xb8] sm:$0xff]  }
  0x1d   : > { %7198 = vmatmul.mubr.msk.bf16.gmra.mxu1 %vm874_vm1, %v8267_v14  ;;  %7169 = vmatprep.mubr.msk.bf16.mxu0 %vm874_vm1, %v8271_v15  ;;  %v8401_v38 = vld [vmem:[%s8323_s18 + $0x8] sm:$0xff]   ;;  %v7828_v42 = vld [vmem:[%s8344_s22 + $0x38] sm:$0xff]   ;;  %v7831_v43 = vld [vmem:[%s8344_s22 + $0xb0] sm:$0xff]  }
  0x1e   : > { %7201 = vmatprep.mubr.msk.bf16.mxu1 %vm874_vm1, %v8274_v16  ;;  %v7827_v40 = vld [vmem:[%s8228_s14 + $0x8] sm:$0xff]   ;;  %v7830_v44 = vld [vmem:[%s8344_s22 + $0x30] sm:$0xff]   ;;  %v7834_v47 = vld [vmem:[%s8344_s22 + $0x20] sm:$0xff]  }
  0x1f   : > { %v7832_v45 = vld [vmem:[%s8344_s22 + $0x28] sm:$0xff]   ;;  %v7836_v48 = vld [vmem:[%s8344_s22 + $0xa0] sm:$0xff]   ;;  %v7835_v49 = vld [vmem:[%s8344_s22 + $0x18] sm:$0xff]  }
  0x20   : > { %v7833_v46 = vld [vmem:[%s8344_s22 + $0xa8] sm:$0xff]   ;;  %v7838_v50 = vld [vmem:[%s8344_s22 + $0x98] sm:$0xff]   ;;  %v7837_v51 = vld [vmem:[%s8344_s22 + $0x10] sm:$0xff]  }
  0x21   : > { %v7840_v52 = vld [vmem:[%s8344_s22 + $0x90] sm:$0xff]   ;;  %v7839_v53 = vld [vmem:[%s8344_s22 + $0x8] sm:$0xff]   ;;  %v7841_v55 = vld [vmem:[%s8344_s22] sm:$0xff]  }
  0x22   : > { %v7842_v54 = vld [vmem:[%s8344_s22 + $0x88] sm:$0xff]   ;;  %v7844_v56 = vld [vmem:[%s8344_s22 + $0x80] sm:$0xff]   ;;  %v7843_v58 = vld [vmem:[%s8344_s22 + $0x78] sm:$0xff]  }
  0x23   : > { %v7847_v57 = vld [vmem:[%s8344_s22 + $0xe0] ss:$0 sps:$4 sm:$0x11]   ;;  %v7845_v59 = vld [vmem:[%s8344_s22 + $0x70] sm:$0xff]   ;;  %v7849_v61 = vld [vmem:[%s8344_s22 + $0xd8] sm:$0xff]  }
  0x24   : > { %7170 = vmatmul.mubr.msk.bf16.gmra.mxu0 %vm874_vm1, %v8285_v17  ;;  %v2804_v60 = vsel %vm2802_vm2, %v7847_v57, 0  ;;  %v7846_v62 = vld [vmem:[%s8344_s22 + $0x68] sm:$0xff]   ;;  %v7851_v63 = vld [vmem:[%s8344_s22 + $0xd0] sm:$0xff]   ;;  %v7848_v0 = vld [vmem:[%s8344_s22 + $0x60] sm:$0xff]  }
  0x25   : > { %7202 = vmatmul.mubr.msk.bf16.gmra.mxu1 %vm874_vm1, %v8288_v18  ;;  %7173 = vmatprep.mubr.msk.bf16.mxu0 %vm874_vm1, %v8291_v19  ;;  %v7853_v1 = vld [vmem:[%s8344_s22 + $0xc8] sm:$0xff]   ;;  %v7850_v2 = vld [vmem:[%s8344_s22 + $0x58] sm:$0xff]   ;;  %v7858_v3 = vld [vmem:[%s8344_s22 + $0xc0] sm:$0xff]  }
  0x26   : > { %7205 = vmatprep.mubr.msk.bf16.mxu1 %vm874_vm1, %v8294_v20  ;;  %v7854_v7 = vld [vmem:[%s8344_s22 + $0x48] sm:$0xff]   ;;  %v7857_v9 = vld [vmem:[%s8344_s22 + $0x40] sm:$0xff]  }
  0x2c   : > { %7174 = vmatmul.mubr.msk.bf16.gmra.mxu0 %vm874_vm1, %v8305_v21 }
  0x2d   : > { %7206 = vmatmul.mubr.msk.bf16.gmra.mxu1 %vm874_vm1, %v8308_v22  ;;  %7177 = vmatprep.mubr.msk.bf16.mxu0 %vm874_vm1, %v8311_v23 }
  0x2e   : > { %7209 = vmatprep.mubr.msk.bf16.mxu1 %vm874_vm1, %v8316_v24 }
  0x34   : > { %7178 = vmatmul.mubr.msk.bf16.gmra.mxu0 %vm874_vm1, %v8333_v25 }
  0x35   : > { %7210 = vmatmul.mubr.msk.bf16.gmra.mxu1 %vm874_vm1, %v8336_v26  ;;  %7181 = vmatprep.mubr.msk.bf16.mxu0 %vm874_vm1, %v8339_v27 }
  0x36   : > { %7213 = vmatprep.mubr.msk.bf16.mxu1 %vm874_vm1, %v8347_v28 }
  0x3c   : > { %7182 = vmatmul.mubr.msk.bf16.gmra.mxu0 %vm874_vm1, %v8358_v29 }
  0x3d   : > { %7214 = vmatmul.mubr.msk.bf16.gmra.mxu1 %vm874_vm1, %v8361_v30  ;;  %7185 = vmatprep.mubr.msk.bf16.mxu0 %vm874_vm1, %v8364_v31 }
  0x3e   : > { %7217 = vmatprep.mubr.msk.bf16.mxu1 %vm874_vm1, %v8367_v32 }
  0x44   : > { %7186 = vmatmul.mubr.msk.bf16.gmra.mxu0 %vm874_vm1, %v8378_v33 }
  0x45   : > { %7218 = vmatmul.mubr.msk.bf16.gmra.mxu1 %vm874_vm1, %v8381_v34  ;;  %7189 = vmatprep.mubr.msk.bf16.mxu0 %vm874_vm1, %v8384_v35 }
  0x46   : > { %7221 = vmatprep.mubr.msk.bf16.mxu1 %vm874_vm1, %v8387_v36 }
  0x4c   : > { %7190 = vmatmul.mubr.msk.bf16.gmra.mxu0 %vm874_vm1, %v8398_v37 }
  0x4d   : > { %7222 = vmatmul.mubr.msk.bf16.gmra.mxu1 %vm874_vm1, %v8401_v38  ;;  %7293 = vmatprep.mubr.msk.bf16.mxu0 %vm874_vm1, %v8251_v10 }
  0x4e   : > { %7227 = vmatprep.mubr.msk.bf16.mxu1 %vm874_vm1, %v7826_v39  ;;  %v7879_v39 = vld [vmem:[%s11176_s2 + $0x6c] ss:$16 sps:$4 sm:$0xff]  }
  0x54   : > { %7294 = vmatmul.mubr.msk.bf16.vlgmr.msra.gmra.mxu0 %vm874_vm1, %v8263_v12 }
  0x55   : > { %7228 = vmatmul.mubr.msk.bf16.vlgmr.msra.gmra.mxu1 %vm874_vm1, %v7827_v40  ;;  %3096 = vmatpush1.bf16.msra.mxu0 %v7829_v41  ;;  %v7877_v41 = vld [vmem:[%s11176_s2 + $0x64] ss:$16 sps:$4 sm:$0xff]  }
  0x56   : > { %2807 = vmatpush1.bf16.msra.mxu1 %v7828_v42  ;;  %7231 = vmatprep.mubr.msk.bf16.mxu1 %vm874_vm1, %v8231_v4  ;;  %v6657_v4 = vld [vmem:[%s11178_s4 + $0x4] sm:$0xf] }
  0x57   : > { %7297 = vmatprep.mubr.msk.bf16.mxu0 %vm874_vm1, %v8271_v15  ;;  %2808 = vmatprep.subr.bf16.mxu1 %v8147_v13 }
  0x58   : > { %3097 = vmatprep.subr.bf16.mxu0 %v8147_v13 }
  0x59   : > { %3098 = vmatpush1.bf16.msra.mxu0 %v7831_v43 }
  0x5a   : > { %2809 = vmatpush1.bf16.msra.mxu1 %v7830_v44  ;;  %3099 = vmatprep.subr.bf16.mxu0 %v8147_v13 }
  0x5b   : > { %2810 = vmatprep.subr.bf16.mxu1 %v8147_v13 }
  0x5c   : > { %7298 = vmatmul.mubr.msk.bf16.gmra.mxu0 %vm874_vm1, %v8285_v17 }
  0x5d   : > { %7232 = vmatmul.mubr.msk.bf16.gmra.mxu1 %vm874_vm1, %v8239_v6  ;;  %7301 = vmatprep.mubr.msk.bf16.mxu0 %vm874_vm1, %v8291_v19  ;;  %v7852_v6 = vld [vmem:[%s8344_s22 + $0x50] sm:$0xff]  }
  0x5e   : > { %7235 = vmatprep.mubr.msk.bf16.mxu1 %vm874_vm1, %v8251_v10  ;;  %2811 = vmatpush1.bf16.msra.mxu1 %v7832_v45  ;;  %v6658_v10 = vld [vmem:[%s11178_s4 + $0x10] sm:$0xf] }
  0x5f   : > { %3100 = vmatpush1.bf16.msra.mxu0 %v7833_v46  ;;  %2812 = vmatprep.subr.bf16.mxu1 %v8147_v13 }
  0x60   : > { %3101 = vmatprep.subr.bf16.mxu0 %v8147_v13 }
  0x62   : > { %2813 = vmatpush1.bf16.msra.mxu1 %v7834_v47 }
  0x63   : > { %2814 = vmatprep.subr.bf16.mxu1 %v8147_v13  ;;  %3102 = vmatpush1.bf16.msra.mxu0 %v7836_v48  ;;  %v7882_v48 = vld [vmem:[%s11176_s2 + $0x68] ss:$16 sps:$4 sm:$0xff]  }
  0x64   : > { %7302 = vmatmul.mubr.msk.bf16.gmra.mxu0 %vm874_vm1, %v8305_v21  ;;  %3103 = vmatprep.subr.bf16.mxu0 %v8147_v13 }
  0x65   : > { %7236 = vmatmul.mubr.msk.bf16.gmra.mxu1 %vm874_vm1, %v8263_v12  ;;  %7305 = vmatprep.mubr.msk.bf16.mxu0 %vm874_vm1, %v8311_v23  ;;  %v7861_v12 = vld [vmem:[%s11176_s2 + $0x4] ss:$16 sps:$4 sm:$0xff]  }
  0x66   : > { %7239 = vmatprep.mubr.msk.bf16.mxu1 %vm874_vm1, %v8271_v15  ;;  %2815 = vmatpush1.bf16.msra.mxu1 %v7835_v49  ;;  %v3681_v15 = vsel %vm971_vm0, %v6657_v4, 0 }
  0x67   : > { %2816 = vmatprep.subr.bf16.mxu1 %v8147_v13  ;;  %3104 = vmatpush1.bf16.msra.mxu0 %v7838_v50  ;;  %v7881_v50 = vld [vmem:[%s11176_s2 + $0x60] ss:$16 sps:$4 sm:$0xff]  }
  0x68   : > { %3105 = vmatprep.subr.bf16.mxu0 %v8147_v13 }
  0x6a   : > { %2817 = vmatpush1.bf16.msra.mxu1 %v7837_v51  ;;  %v7886_v51 = vld [vmem:[%s11176_s2 + $0x8c] ss:$16 sps:$4 sm:$0xff]  }
  0x6b   : > { %2818 = vmatprep.subr.bf16.mxu1 %v8147_v13  ;;  %3106 = vmatpush1.bf16.msra.mxu0 %v7840_v52 }
  0x6c   : > { %7306 = vmatmul.mubr.msk.bf16.gmra.mxu0 %vm874_vm1, %v8333_v25  ;;  %3107 = vmatprep.subr.bf16.mxu0 %v8147_v13 }
  0x6d   : > { %7240 = vmatmul.mubr.msk.bf16.gmra.mxu1 %vm874_vm1, %v8285_v17  ;;  %7309 = vmatprep.mubr.msk.bf16.mxu0 %vm874_vm1, %v8339_v27  ;;  %v3389_v17 = vsel %vm971_vm0, %v6658_v10, 0 }
  0x6e   : > { %7243 = vmatprep.mubr.msk.bf16.mxu1 %vm874_vm1, %v8291_v19  ;;  %2819 = vmatpush1.bf16.msra.mxu1 %v7839_v53  ;;  %v7885_v53 = vld [vmem:[%s11176_s2 + $0x84] ss:$16 sps:$4 sm:$0xff]  }
  0x6f   : > { %2820 = vmatprep.subr.bf16.mxu1 %v8147_v13  ;;  %3108 = vmatpush1.bf16.msra.mxu0 %v7842_v54 }
  0x70   : > { %3109 = vmatprep.subr.bf16.mxu0 %v8147_v13 }
  0x72   : > { %2821 = vmatpush1.bf16.msra.mxu1 %v7841_v55 }
  0x73   : > { %2822 = vmatprep.subr.bf16.mxu1 %v8147_v13  ;;  %3110 = vmatpush1.bf16.msra.mxu0 %v7844_v56 }
  0x74   : > { %7310 = vmatmul.mubr.msk.bf16.gmra.mxu0 %vm874_vm1, %v8358_v29  ;;  %3117 = vmatprep.subr.bf16.mxu0 %v8147_v13 }
  0x75   : > { %7244 = vmatmul.mubr.msk.bf16.gmra.mxu1 %vm874_vm1, %v8305_v21  ;;  %7313 = vmatprep.mubr.msk.bf16.mxu0 %vm874_vm1, %v8364_v31 }
  0x76   : > { %7247 = vmatprep.mubr.msk.bf16.mxu1 %vm874_vm1, %v8311_v23  ;;  %2823 = vmatpush2.bf16.msra.mxu1 %v7843_v58 }
  0x77   : > { %2824 = vmatprep.subr.bf16.mxu1 %v8147_v13  ;;  %3118 = vmatpush2.bf16.msra.mxu0 %v2804_v60  ;;  %v7888_v60 = vld [vmem:[%s11176_s2 + $0x88] ss:$16 sps:$4 sm:$0xff]  }
  0x78   : > { %3119 = vmatprep.subr.bf16.mxu0 %v8147_v13 }
  0x7a   : > { %2825 = vmatpush2.bf16.msra.mxu1 %v7845_v59 }
  0x7b   : > { %2826 = vmatprep.subr.bf16.mxu1 %v8147_v13  ;;  %3120 = vmatpush2.bf16.msra.mxu0 %v7849_v61 }
  0x7c   : > { %7314 = vmatmul.mubr.msk.bf16.gmra.mxu0 %vm874_vm1, %v8378_v33  ;;  %3121 = vmatprep.subr.bf16.mxu0 %v8147_v13 }
  0x7d   : > { %7248 = vmatmul.mubr.msk.bf16.gmra.mxu1 %vm874_vm1, %v8333_v25  ;;  %7317 = vmatprep.mubr.msk.bf16.mxu0 %vm874_vm1, %v8384_v35 }
  0x7e   : > { %7251 = vmatprep.mubr.msk.bf16.mxu1 %vm874_vm1, %v8339_v27  ;;  %2827 = vmatpush2.bf16.msra.mxu1 %v7846_v62  ;;  %v7873_v27 = vld [vmem:[%s11176_s2 + $0x4c] ss:$16 sps:$4 sm:$0xff]   ;;  %v7883_v62 = vld [vmem:[%s11176_s2 + $0x80] ss:$16 sps:$4 sm:$0xff]  }
  0x7f   : > { %2828 = vmatprep.subr.bf16.mxu1 %v8147_v13  ;;  %3122 = vmatpush2.bf16.msra.mxu0 %v7851_v63  ;;  %v7892_v63 = vld [vmem:[%s11176_s2 + $0xac] ss:$16 sps:$4 sm:$0xff]  }
  0x80   : > { %3123 = vmatprep.subr.bf16.mxu0 %v8147_v13 }
  0x82   : > { %2829 = vmatpush2.bf16.msra.mxu1 %v7848_v0 }
  0x83   : > { %2830 = vmatprep.subr.bf16.mxu1 %v8147_v13  ;;  %3124 = vmatpush2.bf16.msra.mxu0 %v7853_v1  ;;  %v7891_v1 = vld [vmem:[%s11176_s2 + $0xa4] ss:$16 sps:$4 sm:$0xff]  }
  0x84   : > { %7318 = vmatmul.mubr.msk.bf16.gmra.mxu0 %vm874_vm1, %v8398_v37  ;;  %3125 = vmatprep.subr.bf16.mxu0 %v8147_v13 }
  0x85   : > { %7252 = vmatmul.mubr.msk.bf16.gmra.mxu1 %vm874_vm1, %v8358_v29  ;;  %7321 = vmatprep.mubr.msk.bf16.mxu0 %vm874_vm1, %v8234_v5  ;;  %v7871_v29 = vld [vmem:[%s11176_s2 + $0x44] ss:$16 sps:$4 sm:$0xff]  }
  0x86   : > { %7255 = vmatprep.mubr.msk.bf16.mxu1 %vm874_vm1, %v8364_v31  ;;  %2831 = vmatpush2.bf16.msra.mxu1 %v7850_v2 }
  0x87   : > { %2832 = vmatprep.subr.bf16.mxu1 %v8147_v13  ;;  %3126 = vmatpush2.bf16.msra.mxu0 %v7858_v3 }
  0x88   : > { %7760 = vmatprep.subr.msk.bf16.mxu0 %vm971_vm0, %v6657_v4 }
  0x8a   : > { %2833 = vmatpush2.bf16.msra.mxu1 %v7852_v6 }
  0x8b   : > { %2834 = vmatprep.subr.bf16.mxu1 %v8147_v13 }
  0x8c   : > { %7322 = vmatmul.mubr.msk.bf16.gmra.mxu0 %vm874_vm1, %v8245_v8 }
  0x8d   : > { %7256 = vmatmul.mubr.msk.bf16.gmra.mxu1 %vm874_vm1, %v8378_v33  ;;  %7325 = vmatprep.mubr.msk.bf16.mxu0 %vm874_vm1, %v8256_v11 }
  0x8e   : > { %7259 = vmatprep.mubr.msk.bf16.mxu1 %vm874_vm1, %v8384_v35  ;;  %2835 = vmatpush2.bf16.msra.mxu1 %v7854_v7 }
  0x8f   : > { %2836 = vmatprep.subr.bf16.mxu1 %v8147_v13  ;;  %v7862_v13 = vld [vmem:[%s11176_s2 + $0x8] ss:$16 sps:$4 sm:$0xff]  }
  0x92   : > { %2837 = vmatpush2.bf16.msra.mxu1 %v7857_v9 }
  0x93   : > { %7759 = vmatprep.subr.msk.bf16.mxu1 %vm971_vm0, %v6658_v10  ;;  %v7894_v10 = vld [vmem:[%s11176_s2 + $0xa8] ss:$16 sps:$4 sm:$0xff]  }
  0x94   : > { %7326 = vmatmul.mubr.msk.bf16.gmra.mxu0 %vm874_vm1, %v8267_v14 }
  0x95   : > { %7260 = vmatmul.mubr.msk.bf16.gmra.mxu1 %vm874_vm1, %v8398_v37  ;;  %7329 = vmatprep.mubr.msk.bf16.mxu0 %vm874_vm1, %v8274_v16 }
  0x96   : > { %7263 = vmatprep.mubr.msk.bf16.mxu1 %vm874_vm1, %v8234_v5  ;;  %v7855_v5 = vld [vmem:[%s8323_s18 + $0x10] sm:$0xff]  }
  0x9c   : > { %7330 = vmatmul.mubr.msk.bf16.gmra.mxu0 %vm874_vm1, %v8288_v18 }
  0x9d   : > { %7264 = vmatmul.mubr.msk.bf16.gmra.mxu1 %vm874_vm1, %v8245_v8  ;;  %7333 = vmatprep.mubr.msk.bf16.mxu0 %vm874_vm1, %v8294_v20  ;;  %v7856_v8 = vld [vmem:[%s8323_s18 + $0x18] sm:$0xff]  }
  0x9e   : > { %7267 = vmatprep.mubr.msk.bf16.mxu1 %vm874_vm1, %v8256_v11  ;;  %v7864_v11 = vld [vmem:[%s11176_s2 + $0xc] ss:$16 sps:$4 sm:$0xff]  }
  0xa4   : > { %7334 = vmatmul.mubr.msk.bf16.gmra.mxu0 %vm874_vm1, %v8308_v22 }
  0xa5   : > { %7268 = vmatmul.mubr.msk.bf16.gmra.mxu1 %vm874_vm1, %v8267_v14  ;;  %7337 = vmatprep.mubr.msk.bf16.mxu0 %vm874_vm1, %v8316_v24  ;;  %v7859_v14 = vld [vmem:[%s11176_s2] ss:$16 sps:$4 sm:$0xff]  }
  0xa6   : > { %7271 = vmatprep.mubr.msk.bf16.mxu1 %vm874_vm1, %v8274_v16  ;;  %v7865_v16 = vld [vmem:[%s11176_s2 + $0x24] ss:$16 sps:$4 sm:$0xff]  }
  0xac   : > { %7338 = vmatmul.mubr.msk.bf16.gmra.mxu0 %vm874_vm1, %v8336_v26 }
  0xad   : > { %7272 = vmatmul.mubr.msk.bf16.gmra.mxu1 %vm874_vm1, %v8288_v18  ;;  %7341 = vmatprep.mubr.msk.bf16.mxu0 %vm874_vm1, %v8347_v28  ;;  %v7867_v18 = vld [vmem:[%s11176_s2 + $0x2c] ss:$16 sps:$4 sm:$0xff]  }
  0xae   : > { %7275 = vmatprep.mubr.msk.bf16.mxu1 %vm874_vm1, %v8294_v20 }
  0xb4   : > { %7342 = vmatmul.mubr.msk.bf16.gmra.mxu0 %vm874_vm1, %v8361_v30 }
  0xb5   : > { %7276 = vmatmul.mubr.msk.bf16.gmra.mxu1 %vm874_vm1, %v8308_v22  ;;  %7345 = vmatprep.mubr.msk.bf16.mxu0 %vm874_vm1, %v8367_v32 }
  0xb6   : > { %7279 = vmatprep.mubr.msk.bf16.mxu1 %vm874_vm1, %v8316_v24  ;;  %v7870_v24 = vld [vmem:[%s11176_s2 + $0x28] ss:$16 sps:$4 sm:$0xff]  }
  0xbc   : > { %7346 = vmatmul.mubr.msk.bf16.gmra.mxu0 %vm874_vm1, %v8381_v34 }
  0xbd   : > { %7280 = vmatmul.mubr.msk.bf16.gmra.mxu1 %vm874_vm1, %v8336_v26  ;;  %7349 = vmatprep.mubr.msk.bf16.mxu0 %vm874_vm1, %v8387_v36  ;;  %v7869_v26 = vld [vmem:[%s11176_s2 + $0x20] ss:$16 sps:$4 sm:$0xff]   ;;  %v7876_v36 = vld [vmem:[%s11176_s2 + $0x48] ss:$16 sps:$4 sm:$0xff]  }
  0xbe   : > { %7283 = vmatprep.mubr.msk.bf16.mxu1 %vm874_vm1, %v8347_v28 }
  0xc4   : > { %7350 = vmatmul.mubr.msk.bf16.gmra.mxu0 %vm874_vm1, %v8401_v38  ;;  %v7875_v38 = vld [vmem:[%s11176_s2 + $0x40] ss:$16 sps:$4 sm:$0xff]  }
  0xc5   : > { %7284 = vmatmul.mubr.msk.bf16.gmra.mxu1 %vm874_vm1, %v8361_v30  ;;  %7353 = vmatprep.mubr.msk.bf16.mxu0 %vm874_vm1, %v7855_v5 }
  0xc6   : > { %7287 = vmatprep.mubr.msk.bf16.mxu1 %vm874_vm1, %v8367_v32 }
  0xcc   : > { %7354 = vmatmul.mubr.msk.bf16.gmra.mxu0 %vm874_vm1, %v7856_v8  ;;  %v7889_v8 = vld [vmem:[%s11176_s2 + $0xa0] ss:$16 sps:$4 sm:$0xff]  }
  0xcd   : > { %7288 = vmatmul.mubr.msk.bf16.gmra.mxu1 %vm874_vm1, %v8381_v34  ;;  %6625 = vmatprep.mubr.msk.bf16.mxu0 %vm2705_vm3, %v7864_v11  ;;  %v7898_v11 = vld [vmem:[%s11176_s2 + $0xcc] ss:$16 sps:$4 sm:$0xff]  }
  0xce   : > { %2838 = vmatprep.mubr.bf16.mxu1 %v7861_v12 }
  0xd4   : > { %v8620_v19 = vpop.f32.mrf.mxu0  ;;  %3128 = vmatmul.mubr.bf16.vlgmr.msra.gmra.mxu0 %v7862_v13  ;;  %v7897_v13 = vld [vmem:[%s11176_s2 + $0xc4] ss:$16 sps:$4 sm:$0xff]  }
  0xd5   : > { %v8622_v20 = vpop.f32.mrf.mxu1  ;;  %2839 = vmatmul.mubr.bf16.vlgmr.msra.gmra.mxu1 %v7859_v14  ;;  %7424 = vmatpush3.bf16.msra.mxu0 %v3681_v15 }
  0xd6   : > { %7358 = vmatpush3.bf16.msra.mxu1 %v3389_v17  ;;  %v8624_v21 = vpop.f32.mrf.mxu0  ;;  %2846 = vmatprep.mubr.bf16.mxu1 %v7865_v16 }
  0xd7   : > { %v8626_v22 = vpop.f32.mrf.mxu1  ;;  %6626 = vmatprep.mubr.msk.bf16.mxu0 %vm2705_vm3, %v7867_v18 }
  0xd8   : > { %v8629_v23 = vpop.f32.mrf.mxu0 }
  0xd9   : > { %v8634_v25 = vpop.f32.mrf.mxu1 }
  0xda   : > { %v8642_v28 = vpop.f32.mrf.mxu0 }
  0xdb   : > { %v8647_v30 = vpop.f32.mrf.mxu1 }
  0xdc   : > { %v8649_v31 = vpop.f32.mrf.mxu0  ;;  %3136 = vmatmul.mubr.bf16.gmra.mxu0 %v7870_v24 }
  0xdd   : > { %v8651_v32 = vpop.f32.mrf.mxu1  ;;  %2847 = vmatmul.mubr.bf16.gmra.mxu1 %v7869_v26  ;;  %6627 = vmatprep.mubr.msk.bf16.mxu0 %vm2705_vm3, %v7873_v27  ;;  %v7900_v26 = vld [vmem:[%s11176_s2 + $0xc8] ss:$16 sps:$4 sm:$0xff]  }
  0xde   : > { %v8654_v33 = vpop.f32.mrf.mxu0  ;;  %2854 = vmatprep.mubr.bf16.mxu1 %v7871_v29  ;;  %v7895_v29 = vld [vmem:[%s11176_s2 + $0xc0] ss:$16 sps:$4 sm:$0xff]  }
  0xdf   : > { %v8656_v34 = vpop.f32.mrf.mxu1 }
  0xe0   : > { %v8658_v35 = vpop.f32.mrf.mxu0 }
  0xe1   : > { %v8663_v37 = vpop.f32.mrf.mxu1 }
  0xe2   : > { %v8671_v40 = vpop.f32.mrf.mxu0 }
  0xe3   : > { %v8676_v42 = vpop.f32.mrf.mxu1 }
  0xe4   : > { %v8678_v43 = vpop.f32.mrf.mxu0  ;;  %3144 = vmatmul.mubr.bf16.gmra.mxu0 %v7876_v36  ;;  %v7904_v36 = vld [vmem:[%s11176_s2 + $0xec] ss:$16 sps:$4 sm:$0xff]  }
  0xe5   : > { %v8680_v44 = vpop.f32.mrf.mxu1  ;;  %2855 = vmatmul.mubr.bf16.gmra.mxu1 %v7875_v38  ;;  %6628 = vmatprep.mubr.msk.bf16.mxu0 %vm2705_vm3, %v7879_v39  ;;  %v7903_v39 = vld [vmem:[%s11176_s2 + $0xe4] ss:$16 sps:$4 sm:$0xff]  }
  0xe6   : > { %v8683_v45 = vpop.f32.mrf.mxu0  ;;  %2862 = vmatprep.mubr.bf16.mxu1 %v7877_v41 }
  0xe7   : > { %v8685_v46 = vpop.f32.mrf.mxu1 }
  0xe8   : > { %v8687_v47 = vpop.f32.mrf.mxu0 }
  0xe9   : > { %v8692_v49 = vpop.f32.mrf.mxu1 }
  0xea   : > { %v8700_v52 = vpop.f32.mrf.mxu0 }
  0xeb   : > { %v8705_v54 = vpop.f32.mrf.mxu1 }
  0xec   : > { %v8707_v55 = vpop.f32.mrf.mxu0  ;;  %3152 = vmatmul.mubr.bf16.gmra.mxu0 %v7882_v48 }
  0xed   : > { %v8709_v56 = vpop.f32.mrf.mxu1  ;;  %2863 = vmatmul.mubr.bf16.gmra.mxu1 %v7881_v50  ;;  %6629 = vmatprep.mubr.msk.bf16.mxu0 %vm2705_vm3, %v7886_v51 }
  0xee   : > { %v8712_v57 = vpop.f32.mrf.mxu0  ;;  %2870 = vmatprep.mubr.bf16.mxu1 %v7885_v53 }
  0xef   : > { %v8714_v58 = vpop.f32.mrf.mxu1 }
  0xf0   : > { %v8716_v59 = vpop.f32.mrf.mxu0 }
  0xf1   : > { %v8721_v61 = vpop.f32.mrf.mxu1 }
  0xf2   : > { %v8729_v0 = vpop.f32.mrf.mxu0 }
  0xf3   : > { %v8734_v2 = vpop.f32.mrf.mxu1 }
  0xf4   : > { %v8736_v3 = vpop.f32.mrf.mxu0  ;;  %3160 = vmatmul.mubr.bf16.gmra.mxu0 %v7888_v60 }
  0xf5   : > { %v8738_v4 = vpop.f32.mrf.mxu1  ;;  %2871 = vmatmul.mubr.bf16.gmra.mxu1 %v7883_v62  ;;  %6630 = vmatprep.mubr.msk.bf16.mxu0 %vm2705_vm3, %v7892_v63  ;;  %v7906_v62 = vld [vmem:[%s11176_s2 + $0xe8] ss:$16 sps:$4 sm:$0xff]  }
  0xf6   : > { %v8741_v6 = vpop.f32.mrf.mxu0  ;;  %2878 = vmatprep.mubr.bf16.mxu1 %v7891_v1  ;;  %v7901_v1 = vld [vmem:[%s11176_s2 + $0xe0] ss:$16 sps:$4 sm:$0xff]  }
  0xf7   : > { %v8743_v7 = vpop.f32.mrf.mxu1 }
  0xf8   : > { %v8745_v9 = vpop.f32.mrf.mxu0 }
  0xf9   : > { %v8750_v5 = vpop.f32.mrf.mxu1 }
  0xfa   : > { %11185 = vst [vmem:[#allocation2_spill] sm:$0xff] %v8750_v5  ;;  %v8758_v12 = vpop.f32.mrf.mxu0 }
  0xfb   : > { %v8763_v14 = vpop.f32.mrf.mxu1 }
  0xfc   : > { %11186 = vst [vmem:[#allocation3_spill] sm:$0xff] %v8763_v14  ;;  %v8765_v15 = vpop.f32.mrf.mxu0  ;;  %3168 = vmatmul.mubr.bf16.gmra.mxu0 %v7894_v10  ;;  %v7910_v10 = vld [vmem:[%s11176_s2 + $0x10c] ss:$16 sps:$4 sm:$0xff]  }
  0xfd   : > { %v8767_v16 = vpop.f32.mrf.mxu1  ;;  %2879 = vmatmul.mubr.bf16.gmra.mxu1 %v7889_v8  ;;  %6631 = vmatprep.mubr.msk.bf16.mxu0 %vm2705_vm3, %v7898_v11  ;;  %v7909_v11 = vld [vmem:[%s11176_s2 + $0x104] ss:$16 sps:$4 sm:$0xff]  }
  0xfe   : > { %11187 = vst [vmem:[#allocation4_spill] sm:$0xff] %v8767_v16  ;;  %v8770_v17 = vpop.f32.mrf.mxu0  ;;  %2886 = vmatprep.mubr.bf16.mxu1 %v7897_v13 }
  0xff   : > { %v8772_v18 = vpop.f32.mrf.mxu1 }
 0x100   : > { %11188 = vst [vmem:[#allocation5_spill] sm:$0xff] %v8772_v18  ;;  %v8774_v24 = vpop.f32.mrf.mxu0 }
 0x101   : > { %v8779_v27 = vpop.f32.mrf.mxu1 }
 0x102   : > { %11189 = vst [vmem:[#allocation6_spill] sm:$0xff] %v8779_v27  ;;  %v8787_v38 = vpop.f32.mrf.mxu0 }
 0x103   : > { %v8792_v41 = vpop.f32.mrf.mxu1 }
 0x104   : > { %11190 = vst [vmem:[#allocation7_spill] sm:$0xff] %v8792_v41  ;;  %v8794_v48 = vpop.f32.mrf.mxu0  ;;  %3176 = vmatmul.mubr.bf16.gmra.mxu0 %v7900_v26 }
 0x105   : > { %v8796_v50 = vpop.f32.mrf.mxu1  ;;  %2887 = vmatmul.mubr.bf16.gmra.mxu1 %v7895_v29  ;;  %6632 = vmatprep.mubr.msk.bf16.mxu0 %vm2705_vm3, %v7904_v36 }
 0x106   : > { %11191 = vst [vmem:[#allocation8_spill] sm:$0xff] %v8796_v50  ;;  %v8799_v51 = vpop.f32.mrf.mxu0  ;;  %2894 = vmatprep.mubr.bf16.mxu1 %v7903_v39 }
 0x107   : > { %v8801_v53 = vpop.f32.mrf.mxu1 }
 0x108   : > { %11192 = vst [vmem:[#allocation9_spill] sm:$0xff] %v8801_v53  ;;  %v8803_v60 = vpop.f32.mrf.mxu0  ;;  %v7912_v53 = vld [vmem:[%s11176_s2 + $0x108] ss:$16 sps:$4 sm:$0xff]  }
 0x109   : > { %v8808_v63 = vpop.f32.mrf.mxu1 }
 0x10a   : > { %11193 = vst [vmem:[#allocation10_spill] sm:$0xff] %v8808_v63  ;;  %v8816_v8 = vpop.f32.mrf.mxu0 }
 0x10b   : > { %v8821_v13 = vpop.f32.mrf.mxu1 }
 0x10c   : > { %11194 = vst [vmem:[#allocation11_spill] sm:$0xff] %v8821_v13  ;;  %v8823_v26 = vpop.f32.mrf.mxu0  ;;  %3184 = vmatmul.mubr.bf16.gmra.mxu0 %v7906_v62  ;;  %v7907_v62 = vld [vmem:[%s11176_s2 + $0x100] ss:$16 sps:$4 sm:$0xff]  }
 0x10d   : > { %v8825_v29 = vpop.f32.mrf.mxu1  ;;  %2895 = vmatmul.mubr.bf16.gmra.mxu1 %v7901_v1  ;;  %6633 = vmatprep.mubr.msk.bf16.mxu0 %vm2705_vm3, %v7910_v10  ;;  %v7916_v1 = vld [vmem:[%s11176_s2 + $0x12c] ss:$16 sps:$4 sm:$0xff]  }
 0x10e   : > { %11195 = vst [vmem:[#allocation12_spill] sm:$0xff] %v8825_v29  ;;  %v8828_v36 = vpop.f32.mrf.mxu0  ;;  %2902 = vmatprep.mubr.bf16.mxu1 %v7909_v11  ;;  %v7915_v11 = vld [vmem:[%s11176_s2 + $0x124] ss:$16 sps:$4 sm:$0xff]  }
 0x10f   : > { %v8830_v39 = vpop.f32.mrf.mxu1 }
 0x110   : > { %11196 = vst [vmem:[#allocation13_spill] sm:$0xff] %v8830_v39  ;;  %v8832_v63 = vpop.f32.mrf.mxu0 }
 0x111   : > { %v8837_v13 = vpop.f32.mrf.mxu1 }
 0x112   : > { %11197 = vst [vmem:[#allocation14_spill] sm:$0xff] %v8837_v13  ;;  %v8845_v10 = vpop.f32.mrf.mxu0 }
 0x113   : > { %v8850_v39 = vpop.f32.mrf.mxu1 }
 0x114   : > { %11198 = vst [vmem:[#allocation15_spill] sm:$0xff] %v8850_v39  ;;  %v7295_v29 = vpop.f32.mrf.mxu0  ;;  %3192 = vmatmul.mubr.bf16.gmra.mxu0 %v7912_v53  ;;  %v7918_v39 = vld [vmem:[%s11176_s2 + $0x128] ss:$16 sps:$4 sm:$0xff]   ;;  %v7913_v53 = vld [vmem:[%s11176_s2 + $0x120] ss:$16 sps:$4 sm:$0xff]  }
 0x115   : > { %v7229_v50 = vpop.f32.mrf.mxu1  ;;  %2903 = vmatmul.mubr.bf16.gmra.mxu1 %v7907_v62  ;;  %6634 = vmatprep.mubr.msk.bf16.mxu0 %vm2705_vm3, %v7916_v1 }
 0x116   : > { %v1316_v13 = vadd.f32 %v7229_v50, %v8620_v19  ;;  %v1607_v41 = vpop.f32.mrf.mxu0  ;;  %2910 = vmatprep.mubr.bf16.mxu1 %v7915_v11  ;;  %v7922_v19 = vld [vmem:[%s11176_s2 + $0x14c] ss:$16 sps:$4 sm:$0xff]  }
 0x117   : > { %v1307_v27 = vpop.f32.mrf.mxu1 }
 0x118   : > { %v8854_v18 = vadd.f32 %v7295_v29, %v1316_v13  ;;  %v1308_v16 = vadd.f32 %v1307_v27, %v8624_v21  ;;  %v7296_v14 = vpop.f32.mrf.mxu0  ;;  %v7921_v21 = vld [vmem:[%s11176_s2 + $0x144] ss:$16 sps:$4 sm:$0xff]  }
 0x119   : > { %v7230_v5 = vpop.f32.mrf.mxu1 }
 0x11a   : > { %11199 = vst [vmem:[#allocation16_spill] sm:$0xff] %v8854_v18  ;;  %v8866_v50 = vadd.f32 %v1607_v41, %v1308_v16  ;;  %v1319_v13 = vadd.f32 %v7230_v5, %v8629_v23  ;;  %v1610_v29 = vpop.f32.mrf.mxu0 }
 0x11b   : > { %v1310_v27 = vpop.f32.mrf.mxu1 }
 0x11c   : > { %11200 = vst [vmem:[#allocation17_spill] sm:$0xff] %v8866_v50  ;;  %v8872_v62 = vadd.f32 %v7296_v14, %v1319_v13  ;;  %v1311_v1 = vadd.f32 %v1310_v27, %v8642_v28  ;;  %v7299_v11 = vpop.f32.mrf.mxu0  ;;  %3200 = vmatmul.mubr.bf16.gmra.mxu0 %v7918_v39  ;;  %v7924_v28 = vld [vmem:[%s11176_s2 + $0x148] ss:$16 sps:$4 sm:$0xff]  }
 0x11d   : > { %v7233_v18 = vpop.f32.mrf.mxu1  ;;  %2911 = vmatmul.mubr.bf16.gmra.mxu1 %v7913_v53  ;;  %6635 = vmatprep.mubr.msk.bf16.mxu0 %vm2705_vm3, %v7922_v19  ;;  %v7919_v53 = vld [vmem:[%s11176_s2 + $0x140] ss:$16 sps:$4 sm:$0xff]  }
 0x11e   : > { %v8876_v16 = vadd.f32 %v1610_v29, %v1311_v1  ;;  %v1332_v23 = vadd.f32 %v7233_v18, %v8649_v31  ;;  %v1623_v5 = vpop.f32.mrf.mxu0  ;;  %2918 = vmatprep.mubr.bf16.mxu1 %v7921_v21  ;;  %v7928_v31 = vld [vmem:[%s11176_s2 + $0x16c] ss:$16 sps:$4 sm:$0xff]  }
 0x11f   : > { %v1323_v41 = vpop.f32.mrf.mxu1 }
 0x120   : > { %v8879_v50 = vadd.f32 %v7299_v11, %v1332_v23  ;;  %v1324_v14 = vadd.f32 %v1323_v41, %v8654_v33  ;;  %v7300_v13 = vpop.f32.mrf.mxu0  ;;  %v7927_v33 = vld [vmem:[%s11176_s2 + $0x164] ss:$16 sps:$4 sm:$0xff]  }
 0x121   : > { %v7234_v39 = vpop.f32.mrf.mxu1 }
 0x122   : > { %v8891_v18 = vadd.f32 %v1623_v5, %v1324_v14  ;;  %v1335_v19 = vadd.f32 %v7234_v39, %v8658_v35  ;;  %v1626_v29 = vpop.f32.mrf.mxu0 }
 0x123   : > { %v1326_v21 = vpop.f32.mrf.mxu1 }
 0x124   : > { %v8897_v27 = vadd.f32 %v7300_v13, %v1335_v19  ;;  %v1327_v1 = vadd.f32 %v1326_v21, %v8671_v40  ;;  %v7303_v11 = vpop.f32.mrf.mxu0  ;;  %3208 = vmatmul.mubr.bf16.gmra.mxu0 %v7924_v28  ;;  %v7930_v40 = vld [vmem:[%s11176_s2 + $0x168] ss:$16 sps:$4 sm:$0xff]  }
 0x125   : > { %v7237_v23 = vpop.f32.mrf.mxu1  ;;  %2919 = vmatmul.mubr.bf16.gmra.mxu1 %v7919_v53  ;;  %6636 = vmatprep.mubr.msk.bf16.mxu0 %vm2705_vm3, %v7928_v31  ;;  %v7925_v53 = vld [vmem:[%s11176_s2 + $0x160] ss:$16 sps:$4 sm:$0xff]  }
 0x126   : > { %v8901_v5 = vadd.f32 %v1626_v29, %v1327_v1  ;;  %v1348_v35 = vadd.f32 %v7237_v23, %v8678_v43  ;;  %v1639_v41 = vpop.f32.mrf.mxu0  ;;  %2926 = vmatprep.mubr.bf16.mxu1 %v7927_v33  ;;  %v7934_v43 = vld [vmem:[%s11176_s2 + $0x18c] ss:$16 sps:$4 sm:$0xff]  }
 0x127   : > { %v1339_v14 = vpop.f32.mrf.mxu1 }
 0x128   : > { %v8904_v39 = vadd.f32 %v7303_v11, %v1348_v35  ;;  %v1340_v13 = vadd.f32 %v1339_v14, %v8683_v45  ;;  %v7304_v19 = vpop.f32.mrf.mxu0  ;;  %v7933_v45 = vld [vmem:[%s11176_s2 + $0x184] ss:$16 sps:$4 sm:$0xff]  }
 0x129   : > { %v7238_v28 = vpop.f32.mrf.mxu1 }
 0x12a   : > { %v8916_v31 = vadd.f32 %v1639_v41, %v1340_v13  ;;  %v1351_v29 = vadd.f32 %v7238_v28, %v8687_v47  ;;  %v1642_v33 = vpop.f32.mrf.mxu0 }
 0x12b   : > { %v1342_v21 = vpop.f32.mrf.mxu1 }
 0x12c   : > { %v8922_v1 = vadd.f32 %v7304_v19, %v1351_v29  ;;  %v1343_v11 = vadd.f32 %v1342_v21, %v8700_v52  ;;  %v7307_v23 = vpop.f32.mrf.mxu0  ;;  %3216 = vmatmul.mubr.bf16.gmra.mxu0 %v7930_v40  ;;  %v7936_v52 = vld [vmem:[%s11176_s2 + $0x188] ss:$16 sps:$4 sm:$0xff]  }
 0x12d   : > { %v7241_v35 = vpop.f32.mrf.mxu1  ;;  %2927 = vmatmul.mubr.bf16.gmra.mxu1 %v7925_v53  ;;  %6637 = vmatprep.mubr.msk.bf16.mxu0 %vm2705_vm3, %v7934_v43  ;;  %v7931_v53 = vld [vmem:[%s11176_s2 + $0x180] ss:$16 sps:$4 sm:$0xff]  }
 0x12e   : > { %v8926_v41 = vadd.f32 %v1642_v33, %v1343_v11  ;;  %v1364_v47 = vadd.f32 %v7241_v35, %v8707_v55  ;;  %v1655_v14 = vpop.f32.mrf.mxu0  ;;  %2934 = vmatprep.mubr.bf16.mxu1 %v7933_v45  ;;  %v7940_v55 = vld [vmem:[%s11176_s2 + $0x1ac] ss:$16 sps:$4 sm:$0xff]  }
 0x12f   : > { %v1355_v13 = vpop.f32.mrf.mxu1 }
 0x130   : > { %v8929_v28 = vadd.f32 %v7307_v23, %v1364_v47  ;;  %v1356_v19 = vadd.f32 %v1355_v13, %v8712_v57  ;;  %v7308_v29 = vpop.f32.mrf.mxu0  ;;  %v7939_v57 = vld [vmem:[%s11176_s2 + $0x1a4] ss:$16 sps:$4 sm:$0xff]  }
 0x131   : > { %v7242_v40 = vpop.f32.mrf.mxu1 }
 0x132   : > { %v8941_v43 = vadd.f32 %v1655_v14, %v1356_v19  ;;  %v1367_v33 = vadd.f32 %v7242_v40, %v8716_v59  ;;  %v1658_v45 = vpop.f32.mrf.mxu0 }
 0x133   : > { %v1358_v21 = vpop.f32.mrf.mxu1 }
 0x134   : > { %v8947_v11 = vadd.f32 %v7308_v29, %v1367_v33  ;;  %v1359_v23 = vadd.f32 %v1358_v21, %v8729_v0  ;;  %v7311_v35 = vpop.f32.mrf.mxu0  ;;  %3224 = vmatmul.mubr.bf16.gmra.mxu0 %v7936_v52  ;;  %v7942_v0 = vld [vmem:[%s11176_s2 + $0x1a8] ss:$16 sps:$4 sm:$0xff]  }
 0x135   : > { %v7245_v47 = vpop.f32.mrf.mxu1  ;;  %2935 = vmatmul.mubr.bf16.gmra.mxu1 %v7931_v53  ;;  %6638 = vmatprep.mubr.msk.bf16.mxu0 %vm2705_vm3, %v7940_v55  ;;  %v7937_v53 = vld [vmem:[%s11176_s2 + $0x1a0] ss:$16 sps:$4 sm:$0xff]  }
 0x136   : > { %v8951_v14 = vadd.f32 %v1658_v45, %v1359_v23  ;;  %v1380_v59 = vadd.f32 %v7245_v47, %v8736_v3  ;;  %v1671_v13 = vpop.f32.mrf.mxu0  ;;  %2942 = vmatprep.mubr.bf16.mxu1 %v7939_v57  ;;  %v7946_v3 = vld [vmem:[%s11176_s2 + $0x1cc] ss:$16 sps:$4 sm:$0xff]  }
 0x137   : > { %v1371_v19 = vpop.f32.mrf.mxu1 }
 0x138   : > { %v8954_v40 = vadd.f32 %v7311_v35, %v1380_v59  ;;  %v1372_v29 = vadd.f32 %v1371_v19, %v8741_v6  ;;  %v7312_v33 = vpop.f32.mrf.mxu0  ;;  %v7945_v6 = vld [vmem:[%s11176_s2 + $0x1c4] ss:$16 sps:$4 sm:$0xff]  }
 0x139   : > { %v7246_v52 = vpop.f32.mrf.mxu1 }
 0x13a   : > { %v8966_v55 = vadd.f32 %v1671_v13, %v1372_v29  ;;  %v1383_v45 = vadd.f32 %v7246_v52, %v8745_v9  ;;  %v1674_v57 = vpop.f32.mrf.mxu0 }
 0x13b   : > { %v1374_v21 = vpop.f32.mrf.mxu1 }
 0x13c   : > { %v8972_v23 = vadd.f32 %v7312_v33, %v1383_v45  ;;  %v1375_v35 = vadd.f32 %v1374_v21, %v8758_v12  ;;  %v7315_v47 = vpop.f32.mrf.mxu0  ;;  %3232 = vmatmul.mubr.bf16.gmra.mxu0 %v7942_v0  ;;  %v7948_v12 = vld [vmem:[%s11176_s2 + $0x1c8] ss:$16 sps:$4 sm:$0xff]  }
 0x13d   : > { %v7249_v59 = vpop.f32.mrf.mxu1  ;;  %2943 = vmatmul.mubr.bf16.gmra.mxu1 %v7937_v53  ;;  %6639 = vmatprep.mubr.msk.bf16.mxu0 %vm2705_vm3, %v7946_v3  ;;  %v7943_v53 = vld [vmem:[%s11176_s2 + $0x1c0] ss:$16 sps:$4 sm:$0xff]  }
 0x13e   : > { %v8976_v13 = vadd.f32 %v1674_v57, %v1375_v35  ;;  %v1396_v9 = vadd.f32 %v7249_v59, %v8765_v15  ;;  %v1687_v19 = vpop.f32.mrf.mxu0  ;;  %2950 = vmatprep.mubr.bf16.mxu1 %v7945_v6  ;;  %v7952_v15 = vld [vmem:[%s11176_s2 + $0x1ec] ss:$16 sps:$4 sm:$0xff]  }
 0x13f   : > { %v1387_v29 = vpop.f32.mrf.mxu1 }
 0x140   : > { %v8979_v52 = vadd.f32 %v7315_v47, %v1396_v9  ;;  %v1388_v33 = vadd.f32 %v1387_v29, %v8770_v17  ;;  %v7316_v45 = vpop.f32.mrf.mxu0  ;;  %v7951_v17 = vld [vmem:[%s11176_s2 + $0x1e4] ss:$16 sps:$4 sm:$0xff]  }
 0x141   : > { %v7250_v0 = vpop.f32.mrf.mxu1 }
 0x142   : > { %v8991_v3 = vadd.f32 %v1687_v19, %v1388_v33  ;;  %v1399_v57 = vadd.f32 %v7250_v0, %v8774_v24  ;;  %v1690_v6 = vpop.f32.mrf.mxu0 }
 0x143   : > { %v1390_v21 = vpop.f32.mrf.mxu1 }
 0x144   : > { %v8997_v35 = vadd.f32 %v7316_v45, %v1399_v57  ;;  %v1391_v47 = vadd.f32 %v1390_v21, %v8787_v38  ;;  %v7319_v59 = vpop.f32.mrf.mxu0  ;;  %3240 = vmatmul.mubr.bf16.gmra.mxu0 %v7948_v12  ;;  %v7954_v38 = vld [vmem:[%s11176_s2 + $0x1e8] ss:$16 sps:$4 sm:$0xff]  }
 0x145   : > { %v7253_v9 = vpop.f32.mrf.mxu1  ;;  %2951 = vmatmul.mubr.bf16.gmra.mxu1 %v7943_v53  ;;  %6640 = vmatprep.mubr.msk.bf16.mxu0 %vm2705_vm3, %v7952_v15  ;;  %v7949_v53 = vld [vmem:[%s11176_s2 + $0x1e0] ss:$16 sps:$4 sm:$0xff]  }
 0x146   : > { %v9001_v19 = vadd.f32 %v1690_v6, %v1391_v47  ;;  %v1412_v24 = vadd.f32 %v7253_v9, %v8794_v48  ;;  %v1703_v29 = vpop.f32.mrf.mxu0  ;;  %2958 = vmatprep.mubr.bf16.mxu1 %v7951_v17  ;;  %v7958_v48 = vld [vmem:[%s11176_s2 + $0x20c] ss:$16 sps:$4 sm:$0xff]  }
 0x147   : > { %v1403_v33 = vpop.f32.mrf.mxu1 }
 0x148   : > { %v9004_v0 = vadd.f32 %v7319_v59, %v1412_v24  ;;  %v1404_v45 = vadd.f32 %v1403_v33, %v8799_v51  ;;  %v7320_v57 = vpop.f32.mrf.mxu0  ;;  %v7957_v51 = vld [vmem:[%s11176_s2 + $0x204] ss:$16 sps:$4 sm:$0xff]  }
 0x149   : > { %v7254_v12 = vpop.f32.mrf.mxu1 }
 0x14a   : > { %v9016_v15 = vadd.f32 %v1703_v29, %v1404_v45  ;;  %v1415_v6 = vadd.f32 %v7254_v12, %v8803_v60  ;;  %v1706_v17 = vpop.f32.mrf.mxu0 }
 0x14b   : > { %v1406_v21 = vpop.f32.mrf.mxu1 }
 0x14c   : > { %v9022_v47 = vadd.f32 %v7320_v57, %v1415_v6  ;;  %v1407_v59 = vadd.f32 %v1406_v21, %v8816_v8  ;;  %v7323_v9 = vpop.f32.mrf.mxu0  ;;  %3248 = vmatmul.mubr.bf16.gmra.mxu0 %v7954_v38  ;;  %v7960_v8 = vld [vmem:[%s11176_s2 + $0x208] ss:$16 sps:$4 sm:$0xff]  }
 0x14d   : > { %v7257_v24 = vpop.f32.mrf.mxu1  ;;  %2959 = vmatmul.mubr.bf16.gmra.mxu1 %v7949_v53  ;;  %6641 = vmatprep.mubr.msk.bf16.mxu0 %vm2705_vm3, %v7958_v48  ;;  %v7955_v53 = vld [vmem:[%s11176_s2 + $0x200] ss:$16 sps:$4 sm:$0xff]  }
 0x14e   : > { %v9026_v29 = vadd.f32 %v1706_v17, %v1407_v59  ;;  %v1428_v60 = vadd.f32 %v7257_v24, %v8823_v26  ;;  %v1719_v33 = vpop.f32.mrf.mxu0  ;;  %2966 = vmatprep.mubr.bf16.mxu1 %v7957_v51  ;;  %v7964_v26 = vld [vmem:[%s11176_s2 + $0x22c] ss:$16 sps:$4 sm:$0xff]  }
 0x14f   : > { %v1419_v45 = vpop.f32.mrf.mxu1 }
 0x150   : > { %v9029_v12 = vadd.f32 %v7323_v9, %v1428_v60  ;;  %v1420_v57 = vadd.f32 %v1419_v45, %v8828_v36  ;;  %v7324_v6 = vpop.f32.mrf.mxu0  ;;  %v7963_v36 = vld [vmem:[%s11176_s2 + $0x224] ss:$16 sps:$4 sm:$0xff]   ;;  %v9053_v60 = vld [vmem:[%s11178_s4 + $0x1c] sm:$0xf] }
 0x151   : > { %v7258_v38 = vpop.f32.mrf.mxu1  ;;  %7761 = vmatprep.subr.msk.bf16.mxu1 %vm971_vm0, %v9053_v60 }
 0x152   : > { %v9041_v48 = vadd.f32 %v1719_v33, %v1420_v57  ;;  %v1431_v17 = vadd.f32 %v7258_v38, %v8832_v63  ;;  %v1722_v51 = vpop.f32.mrf.mxu0 }
 0x153   : > { %v1422_v21 = vpop.f32.mrf.mxu1 }
 0x154   : > { %v9047_v59 = vadd.f32 %v7324_v6, %v1431_v17  ;;  %v1423_v9 = vadd.f32 %v1422_v21, %v8845_v10  ;;  %v7327_v24 = vpop.f32.mrf.mxu0  ;;  %3256 = vmatmul.mubr.bf16.gmra.mxu0 %v7960_v8  ;;  %v7961_v17 = vld [vmem:[%s11176_s2 + $0x220] ss:$16 sps:$4 sm:$0xff]  }
 0x155   : > { %v7261_v33 = vpop.f32.mrf.mxu1  ;;  %2967 = vmatmul.mubr.bf16.gmra.mxu1 %v7955_v53  ;;  %6642 = vmatprep.mubr.msk.bf16.mxu0 %vm2705_vm3, %v7964_v26  ;;  %v7966_v53 = vld [vmem:[%s11176_s2 + $0x228] ss:$16 sps:$4 sm:$0xff]   ;;  %v9070_v26 = vld [vmem:[%s11178_s4 + $0x14] sm:$0xf] }
 0x156   : > { %v9056_v63 = vadd.f32 %v1722_v51, %v1423_v9  ;;  %v1444_v45 = vadd.f32 %v7261_v33, %v8622_v20  ;;  %v1735_v57 = vpop.f32.mrf.mxu0  ;;  %2974 = vmatprep.mubr.bf16.mxu1 %v7963_v36  ;;  %v7970_v51 = vld [vmem:[%s11176_s2 + $0x24c] ss:$16 sps:$4 sm:$0xff]   ;;  %7762 = vmatprep.subr.msk.bf16.mxu0 %vm971_vm0, %v9070_v26  ;;  %v7969_v9 = vld [vmem:[%s11176_s2 + $0x244] ss:$16 sps:$4 sm:$0xff]  }
 0x157   : > { %v1435_v10 = vpop.f32.mrf.mxu1 }
 0x158   : > { %v9061_v6 = vadd.f32 %v7327_v24, %v1444_v45  ;;  %v1436_v8 = vadd.f32 %v1435_v10, %v8626_v22  ;;  %v7328_v38 = vpop.f32.mrf.mxu0 }
 0x159   : > { %v7262_v20 = vpop.f32.mrf.mxu1 }
 0x15a   : > { %11201 = vst [vmem:[#allocation18_spill] sm:$0xff] %v9061_v6  ;;  %v9080_v22 = vadd.f32 %v1735_v57, %v1436_v8  ;;  %v1447_v36 = vadd.f32 %v7262_v20, %v8634_v25  ;;  %v1738_v21 = vpop.f32.mrf.mxu0 }
 0x15b   : > { %v1438_v24 = vpop.f32.mrf.mxu1 }
 0x15c   : > { %11202 = vst [vmem:[#allocation19_spill] sm:$0xff] %v9080_v22  ;;  %v9086_v33 = vadd.f32 %v7328_v38, %v1447_v36  ;;  %v1439_v45 = vadd.f32 %v1438_v24, %v8647_v30  ;;  %v7331_v10 = vpop.f32.mrf.mxu0  ;;  %3264 = vmatmul.mubr.bf16.gmra.mxu0 %v7966_v53  ;;  %v7972_v30 = vld [vmem:[%s11176_s2 + $0x248] ss:$16 sps:$4 sm:$0xff]  }
 0x15d   : > { %v7265_v6 = vpop.f32.mrf.mxu1  ;;  %2975 = vmatmul.mubr.bf16.gmra.mxu1 %v7961_v17  ;;  %6643 = vmatprep.mubr.msk.bf16.mxu0 %vm2705_vm3, %v7970_v51  ;;  %v7967_v17 = vld [vmem:[%s11176_s2 + $0x240] ss:$16 sps:$4 sm:$0xff]  }
 0x15e   : > { %v9090_v57 = vadd.f32 %v1738_v21, %v1439_v45  ;;  %v1460_v25 = vadd.f32 %v7265_v6, %v8651_v32  ;;  %v1751_v8 = vpop.f32.mrf.mxu0  ;;  %2982 = vmatprep.mubr.bf16.mxu1 %v7969_v9  ;;  %v7976_v32 = vld [vmem:[%s11176_s2 + $0x26c] ss:$16 sps:$4 sm:$0xff]  }
 0x15f   : > { %v1451_v20 = vpop.f32.mrf.mxu1 }
 0x160   : > { %v9093_v22 = vadd.f32 %v7331_v10, %v1460_v25  ;;  %v1452_v38 = vadd.f32 %v1451_v20, %v8656_v34  ;;  %v7332_v36 = vpop.f32.mrf.mxu0  ;;  %v7975_v34 = vld [vmem:[%s11176_s2 + $0x264] ss:$16 sps:$4 sm:$0xff]  }
 0x161   : > { %v7266_v53 = vpop.f32.mrf.mxu1 }
 0x162   : > { %v9105_v6 = vadd.f32 %v1751_v8, %v1452_v38  ;;  %v1463_v51 = vadd.f32 %v7266_v53, %v8663_v37  ;;  %v1754_v21 = vpop.f32.mrf.mxu0 }
 0x163   : > { %v1454_v9 = vpop.f32.mrf.mxu1 }
 0x164   : > { %v9111_v24 = vadd.f32 %v7332_v36, %v1463_v51  ;;  %v1455_v45 = vadd.f32 %v1454_v9, %v8676_v42  ;;  %v7335_v10 = vpop.f32.mrf.mxu0  ;;  %3272 = vmatmul.mubr.bf16.gmra.mxu0 %v7972_v30  ;;  %v7978_v42 = vld [vmem:[%s11176_s2 + $0x268] ss:$16 sps:$4 sm:$0xff]  }
 0x165   : > { %v7269_v25 = vpop.f32.mrf.mxu1  ;;  %2983 = vmatmul.mubr.bf16.gmra.mxu1 %v7967_v17  ;;  %6644 = vmatprep.mubr.msk.bf16.mxu0 %vm2705_vm3, %v7976_v32  ;;  %v7973_v17 = vld [vmem:[%s11176_s2 + $0x260] ss:$16 sps:$4 sm:$0xff]  }
 0x166   : > { %v9115_v8 = vadd.f32 %v1754_v21, %v1455_v45  ;;  %v1476_v37 = vadd.f32 %v7269_v25, %v8680_v44  ;;  %v1767_v20 = vpop.f32.mrf.mxu0  ;;  %2990 = vmatprep.mubr.bf16.mxu1 %v7975_v34  ;;  %v7982_v44 = vld [vmem:[%s11176_s2 + $0x28c] ss:$16 sps:$4 sm:$0xff]  }
 0x167   : > { %v1467_v38 = vpop.f32.mrf.mxu1 }
 0x168   : > { %v9118_v53 = vadd.f32 %v7335_v10, %v1476_v37  ;;  %v1468_v36 = vadd.f32 %v1467_v38, %v8685_v46  ;;  %v7336_v51 = vpop.f32.mrf.mxu0  ;;  %v7981_v46 = vld [vmem:[%s11176_s2 + $0x284] ss:$16 sps:$4 sm:$0xff]  }
 0x169   : > { %v7270_v30 = vpop.f32.mrf.mxu1 }
 0x16a   : > { %v9130_v32 = vadd.f32 %v1767_v20, %v1468_v36  ;;  %v1479_v21 = vadd.f32 %v7270_v30, %v8692_v49  ;;  %v1770_v34 = vpop.f32.mrf.mxu0 }
 0x16b   : > { %v1470_v9 = vpop.f32.mrf.mxu1 }
 0x16c   : > { %v9136_v45 = vadd.f32 %v7336_v51, %v1479_v21  ;;  %v1471_v10 = vadd.f32 %v1470_v9, %v8705_v54  ;;  %v7339_v25 = vpop.f32.mrf.mxu0  ;;  %3280 = vmatmul.mubr.bf16.gmra.mxu0 %v7978_v42  ;;  %v7984_v54 = vld [vmem:[%s11176_s2 + $0x288] ss:$16 sps:$4 sm:$0xff]  }
 0x16d   : > { %v7273_v37 = vpop.f32.mrf.mxu1  ;;  %2991 = vmatmul.mubr.bf16.gmra.mxu1 %v7973_v17  ;;  %6645 = vmatprep.mubr.msk.bf16.mxu0 %vm2705_vm3, %v7982_v44  ;;  %v7979_v17 = vld [vmem:[%s11176_s2 + $0x280] ss:$16 sps:$4 sm:$0xff]  }
 0x16e   : > { %v9140_v20 = vadd.f32 %v1770_v34, %v1471_v10  ;;  %v1492_v49 = vadd.f32 %v7273_v37, %v8709_v56  ;;  %v1783_v38 = vpop.f32.mrf.mxu0  ;;  %2998 = vmatprep.mubr.bf16.mxu1 %v7981_v46  ;;  %v7988_v56 = vld [vmem:[%s11176_s2 + $0x2ac] ss:$16 sps:$4 sm:$0xff]  }
 0x16f   : > { %v1483_v36 = vpop.f32.mrf.mxu1 }
 0x170   : > { %v9143_v30 = vadd.f32 %v7339_v25, %v1492_v49  ;;  %v1484_v51 = vadd.f32 %v1483_v36, %v8714_v58  ;;  %v7340_v21 = vpop.f32.mrf.mxu0  ;;  %v7987_v58 = vld [vmem:[%s11176_s2 + $0x2a4] ss:$16 sps:$4 sm:$0xff]  }
 0x171   : > { %v7274_v42 = vpop.f32.mrf.mxu1 }
 0x172   : > { %11203 = vst [vmem:[#allocation20_spill] sm:$0xff] %v9143_v30  ;;  %v9155_v44 = vadd.f32 %v1783_v38, %v1484_v51  ;;  %v1495_v34 = vadd.f32 %v7274_v42, %v8721_v61  ;;  %v1786_v46 = vpop.f32.mrf.mxu0  ;;  %v11213_v30 = vld [vmem:[#allocation5_spill] sm:$0xff] }
 0x173   : > { %v1486_v9 = vpop.f32.mrf.mxu1 }
 0x174   : > { %v9161_v10 = vadd.f32 %v7340_v21, %v1495_v34  ;;  %v1487_v25 = vadd.f32 %v1486_v9, %v8734_v2  ;;  %v7343_v37 = vpop.f32.mrf.mxu0  ;;  %3288 = vmatmul.mubr.bf16.gmra.mxu0 %v7984_v54  ;;  %v7990_v2 = vld [vmem:[%s11176_s2 + $0x2a8] ss:$16 sps:$4 sm:$0xff]  }
 0x175   : > { %v7277_v49 = vpop.f32.mrf.mxu1  ;;  %2999 = vmatmul.mubr.bf16.gmra.mxu1 %v7979_v17  ;;  %6646 = vmatprep.mubr.msk.bf16.mxu0 %vm2705_vm3, %v7988_v56  ;;  %v7985_v17 = vld [vmem:[%s11176_s2 + $0x2a0] ss:$16 sps:$4 sm:$0xff]  }
 0x176   : > { %11204 = vst [vmem:[#allocation21_spill] sm:$0xff] %v9161_v10  ;;  %v9165_v38 = vadd.f32 %v1786_v46, %v1487_v25  ;;  %v1508_v61 = vadd.f32 %v7277_v49, %v8738_v4  ;;  %v1799_v36 = vpop.f32.mrf.mxu0  ;;  %3006 = vmatprep.mubr.bf16.mxu1 %v7987_v58  ;;  %v7994_v4 = vld [vmem:[%s11176_s2 + $0x2cc] ss:$16 sps:$4 sm:$0xff]   ;;  %v11209_v49 = vld [vmem:[#allocation3_spill] sm:$0xff] }
 0x177   : > { %v1499_v51 = vpop.f32.mrf.mxu1  ;;  %v11207_v46 = vld [vmem:[#allocation2_spill] sm:$0xff] }
 0x178   : > { %v9168_v42 = vadd.f32 %v7343_v37, %v1508_v61  ;;  %v1500_v21 = vadd.f32 %v1499_v51, %v8743_v7  ;;  %v7344_v34 = vpop.f32.mrf.mxu0  ;;  %v7993_v7 = vld [vmem:[%s11176_s2 + $0x2c4] ss:$16 sps:$4 sm:$0xff]  }
 0x179   : > { %v7278_v54 = vpop.f32.mrf.mxu1 }
 0x17a   : > { %11205 = vst [vmem:[#allocation22_spill] sm:$0xff] %v9168_v42  ;;  %v9180_v56 = vadd.f32 %v1799_v36, %v1500_v21  ;;  %v1511_v58 = vadd.f32 %v7278_v54, %v11207_v46  ;;  %v1802_v9 = vpop.f32.mrf.mxu0  ;;  %v11211_v21 = vld [vmem:[#allocation4_spill] sm:$0xff] }
 0x17b   : > { %v1502_v25 = vpop.f32.mrf.mxu1 }
 0x17c   : > { %11206 = vst [vmem:[#allocation23_spill] sm:$0xff] %v9180_v56  ;;  %v9186_v37 = vadd.f32 %v7344_v34, %v1511_v58  ;;  %v1503_v61 = vadd.f32 %v1502_v25, %v11209_v49  ;;  %v7347_v51 = vpop.f32.mrf.mxu0  ;;  %3296 = vmatmul.mubr.bf16.gmra.mxu0 %v7990_v2  ;;  %v7996_v2 = vld [vmem:[%s11176_s2 + $0x2c8] ss:$16 sps:$4 sm:$0xff]  }
 0x17d   : > { %v7281_v42 = vpop.f32.mrf.mxu1  ;;  %3007 = vmatmul.mubr.bf16.gmra.mxu1 %v7985_v17  ;;  %6647 = vmatprep.mubr.msk.bf16.mxu0 %vm2705_vm3, %v7994_v4  ;;  %v7991_v17 = vld [vmem:[%s11176_s2 + $0x2c0] ss:$16 sps:$4 sm:$0xff]  }
 0x17e   : > { %11208 = vst [vmem:[#allocation2_spill] sm:$0xff] %v9186_v37  ;;  %v9190_v36 = vadd.f32 %v1802_v9, %v1503_v61  ;;  %v1524_v54 = vadd.f32 %v7281_v42, %v11211_v21  ;;  %v1815_v46 = vpop.f32.mrf.mxu0  ;;  %3014 = vmatprep.mubr.bf16.mxu1 %v7993_v7  ;;  %v8000_v42 = vld [vmem:[%s11176_s2 + $0x2ec] ss:$16 sps:$4 sm:$0xff]  }
 0x17f   : > { %v1515_v56 = vpop.f32.mrf.mxu1  ;;  %v11215_v9 = vld [vmem:[#allocation6_spill] sm:$0xff] }
 0x180   : > { %11210 = vst [vmem:[#allocation3_spill] sm:$0xff] %v9190_v36  ;;  %v9193_v10 = vadd.f32 %v7347_v51, %v1524_v54  ;;  %v1516_v34 = vadd.f32 %v1515_v56, %v11213_v30  ;;  %v7348_v58 = vpop.f32.mrf.mxu0  ;;  %v7999_v30 = vld [vmem:[%s11176_s2 + $0x2e4] ss:$16 sps:$4 sm:$0xff]  }
 0x181   : > { %v7282_v25 = vpop.f32.mrf.mxu1  ;;  %v11217_v51 = vld [vmem:[#allocation7_spill] sm:$0xff]  ;;  %v11221_v36 = vld [vmem:[#allocation9_spill] sm:$0xff] }
 0x182   : > { %11212 = vst [vmem:[#allocation4_spill] sm:$0xff] %v9193_v10  ;;  %v9205_v4 = vadd.f32 %v1815_v46, %v1516_v34  ;;  %v1527_v7 = vadd.f32 %v7282_v25, %v11215_v9  ;;  %v1818_v49 = vpop.f32.mrf.mxu0  ;;  %v11219_v34 = vld [vmem:[#allocation8_spill] sm:$0xff] }
 0x183   : > { %v1518_v56 = vpop.f32.mrf.mxu1 }
 0x184   : > { %11214 = vst [vmem:[#allocation5_spill] sm:$0xff] %v9205_v4  ;;  %v9211_v61 = vadd.f32 %v7348_v58, %v1527_v7  ;;  %v1519_v21 = vadd.f32 %v1518_v56, %v11217_v51  ;;  %v7351_v54 = vpop.f32.mrf.mxu0  ;;  %3304 = vmatmul.mubr.bf16.gmra.mxu0 %v7996_v2  ;;  %v8002_v2 = vld [vmem:[%s11176_s2 + $0x2e8] ss:$16 sps:$4 sm:$0xff]  }
 0x185   : > { %v7285_v10 = vpop.f32.mrf.mxu1  ;;  %3015 = vmatmul.mubr.bf16.gmra.mxu1 %v7991_v17  ;;  %6648 = vmatprep.mubr.msk.bf16.mxu0 %vm2705_vm3, %v8000_v42  ;;  %v7997_v17 = vld [vmem:[%s11176_s2 + $0x2e0] ss:$16 sps:$4 sm:$0xff]  }
 0x186   : > { %11216 = vst [vmem:[#allocation6_spill] sm:$0xff] %v9211_v61  ;;  %v9215_v46 = vadd.f32 %v1818_v49, %v1519_v21  ;;  %v1540_v25 = vadd.f32 %v7285_v10, %v11219_v34  ;;  %v1831_v9 = vpop.f32.mrf.mxu0  ;;  %3022 = vmatprep.mubr.bf16.mxu1 %v7999_v30  ;;  %v8006_v10 = vld [vmem:[%s11176_s2 + $0x30c] ss:$16 sps:$4 sm:$0xff]  }
 0x187   : > { %v1531_v4 = vpop.f32.mrf.mxu1  ;;  %v11223_v49 = vld [vmem:[#allocation10_spill] sm:$0xff] }
 0x188   : > { %11218 = vst [vmem:[#allocation7_spill] sm:$0xff] %v9215_v46  ;;  %v9218_v37 = vadd.f32 %v7351_v54, %v1540_v25  ;;  %v1532_v58 = vadd.f32 %v1531_v4, %v11221_v36  ;;  %v7352_v7 = vpop.f32.mrf.mxu0  ;;  %v8005_v36 = vld [vmem:[%s11176_s2 + $0x304] ss:$16 sps:$4 sm:$0xff]  }
 0x189   : > { %v7286_v56 = vpop.f32.mrf.mxu1  ;;  %v11225_v54 = vld [vmem:[#allocation11_spill] sm:$0xff]  ;;  %v11229_v46 = vld [vmem:[#allocation13_spill] sm:$0xff] }
 0x18a   : > { %11220 = vst [vmem:[#allocation8_spill] sm:$0xff] %v9218_v37  ;;  %v9230_v42 = vadd.f32 %v1831_v9, %v1532_v58  ;;  %v1543_v30 = vadd.f32 %v7286_v56, %v11223_v49  ;;  %v1834_v51 = vpop.f32.mrf.mxu0  ;;  %v11227_v58 = vld [vmem:[#allocation12_spill] sm:$0xff] }
 0x18b   : > { %v1534_v4 = vpop.f32.mrf.mxu1 }
 0x18c   : > { %11222 = vst [vmem:[#allocation9_spill] sm:$0xff] %v9230_v42  ;;  %v9236_v21 = vadd.f32 %v7352_v7, %v1543_v30  ;;  %v1535_v34 = vadd.f32 %v1534_v4, %v11225_v54  ;;  %v7355_v25 = vpop.f32.mrf.mxu0  ;;  %3312 = vmatmul.mubr.bf16.gmra.mxu0 %v8002_v2  ;;  %v8008_v2 = vld [vmem:[%s11176_s2 + $0x308] ss:$16 sps:$4 sm:$0xff]  }
 0x18d   : > { %v7289_v37 = vpop.f32.mrf.mxu1  ;;  %3023 = vmatmul.mubr.bf16.gmra.mxu1 %v7997_v17  ;;  %6649 = vmatprep.mubr.msk.bf16.mxu0 %vm2705_vm3, %v8006_v10  ;;  %v8003_v17 = vld [vmem:[%s11176_s2 + $0x300] ss:$16 sps:$4 sm:$0xff]  }
 0x18e   : > { %11224 = vst [vmem:[#allocation10_spill] sm:$0xff] %v9236_v21  ;;  %v9240_v9 = vadd.f32 %v1834_v51, %v1535_v34  ;;  %v1556_v56 = vadd.f32 %v7289_v37, %v11227_v58  ;;  %v1847_v49 = vpop.f32.mrf.mxu0  ;;  %3030 = vmatprep.mubr.bf16.mxu1 %v8005_v36  ;;  %v8012_v37 = vld [vmem:[%s11176_s2 + $0x32c] ss:$16 sps:$4 sm:$0xff]  }
 0x18f   : > { %v1547_v42 = vpop.f32.mrf.mxu1  ;;  %v11231_v51 = vld [vmem:[#allocation14_spill] sm:$0xff] }
 0x190   : > { %11226 = vst [vmem:[#allocation11_spill] sm:$0xff] %v9240_v9  ;;  %v9243_v61 = vadd.f32 %v7355_v25, %v1556_v56  ;;  %v1548_v7 = vadd.f32 %v1547_v42, %v11229_v46  ;;  %v7356_v30 = vpop.f32.mrf.mxu0  ;;  %v8011_v46 = vld [vmem:[%s11176_s2 + $0x324] ss:$16 sps:$4 sm:$0xff]  }
 0x191   : > { %v7290_v4 = vpop.f32.mrf.mxu1  ;;  %v11232_v25 = vld [vmem:[#allocation15_spill] sm:$0xff] }
 0x192   : > { %11228 = vst [vmem:[#allocation12_spill] sm:$0xff] %v9243_v61  ;;  %v9255_v10 = vadd.f32 %v1847_v49, %v1548_v7  ;;  %v1559_v36 = vadd.f32 %v7290_v4, %v11231_v51  ;;  %v1850_v54 = vpop.f32.mrf.mxu0  ;;  %v11233_v7 = vld [vmem:[#allocation17_spill] sm:$0xff] }
 0x193   : > { %v1550_v42 = vpop.f32.mrf.mxu1 }
 0x194   : > { %11230 = vst [vmem:[#allocation13_spill] sm:$0xff] %v9255_v10  ;;  %v9261_v34 = vadd.f32 %v7356_v30, %v1559_v36  ;;  %v1551_v58 = vadd.f32 %v1550_v42, %v11232_v25  ;;  %v3129_v56 = vpop.f32.mrf.mxu0  ;;  %3320 = vmatmul.mubr.bf16.gmra.mxu0 %v8008_v2  ;;  %v8014_v30 = vld [vmem:[%s11176_s2 + $0x328] ss:$16 sps:$4 sm:$0xff]   ;;  %v8009_v2 = vld [vmem:[%s11176_s2 + $0x320] ss:$16 sps:$4 sm:$0xff]  }
 0x195   : > { %v2840_v61 = vpop.f32.mrf.mxu1  ;;  %3031 = vmatmul.mubr.bf16.gmra.mxu1 %v8003_v17  ;;  %6650 = vmatprep.mubr.msk.bf16.mxu0 %vm2705_vm3, %v8012_v37  ;;  %v8018_v17 = vld [vmem:[%s11176_s2 + $0x34c] ss:$16 sps:$4 sm:$0xff]  }
 0x196   : > { %v9265_v49 = vadd.f32 %v1850_v54, %v1551_v58  ;;  %v2841_v4 = vadd.f32 %v2840_v61, %v11233_v7  ;;  %v3131_v51 = vpop.f32.mrf.mxu0  ;;  %3038 = vmatprep.mubr.bf16.mxu1 %v8011_v46  ;;  %v11234_v58 = vld [vmem:[#allocation16_spill] sm:$0xff] }
 0x197   : > { %v2842_v10 = vpop.f32.mrf.mxu1 }
 0x198   : > { %v9268_v21 = vadd.f32 %v3129_v56, %v2841_v4  ;;  %v3132_v9 = vpop.f32.mrf.mxu0  ;;  %v8017_v10 = vld [vmem:[%s11176_s2 + $0x344] ss:$16 sps:$4 sm:$0xff]  }
 0x199   : > { %v2843_v36 = vpop.f32.mrf.mxu1 }
 0x19a   : > { %v2844_v61 = vadd.f32 %v2843_v36, %v8876_v16  ;;  %v3134_v37 = vpop.f32.mrf.mxu0  ;;  %v8020_v36 = vld [vmem:[%s11176_s2 + $0x348] ss:$16 sps:$4 sm:$0xff]  }
 0x19b   : > { %v2845_v54 = vpop.f32.mrf.mxu1  ;;  %v8023_v37 = vld [vmem:[%s11176_s2 + $0x364] ss:$16 sps:$4 sm:$0xff]  }
 0x19c   : > { %v9283_v46 = vadd.f32 %v3132_v9, %v2844_v61  ;;  %v3137_v42 = vpop.f32.mrf.mxu0  ;;  %3328 = vmatmul.mubr.bf16.gmra.mxu0 %v8014_v30  ;;  %v8015_v30 = vld [vmem:[%s11176_s2 + $0x340] ss:$16 sps:$4 sm:$0xff]  }
 0x19d   : > { %v2848_v25 = vpop.f32.mrf.mxu1  ;;  %3039 = vmatmul.mubr.bf16.gmra.mxu1 %v8009_v2  ;;  %6651 = vmatprep.mubr.msk.bf16.mxu0 %vm2705_vm3, %v8018_v17  ;;  %v8024_v2 = vld [vmem:[%s11176_s2 + $0x36c] ss:$16 sps:$4 sm:$0xff]  }
 0x19e   : > { %v2849_v56 = vadd.f32 %v2848_v25, %v11234_v58  ;;  %v3139_v7 = vpop.f32.mrf.mxu0  ;;  %3046 = vmatprep.mubr.bf16.mxu1 %v8017_v10 }
 0x19f   : > { %v2850_v4 = vpop.f32.mrf.mxu1 }
 0x1a0   : > { %v9287_v16 = vadd.f32 %v3137_v42, %v2849_v56  ;;  %v3140_v51 = vpop.f32.mrf.mxu0 }
 0x1a1   : > { %v2851_v9 = vpop.f32.mrf.mxu1 }
 0x1a2   : > { %v2852_v17 = vadd.f32 %v2851_v9, %v8872_v62  ;;  %v3142_v61 = vpop.f32.mrf.mxu0  ;;  %v8026_v9 = vld [vmem:[%s11176_s2 + $0x368] ss:$16 sps:$4 sm:$0xff]  }
 0x1a3   : > { %v2853_v10 = vpop.f32.mrf.mxu1 }
 0x1a4   : > { %v9302_v54 = vadd.f32 %v3140_v51, %v2852_v17  ;;  %v3145_v42 = vpop.f32.mrf.mxu0  ;;  %3336 = vmatmul.mubr.bf16.gmra.mxu0 %v8020_v36  ;;  %v8021_v36 = vld [vmem:[%s11176_s2 + $0x360] ss:$16 sps:$4 sm:$0xff]   ;;  %v8029_v17 = vld [vmem:[%s11176_s2 + $0x384] ss:$16 sps:$4 sm:$0xff]  }
 0x1a5   : > { %v2856_v25 = vpop.f32.mrf.mxu1  ;;  %3047 = vmatmul.mubr.bf16.gmra.mxu1 %v8015_v30  ;;  %6652 = vmatprep.mubr.msk.bf16.mxu0 %vm2705_vm3, %v8024_v2  ;;  %v8030_v30 = vld [vmem:[%s11176_s2 + $0x38c] ss:$16 sps:$4 sm:$0xff]  }
 0x1a6   : > { %v2857_v58 = vadd.f32 %v2856_v25, %v8891_v18  ;;  %v3147_v56 = vpop.f32.mrf.mxu0  ;;  %3054 = vmatprep.mubr.bf16.mxu1 %v8023_v37 }
 0x1a7   : > { %v2858_v7 = vpop.f32.mrf.mxu1 }
 0x1a8   : > { %v9306_v62 = vadd.f32 %v3145_v42, %v2857_v58  ;;  %v3148_v4 = vpop.f32.mrf.mxu0 }
 0x1a9   : > { %v2859_v51 = vpop.f32.mrf.mxu1 }
 0x1aa   : > { %v2860_v18 = vadd.f32 %v2859_v51, %v8901_v5  ;;  %v3150_v2 = vpop.f32.mrf.mxu0  ;;  %v8032_v51 = vld [vmem:[%s11176_s2 + $0x388] ss:$16 sps:$4 sm:$0xff]  }
 0x1ab   : > { %v2861_v61 = vpop.f32.mrf.mxu1 }
 0x1ac   : > { %v9321_v37 = vadd.f32 %v3148_v4, %v2860_v18  ;;  %v3153_v10 = vpop.f32.mrf.mxu0  ;;  %3344 = vmatmul.mubr.bf16.gmra.mxu0 %v8026_v9  ;;  %v8027_v9 = vld [vmem:[%s11176_s2 + $0x380] ss:$16 sps:$4 sm:$0xff]   ;;  %v8035_v18 = vld [vmem:[%s11176_s2 + $0x3a4] ss:$16 sps:$4 sm:$0xff]  }
 0x1ad   : > { %v2864_v42 = vpop.f32.mrf.mxu1  ;;  %3055 = vmatmul.mubr.bf16.gmra.mxu1 %v8021_v36  ;;  %6653 = vmatprep.mubr.msk.bf16.mxu0 %vm2705_vm3, %v8030_v30  ;;  %v8036_v36 = vld [vmem:[%s11176_s2 + $0x3ac] ss:$16 sps:$4 sm:$0xff]  }
 0x1ae   : > { %v2865_v25 = vadd.f32 %v2864_v42, %v8879_v50  ;;  %v3155_v58 = vpop.f32.mrf.mxu0  ;;  %3062 = vmatprep.mubr.bf16.mxu1 %v8029_v17 }
 0x1af   : > { %v2866_v56 = vpop.f32.mrf.mxu1 }
 0x1b0   : > { %v9325_v5 = vadd.f32 %v3153_v10, %v2865_v25  ;;  %v3156_v7 = vpop.f32.mrf.mxu0 }
 0x1b1   : > { %v2867_v4 = vpop.f32.mrf.mxu1 }
 0x1b2   : > { %v2868_v50 = vadd.f32 %v2867_v4, %v8897_v27  ;;  %v3158_v30 = vpop.f32.mrf.mxu0  ;;  %v8038_v4 = vld [vmem:[%s11176_s2 + $0x3a8] ss:$16 sps:$4 sm:$0xff]  }
 0x1b3   : > { %v2869_v2 = vpop.f32.mrf.mxu1 }
 0x1b4   : > { %v9340_v17 = vadd.f32 %v3156_v7, %v2868_v50  ;;  %v3161_v61 = vpop.f32.mrf.mxu0  ;;  %3352 = vmatmul.mubr.bf16.gmra.mxu0 %v8032_v51  ;;  %v8033_v51 = vld [vmem:[%s11176_s2 + $0x3a0] ss:$16 sps:$4 sm:$0xff]   ;;  %v8041_v50 = vld [vmem:[%s11176_s2 + $0x3c4] ss:$16 sps:$4 sm:$0xff]  }
 0x1b5   : > { %v2872_v10 = vpop.f32.mrf.mxu1  ;;  %3063 = vmatmul.mubr.bf16.gmra.mxu1 %v8027_v9  ;;  %6654 = vmatprep.mubr.msk.bf16.mxu0 %vm2705_vm3, %v8036_v36  ;;  %v8042_v9 = vld [vmem:[%s11176_s2 + $0x3cc] ss:$16 sps:$4 sm:$0xff]  }
 0x1b6   : > { %v2873_v42 = vadd.f32 %v2872_v10, %v8916_v31  ;;  %v3163_v25 = vpop.f32.mrf.mxu0  ;;  %3070 = vmatprep.mubr.bf16.mxu1 %v8035_v18 }
 0x1b7   : > { %v2874_v58 = vpop.f32.mrf.mxu1 }
 0x1b8   : > { %v9344_v27 = vadd.f32 %v3161_v61, %v2873_v42  ;;  %v3164_v56 = vpop.f32.mrf.mxu0 }
 0x1b9   : > { %v2875_v7 = vpop.f32.mrf.mxu1 }
 0x1ba   : > { %v2876_v31 = vadd.f32 %v2875_v7, %v8926_v41  ;;  %v3166_v36 = vpop.f32.mrf.mxu0  ;;  %v8044_v7 = vld [vmem:[%s11176_s2 + $0x3c8] ss:$16 sps:$4 sm:$0xff]  }
 0x1bb   : > { %v2877_v30 = vpop.f32.mrf.mxu1 }
 0x1bc   : > { %v9359_v18 = vadd.f32 %v3164_v56, %v2876_v31  ;;  %v3169_v2 = vpop.f32.mrf.mxu0  ;;  %3360 = vmatmul.mubr.bf16.gmra.mxu0 %v8038_v4  ;;  %v8039_v4 = vld [vmem:[%s11176_s2 + $0x3c0] ss:$16 sps:$4 sm:$0xff]   ;;  %v8047_v31 = vld [vmem:[%s11176_s2 + $0x3e4] ss:$16 sps:$4 sm:$0xff]  }
 0x1bd   : > { %v2880_v61 = vpop.f32.mrf.mxu1  ;;  %3071 = vmatmul.mubr.bf16.gmra.mxu1 %v8033_v51  ;;  %6655 = vmatprep.mubr.msk.bf16.mxu0 %vm2705_vm3, %v8042_v9  ;;  %v8048_v51 = vld [vmem:[%s11176_s2 + $0x3ec] ss:$16 sps:$4 sm:$0xff]  }
 0x1be   : > { %11235 = vst [vmem:[#allocation14_spill] sm:$0xff] %v9359_v18  ;;  %v2881_v10 = vadd.f32 %v2880_v61, %v8904_v39  ;;  %v3171_v42 = vpop.f32.mrf.mxu0  ;;  %3078 = vmatprep.mubr.bf16.mxu1 %v8041_v50 }
 0x1bf   : > { %v2882_v25 = vpop.f32.mrf.mxu1 }
 0x1c0   : > { %v9363_v41 = vadd.f32 %v3169_v2, %v2881_v10  ;;  %v3172_v58 = vpop.f32.mrf.mxu0 }
 0x1c1   : > { %v2883_v56 = vpop.f32.mrf.mxu1 }
 0x1c2   : > { %v2884_v39 = vadd.f32 %v2883_v56, %v8922_v1  ;;  %v3174_v9 = vpop.f32.mrf.mxu0 }
 0x1c3   : > { %v2885_v36 = vpop.f32.mrf.mxu1 }
 0x1c4   : > { %v9378_v50 = vadd.f32 %v3172_v58, %v2884_v39  ;;  %v3177_v30 = vpop.f32.mrf.mxu0  ;;  %3368 = vmatmul.mubr.bf16.gmra.mxu0 %v8044_v7  ;;  %v8050_v58 = vld [vmem:[%s11176_s2 + $0x3e8] ss:$16 sps:$4 sm:$0xff]   ;;  %v8045_v7 = vld [vmem:[%s11176_s2 + $0x3e0] ss:$16 sps:$4 sm:$0xff]  }
 0x1c5   : > { %v2888_v2 = vpop.f32.mrf.mxu1  ;;  %3079 = vmatmul.mubr.bf16.gmra.mxu1 %v8039_v4  ;;  %6656 = vmatprep.mubr.msk.bf16.mxu0 %vm2705_vm3, %v8048_v51  ;;  %v8051_v36 = vld [vmem:[%s8228_s14] sm:$0xff]  }
 0x1c6   : > { %11236 = vst [vmem:[#allocation15_spill] sm:$0xff] %v9378_v50  ;;  %v2889_v61 = vadd.f32 %v2888_v2, %v8941_v43  ;;  %v3179_v10 = vpop.f32.mrf.mxu0  ;;  %3086 = vmatprep.mubr.bf16.mxu1 %v8047_v31 }
 0x1c7   : > { %v2890_v1 = vpop.f32.mrf.mxu1 }
 0x1c8   : > { %v9382_v42 = vadd.f32 %v3177_v30, %v2889_v61  ;;  %v3180_v25 = vpop.f32.mrf.mxu0  ;;  %v9397_v61 = vld [vmem:[%s8228_s14 + $0x10] sm:$0xff]  }
 0x1c9   : > { %v2891_v56 = vpop.f32.mrf.mxu1 }
 0x1ca   : > { %11237 = vst [vmem:[#allocation17_spill] sm:$0xff] %v9382_v42  ;;  %v2892_v4 = vadd.f32 %v2891_v56, %v8951_v14  ;;  %v3182_v43 = vpop.f32.mrf.mxu0 }
 0x1cb   : > { %v2893_v51 = vpop.f32.mrf.mxu1 }
 0x1cc   : > { %v9391_v39 = vadd.f32 %v3180_v25, %v2892_v4  ;;  %v3185_v9 = vpop.f32.mrf.mxu0  ;;  %3376 = vmatmul.mubr.bf16.gmra.mxu0 %v8050_v58  ;;  %v3975_v4 = vsel %vm971_vm0, %v9053_v60, 0 }
 0x1cd   : > { %v2896_v31 = vpop.f32.mrf.mxu1  ;;  %3087 = vmatmul.mubr.bf16.gmra.mxu1 %v8045_v7  ;;  %7425 = vmatprep.mubr.msk.bf16.mxu0 %vm874_vm1, %v8051_v36  ;;  %v4657_v7 = vsel %vm971_vm0, %v9070_v26, 0  ;;  %v9418_v36 = vld [vmem:[%s8228_s14 + $0x18] sm:$0xff]  }
 0x1ce   : > { %11238 = vst [vmem:[#allocation16_spill] sm:$0xff] %v9391_v39  ;;  %v2897_v30 = vadd.f32 %v2896_v31, %v8929_v28  ;;  %v3187_v2 = vpop.f32.mrf.mxu0  ;;  %7359 = vmatprep.mubr.msk.bf16.mxu1 %vm874_vm1, %v9397_v61  ;;  %v8053_v31 = vld [vmem:[%s8228_s14 + $0x8] sm:$0xff]  }
 0x1cf   : > { %v2898_v14 = vpop.f32.mrf.mxu1 }
 0x1d0   : > { %v9401_v10 = vadd.f32 %v3185_v9, %v2897_v30  ;;  %v3188_v1 = vpop.f32.mrf.mxu0  ;;  %v9415_v9 = vld [vmem:[%s11178_s4 + $0x8] sm:$0xf]  ;;  %v9424_v30 = vld [vmem:[%s8228_s14 + $0x20] sm:$0xff]  }
 0x1d1   : > { %v2899_v25 = vpop.f32.mrf.mxu1 }
 0x1d2   : > { %11239 = vst [vmem:[#allocation24_spill] sm:$0xff] %v9401_v10  ;;  %v2900_v58 = vadd.f32 %v2899_v25, %v8947_v11  ;;  %v3190_v56 = vpop.f32.mrf.mxu0 }
 0x1d3   : > { %v2901_v28 = vpop.f32.mrf.mxu1 }
 0x1d4   : > { %v9408_v43 = vadd.f32 %v3188_v1, %v2900_v58  ;;  %v3193_v51 = vpop.f32.mrf.mxu0  ;;  %7426 = vmatmul.mubr.msk.bf16.vlgmr.msra.gmra.mxu0 %vm874_vm1, %v8053_v31  ;;  %v9447_v31 = vld [vmem:[%s8228_s14 + $0x28] sm:$0xff]  }
 0x1d5   : > { %v2904_v11 = vpop.f32.mrf.mxu1  ;;  %7360 = vmatmul.mubr.msk.bf16.vlgmr.msra.gmra.mxu1 %vm874_vm1, %v9418_v36  ;;  %7556 = vmatpush3.bf16.msra.mxu0 %v4657_v7 }
 0x1d6   : > { %11240 = vst [vmem:[#allocation25_spill] sm:$0xff] %v9408_v43  ;;  %v2905_v60 = vadd.f32 %v2904_v11, %v8966_v55  ;;  %7490 = vmatpush3.bf16.msra.mxu1 %v3975_v4  ;;  %v3195_v26 = vpop.f32.mrf.mxu0  ;;  %7363 = vmatprep.mubr.msk.bf16.mxu1 %vm874_vm1, %v9424_v30  ;;  %v9437_v55 = vld [vmem:[%s11178_s4 + $0x20] sm:$0xf] }
 0x1d7   : > { %v2906_v2 = vpop.f32.mrf.mxu1  ;;  %7429 = vmatprep.mubr.msk.bf16.mxu0 %vm874_vm1, %v9397_v61  ;;  %7763 = vmatprep.subr.msk.bf16.mxu1 %vm971_vm0, %v9415_v9 }
 0x1d8   : > { %v9432_v14 = vadd.f32 %v3193_v51, %v2905_v60  ;;  %v3196_v1 = vpop.f32.mrf.mxu0  ;;  %7764 = vmatprep.subr.msk.bf16.mxu0 %vm971_vm0, %v9437_v55  ;;  %v9455_v60 = vld [vmem:[%s8228_s14 + $0x30] sm:$0xff]  }
 0x1d9   : > { %v2907_v25 = vpop.f32.mrf.mxu1 }
 0x1da   : > { %11241 = vst [vmem:[#allocation26_spill] sm:$0xff] %v9432_v14  ;;  %v2908_v58 = vadd.f32 %v2907_v25, %v8976_v13  ;;  %v3198_v56 = vpop.f32.mrf.mxu0 }
 0x1db   : > { %v2909_v7 = vpop.f32.mrf.mxu1 }
 0x1dc   : > { %v9442_v28 = vadd.f32 %v3196_v1, %v2908_v58  ;;  %v3201_v4 = vpop.f32.mrf.mxu0  ;;  %7430 = vmatmul.mubr.msk.bf16.gmra.mxu0 %vm874_vm1, %v9418_v36 }
 0x1dd   : > { %v2912_v51 = vpop.f32.mrf.mxu1  ;;  %7364 = vmatmul.mubr.msk.bf16.gmra.mxu1 %vm874_vm1, %v9447_v31  ;;  %7433 = vmatprep.mubr.msk.bf16.mxu0 %vm874_vm1, %v9424_v30 }
 0x1de   : > { %11242 = vst [vmem:[#allocation27_spill] sm:$0xff] %v9442_v28  ;;  %v2913_v13 = vadd.f32 %v2912_v51, %v8954_v40  ;;  %v3203_v11 = vpop.f32.mrf.mxu0  ;;  %7367 = vmatprep.mubr.msk.bf16.mxu1 %vm874_vm1, %v9455_v60  ;;  %v9467_v51 = vld [vmem:[%s8228_s14 + $0x38] sm:$0xff]  }
 0x1df   : > { %v2914_v26 = vpop.f32.mrf.mxu1 }
 0x1e0   : > { %v9459_v2 = vadd.f32 %v3201_v4, %v2913_v13  ;;  %v3204_v1 = vpop.f32.mrf.mxu0  ;;  %v9475_v13 = vld [vmem:[%s8228_s14 + $0x40] sm:$0xff]  }
 0x1e1   : > { %v2915_v25 = vpop.f32.mrf.mxu1 }
 0x1e2   : > { %11243 = vst [vmem:[#allocation28_spill] sm:$0xff] %v9459_v2  ;;  %v2916_v58 = vadd.f32 %v2915_v25, %v8972_v23  ;;  %v3206_v56 = vpop.f32.mrf.mxu0 }
 0x1e3   : > { %v2917_v7 = vpop.f32.mrf.mxu1 }
 0x1e4   : > { %v9462_v28 = vadd.f32 %v3204_v1, %v2916_v58  ;;  %v3209_v14 = vpop.f32.mrf.mxu0  ;;  %7434 = vmatmul.mubr.msk.bf16.gmra.mxu0 %vm874_vm1, %v9447_v31 }
 0x1e5   : > { %v2920_v40 = vpop.f32.mrf.mxu1  ;;  %7368 = vmatmul.mubr.msk.bf16.gmra.mxu1 %vm874_vm1, %v9467_v51  ;;  %7437 = vmatprep.mubr.msk.bf16.mxu0 %vm874_vm1, %v9455_v60 }
 0x1e6   : > { %11244 = vst [vmem:[#allocation29_spill] sm:$0xff] %v9462_v28  ;;  %v2921_v23 = vadd.f32 %v2920_v40, %v8991_v3  ;;  %v3211_v4 = vpop.f32.mrf.mxu0  ;;  %7371 = vmatprep.mubr.msk.bf16.mxu1 %vm874_vm1, %v9475_v13  ;;  %v9487_v40 = vld [vmem:[%s8228_s14 + $0x48] sm:$0xff]  }
 0x1e7   : > { %v2922_v11 = vpop.f32.mrf.mxu1 }
 0x1e8   : > { %v9479_v26 = vadd.f32 %v3209_v14, %v2921_v23  ;;  %v3212_v1 = vpop.f32.mrf.mxu0  ;;  %v9495_v23 = vld [vmem:[%s8228_s14 + $0x50] sm:$0xff]  }
 0x1e9   : > { %v2923_v25 = vpop.f32.mrf.mxu1 }
 0x1ea   : > { %11245 = vst [vmem:[#allocation30_spill] sm:$0xff] %v9479_v26  ;;  %v2924_v58 = vadd.f32 %v2923_v25, %v9001_v19  ;;  %v3214_v56 = vpop.f32.mrf.mxu0 }
 0x1eb   : > { %v2925_v7 = vpop.f32.mrf.mxu1 }
 0x1ec   : > { %v9482_v28 = vadd.f32 %v3212_v1, %v2924_v58  ;;  %v3217_v2 = vpop.f32.mrf.mxu0  ;;  %7438 = vmatmul.mubr.msk.bf16.gmra.mxu0 %vm874_vm1, %v9467_v51 }
 0x1ed   : > { %v2928_v3 = vpop.f32.mrf.mxu1  ;;  %7372 = vmatmul.mubr.msk.bf16.gmra.mxu1 %vm874_vm1, %v9487_v40  ;;  %7441 = vmatprep.mubr.msk.bf16.mxu0 %vm874_vm1, %v9475_v13 }
 0x1ee   : > { %11246 = vst [vmem:[#allocation31_spill] sm:$0xff] %v9482_v28  ;;  %v2929_v19 = vadd.f32 %v2928_v3, %v8979_v52  ;;  %v3219_v14 = vpop.f32.mrf.mxu0  ;;  %7375 = vmatprep.mubr.msk.bf16.mxu1 %vm874_vm1, %v9495_v23  ;;  %v9507_v3 = vld [vmem:[%s8228_s14 + $0x58] sm:$0xff]  }
 0x1ef   : > { %v2930_v4 = vpop.f32.mrf.mxu1 }
 0x1f0   : > { %v9499_v11 = vadd.f32 %v3217_v2, %v2929_v19  ;;  %v3220_v1 = vpop.f32.mrf.mxu0  ;;  %v9515_v19 = vld [vmem:[%s8228_s14 + $0x60] sm:$0xff]  }
 0x1f1   : > { %v2931_v25 = vpop.f32.mrf.mxu1 }
 0x1f2   : > { %11247 = vst [vmem:[#allocation32_spill] sm:$0xff] %v9499_v11  ;;  %v2932_v58 = vadd.f32 %v2931_v25, %v8997_v35  ;;  %v3222_v56 = vpop.f32.mrf.mxu0 }
 0x1f3   : > { %v2933_v7 = vpop.f32.mrf.mxu1 }
 0x1f4   : > { %v9502_v28 = vadd.f32 %v3220_v1, %v2932_v58  ;;  %v3225_v26 = vpop.f32.mrf.mxu0  ;;  %7442 = vmatmul.mubr.msk.bf16.gmra.mxu0 %vm874_vm1, %v9487_v40 }
 0x1f5   : > { %v2936_v52 = vpop.f32.mrf.mxu1  ;;  %7376 = vmatmul.mubr.msk.bf16.gmra.mxu1 %vm874_vm1, %v9507_v3  ;;  %7445 = vmatprep.mubr.msk.bf16.mxu0 %vm874_vm1, %v9495_v23 }
 0x1f6   : > { %11248 = vst [vmem:[#allocation33_spill] sm:$0xff] %v9502_v28  ;;  %v2937_v35 = vadd.f32 %v2936_v52, %v9016_v15  ;;  %v3227_v2 = vpop.f32.mrf.mxu0  ;;  %7379 = vmatprep.mubr.msk.bf16.mxu1 %vm874_vm1, %v9515_v19  ;;  %v9527_v52 = vld [vmem:[%s8228_s14 + $0x68] sm:$0xff]  }
 0x1f7   : > { %v2938_v14 = vpop.f32.mrf.mxu1 }
 0x1f8   : > { %v9519_v4 = vadd.f32 %v3225_v26, %v2937_v35  ;;  %v3228_v1 = vpop.f32.mrf.mxu0  ;;  %v9535_v35 = vld [vmem:[%s8228_s14 + $0x70] sm:$0xff]  }
 0x1f9   : > { %v2939_v25 = vpop.f32.mrf.mxu1 }
 0x1fa   : > { %11249 = vst [vmem:[#allocation34_spill] sm:$0xff] %v9519_v4  ;;  %v2940_v58 = vadd.f32 %v2939_v25, %v9026_v29  ;;  %v3230_v56 = vpop.f32.mrf.mxu0 }
 0x1fb   : > { %v2941_v7 = vpop.f32.mrf.mxu1 }
 0x1fc   : > { %v9522_v28 = vadd.f32 %v3228_v1, %v2940_v58  ;;  %v3233_v11 = vpop.f32.mrf.mxu0  ;;  %7446 = vmatmul.mubr.msk.bf16.gmra.mxu0 %vm874_vm1, %v9507_v3 }
 0x1fd   : > { %v2944_v15 = vpop.f32.mrf.mxu1  ;;  %7380 = vmatmul.mubr.msk.bf16.gmra.mxu1 %vm874_vm1, %v9527_v52  ;;  %7449 = vmatprep.mubr.msk.bf16.mxu0 %vm874_vm1, %v9515_v19 }
 0x1fe   : > { %11250 = vst [vmem:[#allocation35_spill] sm:$0xff] %v9522_v28  ;;  %v2945_v29 = vadd.f32 %v2944_v15, %v9004_v0  ;;  %v3235_v26 = vpop.f32.mrf.mxu0  ;;  %7383 = vmatprep.mubr.msk.bf16.mxu1 %vm874_vm1, %v9535_v35  ;;  %v9547_v15 = vld [vmem:[%s8228_s14 + $0x78] sm:$0xff]  }
 0x1ff   : > { %v2946_v2 = vpop.f32.mrf.mxu1 }
 0x200   : > { %v9539_v14 = vadd.f32 %v3233_v11, %v2945_v29  ;;  %v3236_v1 = vpop.f32.mrf.mxu0  ;;  %v9555_v29 = vld [vmem:[%s8228_s14 + $0x80] sm:$0xff]  }
 0x201   : > { %v2947_v25 = vpop.f32.mrf.mxu1 }
 0x202   : > { %11251 = vst [vmem:[#allocation36_spill] sm:$0xff] %v9539_v14  ;;  %v2948_v58 = vadd.f32 %v2947_v25, %v9022_v47  ;;  %v3238_v56 = vpop.f32.mrf.mxu0 }
 0x203   : > { %v2949_v7 = vpop.f32.mrf.mxu1 }
 0x204   : > { %v9542_v28 = vadd.f32 %v3236_v1, %v2948_v58  ;;  %v3241_v4 = vpop.f32.mrf.mxu0  ;;  %7450 = vmatmul.mubr.msk.bf16.gmra.mxu0 %vm874_vm1, %v9527_v52 }
 0x205   : > { %v2952_v0 = vpop.f32.mrf.mxu1  ;;  %7384 = vmatmul.mubr.msk.bf16.gmra.mxu1 %vm874_vm1, %v9547_v15  ;;  %7453 = vmatprep.mubr.msk.bf16.mxu0 %vm874_vm1, %v9535_v35 }
 0x206   : > { %11252 = vst [vmem:[#allocation37_spill] sm:$0xff] %v9542_v28  ;;  %v2953_v47 = vadd.f32 %v2952_v0, %v9041_v48  ;;  %v3243_v11 = vpop.f32.mrf.mxu0  ;;  %7387 = vmatprep.mubr.msk.bf16.mxu1 %vm874_vm1, %v9555_v29  ;;  %v9567_v0 = vld [vmem:[%s8228_s14 + $0x88] sm:$0xff]  }
 0x207   : > { %v2954_v26 = vpop.f32.mrf.mxu1 }
 0x208   : > { %v9559_v2 = vadd.f32 %v3241_v4, %v2953_v47  ;;  %v3244_v1 = vpop.f32.mrf.mxu0  ;;  %v9575_v47 = vld [vmem:[%s8228_s14 + $0x90] sm:$0xff]  }
 0x209   : > { %v2955_v25 = vpop.f32.mrf.mxu1 }
 0x20a   : > { %11253 = vst [vmem:[#allocation38_spill] sm:$0xff] %v9559_v2  ;;  %v2956_v58 = vadd.f32 %v2955_v25, %v9056_v63  ;;  %v3246_v56 = vpop.f32.mrf.mxu0 }
 0x20b   : > { %v2957_v7 = vpop.f32.mrf.mxu1 }
 0x20c   : > { %v9562_v28 = vadd.f32 %v3244_v1, %v2956_v58  ;;  %v3249_v14 = vpop.f32.mrf.mxu0  ;;  %7454 = vmatmul.mubr.msk.bf16.gmra.mxu0 %vm874_vm1, %v9547_v15 }
 0x20d   : > { %v2960_v48 = vpop.f32.mrf.mxu1  ;;  %7388 = vmatmul.mubr.msk.bf16.gmra.mxu1 %vm874_vm1, %v9567_v0  ;;  %7457 = vmatprep.mubr.msk.bf16.mxu0 %vm874_vm1, %v9555_v29 }
 0x20e   : > { %11254 = vst [vmem:[#allocation39_spill] sm:$0xff] %v9562_v28  ;;  %v2961_v63 = vadd.f32 %v2960_v48, %v9029_v12  ;;  %v3251_v4 = vpop.f32.mrf.mxu0  ;;  %7391 = vmatprep.mubr.msk.bf16.mxu1 %vm874_vm1, %v9575_v47  ;;  %v9587_v48 = vld [vmem:[%s8228_s14 + $0x98] sm:$0xff]  }
 0x20f   : > { %v2962_v11 = vpop.f32.mrf.mxu1  ;;  %v9595_v4 = vld [vmem:[%s8228_s14 + $0xa0] sm:$0xff]  }
 0x210   : > { %v9579_v26 = vadd.f32 %v3249_v14, %v2961_v63  ;;  %v3252_v1 = vpop.f32.mrf.mxu0  ;;  %v11257_v14 = vld [vmem:[#allocation19_spill] sm:$0xff] }
 0x211   : > { %v2963_v25 = vpop.f32.mrf.mxu1 }
 0x212   : > { %11255 = vst [vmem:[#allocation40_spill] sm:$0xff] %v9579_v26  ;;  %v2964_v58 = vadd.f32 %v2963_v25, %v9047_v59  ;;  %v3254_v56 = vpop.f32.mrf.mxu0 }
 0x213   : > { %v2965_v7 = vpop.f32.mrf.mxu1 }
 0x214   : > { %v9582_v28 = vadd.f32 %v3252_v1, %v2964_v58  ;;  %v3257_v2 = vpop.f32.mrf.mxu0  ;;  %7458 = vmatmul.mubr.msk.bf16.gmra.mxu0 %vm874_vm1, %v9567_v0 }
 0x215   : > { %v2968_v12 = vpop.f32.mrf.mxu1  ;;  %7392 = vmatmul.mubr.msk.bf16.gmra.mxu1 %vm874_vm1, %v9587_v48  ;;  %7461 = vmatprep.mubr.msk.bf16.mxu0 %vm874_vm1, %v9575_v47 }
 0x216   : > { %11256 = vst [vmem:[#allocation41_spill] sm:$0xff] %v9582_v28  ;;  %v2969_v59 = vadd.f32 %v2968_v12, %v11257_v14  ;;  %v3259_v63 = vpop.f32.mrf.mxu0  ;;  %7395 = vmatprep.mubr.msk.bf16.mxu1 %vm874_vm1, %v9595_v4  ;;  %v9607_v14 = vld [vmem:[%s8228_s14 + $0xa8] sm:$0xff]  }
 0x217   : > { %v2970_v11 = vpop.f32.mrf.mxu1 }
 0x218   : > { %v9599_v1 = vadd.f32 %v3257_v2, %v2969_v59  ;;  %v3260_v25 = vpop.f32.mrf.mxu0  ;;  %v11260_v2 = vld [vmem:[#allocation18_spill] sm:$0xff] }
 0x219   : > { %v2971_v58 = vpop.f32.mrf.mxu1 }
 0x21a   : > { %11258 = vst [vmem:[#allocation19_spill] sm:$0xff] %v9599_v1  ;;  %v2972_v56 = vadd.f32 %v2971_v58, %v9090_v57  ;;  %v3262_v7 = vpop.f32.mrf.mxu0 }
 0x21b   : > { %v2973_v28 = vpop.f32.mrf.mxu1 }
 0x21c   : > { %v9602_v26 = vadd.f32 %v3260_v25, %v2972_v56  ;;  %v3265_v43 = vpop.f32.mrf.mxu0  ;;  %7462 = vmatmul.mubr.msk.bf16.gmra.mxu0 %vm874_vm1, %v9587_v48  ;;  %v9615_v28 = vld [vmem:[%s8228_s14 + $0xb0] sm:$0xff]  }
 0x21d   : > { %v2976_v12 = vpop.f32.mrf.mxu1  ;;  %7396 = vmatmul.mubr.msk.bf16.gmra.mxu1 %vm874_vm1, %v9607_v14  ;;  %7465 = vmatprep.mubr.msk.bf16.mxu0 %vm874_vm1, %v9595_v4 }
 0x21e   : > { %11259 = vst [vmem:[#allocation42_spill] sm:$0xff] %v9602_v26  ;;  %v2977_v57 = vadd.f32 %v2976_v12, %v11260_v2  ;;  %v3267_v59 = vpop.f32.mrf.mxu0  ;;  %7399 = vmatprep.mubr.msk.bf16.mxu1 %vm874_vm1, %v9615_v28  ;;  %v9627_v2 = vld [vmem:[%s8228_s14 + $0xb8] sm:$0xff]  }
 0x21f   : > { %v2978_v63 = vpop.f32.mrf.mxu1 }
 0x220   : > { %v9619_v11 = vadd.f32 %v3265_v43, %v2977_v57  ;;  %v3268_v25 = vpop.f32.mrf.mxu0 }
 0x221   : > { %v2979_v58 = vpop.f32.mrf.mxu1 }
 0x222   : > { %11261 = vst [vmem:[#allocation18_spill] sm:$0xff] %v9619_v11  ;;  %v2980_v56 = vadd.f32 %v2979_v58, %v9086_v33  ;;  %v3270_v7 = vpop.f32.mrf.mxu0 }
 0x223   : > { %v2981_v26 = vpop.f32.mrf.mxu1 }
 0x224   : > { %v9622_v1 = vadd.f32 %v3268_v25, %v2980_v56  ;;  %v3273_v39 = vpop.f32.mrf.mxu0  ;;  %7466 = vmatmul.mubr.msk.bf16.gmra.mxu0 %vm874_vm1, %v9607_v14  ;;  %v9635_v26 = vld [vmem:[%s8228_s14 + $0xc0] sm:$0xff]  }
 0x225   : > { %v2984_v12 = vpop.f32.mrf.mxu1  ;;  %7400 = vmatmul.mubr.msk.bf16.gmra.mxu1 %vm874_vm1, %v9627_v2  ;;  %7469 = vmatprep.mubr.msk.bf16.mxu0 %vm874_vm1, %v9615_v28 }
 0x226   : > { %11262 = vst [vmem:[#allocation43_spill] sm:$0xff] %v9622_v1  ;;  %v2985_v33 = vadd.f32 %v2984_v12, %v9105_v6  ;;  %v3275_v43 = vpop.f32.mrf.mxu0  ;;  %7403 = vmatprep.mubr.msk.bf16.mxu1 %vm874_vm1, %v9635_v26  ;;  %v9647_v12 = vld [vmem:[%s8228_s14 + $0xc8] sm:$0xff]  }
 0x227   : > { %v2986_v57 = vpop.f32.mrf.mxu1 }
 0x228   : > { %v9639_v59 = vadd.f32 %v3273_v39, %v2985_v33  ;;  %v3276_v63 = vpop.f32.mrf.mxu0  ;;  %v9655_v33 = vld [vmem:[%s8228_s14 + $0xd0] sm:$0xff]  }
 0x229   : > { %v2987_v25 = vpop.f32.mrf.mxu1 }
 0x22a   : > { %11263 = vst [vmem:[#allocation44_spill] sm:$0xff] %v9639_v59  ;;  %v2988_v58 = vadd.f32 %v2987_v25, %v9115_v8  ;;  %v3278_v56 = vpop.f32.mrf.mxu0 }
 0x22b   : > { %v2989_v7 = vpop.f32.mrf.mxu1 }
 0x22c   : > { %v9642_v1 = vadd.f32 %v3276_v63, %v2988_v58  ;;  %v3281_v11 = vpop.f32.mrf.mxu0  ;;  %7470 = vmatmul.mubr.msk.bf16.gmra.mxu0 %vm874_vm1, %v9627_v2 }
 0x22d   : > { %v2992_v6 = vpop.f32.mrf.mxu1  ;;  %7404 = vmatmul.mubr.msk.bf16.gmra.mxu1 %vm874_vm1, %v9647_v12  ;;  %7473 = vmatprep.mubr.msk.bf16.mxu0 %vm874_vm1, %v9635_v26 }
 0x22e   : > { %11264 = vst [vmem:[#allocation45_spill] sm:$0xff] %v9642_v1  ;;  %v2993_v8 = vadd.f32 %v2992_v6, %v9093_v22  ;;  %v3283_v39 = vpop.f32.mrf.mxu0  ;;  %7407 = vmatprep.mubr.msk.bf16.mxu1 %vm874_vm1, %v9655_v33  ;;  %v9667_v6 = vld [vmem:[%s8228_s14 + $0xd8] sm:$0xff]  }
 0x22f   : > { %v2994_v43 = vpop.f32.mrf.mxu1 }
 0x230   : > { %v9659_v57 = vadd.f32 %v3281_v11, %v2993_v8  ;;  %v3284_v63 = vpop.f32.mrf.mxu0  ;;  %v9675_v8 = vld [vmem:[%s8228_s14 + $0xe0] sm:$0xff]  }
 0x231   : > { %v2995_v25 = vpop.f32.mrf.mxu1 }
 0x232   : > { %11265 = vst [vmem:[#allocation46_spill] sm:$0xff] %v9659_v57  ;;  %v2996_v58 = vadd.f32 %v2995_v25, %v9111_v24  ;;  %v3286_v56 = vpop.f32.mrf.mxu0 }
 0x233   : > { %v2997_v7 = vpop.f32.mrf.mxu1 }
 0x234   : > { %v9662_v1 = vadd.f32 %v3284_v63, %v2996_v58  ;;  %v3289_v59 = vpop.f32.mrf.mxu0  ;;  %7474 = vmatmul.mubr.msk.bf16.gmra.mxu0 %vm874_vm1, %v9647_v12 }
 0x235   : > { %v3000_v22 = vpop.f32.mrf.mxu1  ;;  %7408 = vmatmul.mubr.msk.bf16.gmra.mxu1 %vm874_vm1, %v9667_v6  ;;  %7477 = vmatprep.mubr.msk.bf16.mxu0 %vm874_vm1, %v9655_v33 }
 0x236   : > { %11266 = vst [vmem:[#allocation47_spill] sm:$0xff] %v9662_v1  ;;  %v3001_v24 = vadd.f32 %v3000_v22, %v9130_v32  ;;  %v3291_v11 = vpop.f32.mrf.mxu0  ;;  %7411 = vmatprep.mubr.msk.bf16.mxu1 %vm874_vm1, %v9675_v8  ;;  %v9687_v22 = vld [vmem:[%s8228_s14 + $0xe8] sm:$0xff]  }
 0x237   : > { %v3002_v39 = vpop.f32.mrf.mxu1 }
 0x238   : > { %v9679_v43 = vadd.f32 %v3289_v59, %v3001_v24  ;;  %v3292_v63 = vpop.f32.mrf.mxu0  ;;  %v9695_v24 = vld [vmem:[%s8228_s14 + $0xf0] sm:$0xff]  }
 0x239   : > { %v3003_v25 = vpop.f32.mrf.mxu1 }
 0x23a   : > { %11267 = vst [vmem:[#allocation48_spill] sm:$0xff] %v9679_v43  ;;  %v3004_v58 = vadd.f32 %v3003_v25, %v9140_v20  ;;  %v3294_v56 = vpop.f32.mrf.mxu0 }
 0x23b   : > { %v3005_v7 = vpop.f32.mrf.mxu1 }
 0x23c   : > { %v9682_v1 = vadd.f32 %v3292_v63, %v3004_v58  ;;  %v3297_v57 = vpop.f32.mrf.mxu0  ;;  %7478 = vmatmul.mubr.msk.bf16.gmra.mxu0 %vm874_vm1, %v9667_v6 }
 0x23d   : > { %v3008_v32 = vpop.f32.mrf.mxu1  ;;  %7412 = vmatmul.mubr.msk.bf16.gmra.mxu1 %vm874_vm1, %v9687_v22  ;;  %7481 = vmatprep.mubr.msk.bf16.mxu0 %vm874_vm1, %v9675_v8 }
 0x23e   : > { %11268 = vst [vmem:[#allocation49_spill] sm:$0xff] %v9682_v1  ;;  %v3009_v20 = vadd.f32 %v3008_v32, %v9118_v53  ;;  %v3299_v59 = vpop.f32.mrf.mxu0  ;;  %7415 = vmatprep.mubr.msk.bf16.mxu1 %vm874_vm1, %v9695_v24  ;;  %v9707_v32 = vld [vmem:[%s8228_s14 + $0xf8] sm:$0xff]  }
 0x23f   : > { %v3010_v11 = vpop.f32.mrf.mxu1 }
 0x240   : > { %v9699_v39 = vadd.f32 %v3297_v57, %v3009_v20  ;;  %v3300_v63 = vpop.f32.mrf.mxu0  ;;  %v9715_v20 = vld [vmem:[%s8323_s18] sm:$0xff]  }
 0x241   : > { %v3011_v25 = vpop.f32.mrf.mxu1 }
 0x242   : > { %11269 = vst [vmem:[#allocation50_spill] sm:$0xff] %v9699_v39  ;;  %v3012_v58 = vadd.f32 %v3011_v25, %v9136_v45  ;;  %v3302_v56 = vpop.f32.mrf.mxu0 }
 0x243   : > { %v3013_v7 = vpop.f32.mrf.mxu1 }
 0x244   : > { %v9702_v1 = vadd.f32 %v3300_v63, %v3012_v58  ;;  %v3305_v43 = vpop.f32.mrf.mxu0  ;;  %7482 = vmatmul.mubr.msk.bf16.gmra.mxu0 %vm874_vm1, %v9687_v22 }
 0x245   : > { %v3016_v53 = vpop.f32.mrf.mxu1  ;;  %7416 = vmatmul.mubr.msk.bf16.gmra.mxu1 %vm874_vm1, %v9707_v32  ;;  %7485 = vmatprep.mubr.msk.bf16.mxu0 %vm874_vm1, %v9695_v24 }
 0x246   : > { %11270 = vst [vmem:[#allocation51_spill] sm:$0xff] %v9702_v1  ;;  %v3017_v45 = vadd.f32 %v3016_v53, %v9155_v44  ;;  %v3307_v57 = vpop.f32.mrf.mxu0  ;;  %7419 = vmatprep.mubr.msk.bf16.mxu1 %vm874_vm1, %v9715_v20  ;;  %v9727_v53 = vld [vmem:[%s8323_s18 + $0x8] sm:$0xff]  }
 0x247   : > { %v3018_v59 = vpop.f32.mrf.mxu1 }
 0x248   : > { %v9719_v11 = vadd.f32 %v3305_v43, %v3017_v45  ;;  %v3308_v63 = vpop.f32.mrf.mxu0  ;;  %v11273_v43 = vld [vmem:[#allocation20_spill] sm:$0xff] }
 0x249   : > { %v3019_v25 = vpop.f32.mrf.mxu1 }
 0x24a   : > { %11271 = vst [vmem:[#allocation52_spill] sm:$0xff] %v9719_v11  ;;  %v3020_v58 = vadd.f32 %v3019_v25, %v9165_v38  ;;  %v3310_v56 = vpop.f32.mrf.mxu0 }
 0x24b   : > { %v3021_v7 = vpop.f32.mrf.mxu1 }
 0x24c   : > { %v9722_v1 = vadd.f32 %v3308_v63, %v3020_v58  ;;  %v3313_v39 = vpop.f32.mrf.mxu0  ;;  %7486 = vmatmul.mubr.msk.bf16.gmra.mxu0 %vm874_vm1, %v9707_v32  ;;  %v11275_v58 = vld [vmem:[#allocation21_spill] sm:$0xff] }
 0x24d   : > { %v3024_v44 = vpop.f32.mrf.mxu1  ;;  %7420 = vmatmul.mubr.msk.bf16.gmra.mxu1 %vm874_vm1, %v9727_v53  ;;  %7557 = vmatprep.mubr.msk.bf16.mxu0 %vm874_vm1, %v9397_v61  ;;  %v4949_v61 = vsel %vm971_vm0, %v9415_v9, 0 }
 0x24e   : > { %11272 = vst [vmem:[#allocation53_spill] sm:$0xff] %v9722_v1  ;;  %v3025_v45 = vadd.f32 %v3024_v44, %v11273_v43  ;;  %v3315_v38 = vpop.f32.mrf.mxu0  ;;  %7491 = vmatprep.mubr.msk.bf16.mxu1 %vm874_vm1, %v9424_v30  ;;  %v5243_v1 = vsel %vm971_vm0, %v9437_v55, 0 }
 0x24f   : > { %v3026_v57 = vpop.f32.mrf.mxu1 }
 0x250   : > { %v9736_v59 = vadd.f32 %v3313_v39, %v3025_v45  ;;  %v3316_v63 = vpop.f32.mrf.mxu0  ;;  %v11277_v45 = vld [vmem:[#allocation23_spill] sm:$0xff] }
 0x251   : > { %v3027_v25 = vpop.f32.mrf.mxu1 }
 0x252   : > { %11274 = vst [vmem:[#allocation20_spill] sm:$0xff] %v9736_v59  ;;  %v3028_v56 = vadd.f32 %v3027_v25, %v11275_v58  ;;  %v3318_v7 = vpop.f32.mrf.mxu0 }
 0x253   : > { %v3029_v11 = vpop.f32.mrf.mxu1 }
 0x254   : > { %v9743_v44 = vadd.f32 %v3316_v63, %v3028_v56  ;;  %v3321_v43 = vpop.f32.mrf.mxu0  ;;  %7558 = vmatmul.mubr.msk.bf16.vlgmr.msra.gmra.mxu0 %vm874_vm1, %v9418_v36  ;;  %v11279_v63 = vld [vmem:[#allocation3_spill] sm:$0xff] }
 0x255   : > { %v3032_v39 = vpop.f32.mrf.mxu1  ;;  %7492 = vmatmul.mubr.msk.bf16.vlgmr.msra.gmra.mxu1 %vm874_vm1, %v9447_v31  ;;  %7688 = vmatpush3.bf16.msra.mxu0 %v5243_v1 }
 0x256   : > { %11276 = vst [vmem:[#allocation21_spill] sm:$0xff] %v9743_v44  ;;  %v3033_v38 = vadd.f32 %v3032_v39, %v11277_v45  ;;  %7622 = vmatpush3.bf16.msra.mxu1 %v4949_v61  ;;  %v3323_v57 = vpop.f32.mrf.mxu0  ;;  %7495 = vmatprep.mubr.msk.bf16.mxu1 %vm874_vm1, %v9455_v60 }
 0x257   : > { %v3034_v55 = vpop.f32.mrf.mxu1  ;;  %7561 = vmatprep.mubr.msk.bf16.mxu0 %vm874_vm1, %v9424_v30 }
 0x258   : > { %v9754_v9 = vadd.f32 %v3321_v43, %v3033_v38  ;;  %v3324_v11 = vpop.f32.mrf.mxu0  ;;  %v11281_v43 = vld [vmem:[#allocation22_spill] sm:$0xff] }
 0x259   : > { %v3035_v36 = vpop.f32.mrf.mxu1 }
 0x25a   : > { %11278 = vst [vmem:[#allocation23_spill] sm:$0xff] %v9754_v9  ;;  %v3036_v25 = vadd.f32 %v3035_v36, %v11279_v63  ;;  %v3326_v58 = vpop.f32.mrf.mxu0  ;;  %v11283_v36 = vld [vmem:[#allocation2_spill] sm:$0xff] }
 0x25b   : > { %v3037_v56 = vpop.f32.mrf.mxu1 }
 0x25c   : > { %v9757_v1 = vadd.f32 %v3324_v11, %v3036_v25  ;;  %v3329_v7 = vpop.f32.mrf.mxu0  ;;  %7562 = vmatmul.mubr.msk.bf16.gmra.mxu0 %vm874_vm1, %v9447_v31 }
 0x25d   : > { %v3040_v61 = vpop.f32.mrf.mxu1  ;;  %7496 = vmatmul.mubr.msk.bf16.gmra.mxu1 %vm874_vm1, %v9467_v51  ;;  %7565 = vmatprep.mubr.msk.bf16.mxu0 %vm874_vm1, %v9455_v60 }
 0x25e   : > { %11280 = vst [vmem:[#allocation3_spill] sm:$0xff] %v9757_v1  ;;  %v3041_v39 = vadd.f32 %v3040_v61, %v11281_v43  ;;  %v3331_v45 = vpop.f32.mrf.mxu0  ;;  %7499 = vmatprep.mubr.msk.bf16.mxu1 %vm874_vm1, %v9475_v13 }
 0x25f   : > { %v3042_v38 = vpop.f32.mrf.mxu1 }
 0x260   : > { %v9768_v57 = vadd.f32 %v3329_v7, %v3041_v39  ;;  %v3332_v55 = vpop.f32.mrf.mxu0  ;;  %v11285_v7 = vld [vmem:[#allocation5_spill] sm:$0xff] }
 0x261   : > { %v3043_v11 = vpop.f32.mrf.mxu1 }
 0x262   : > { %11282 = vst [vmem:[#allocation22_spill] sm:$0xff] %v9768_v57  ;;  %v3044_v63 = vadd.f32 %v3043_v11, %v11283_v36  ;;  %v3334_v25 = vpop.f32.mrf.mxu0  ;;  %v11287_v36 = vld [vmem:[#allocation7_spill] sm:$0xff] }
 0x263   : > { %v3045_v58 = vpop.f32.mrf.mxu1 }
 0x264   : > { %v9771_v56 = vadd.f32 %v3332_v55, %v3044_v63  ;;  %v3337_v1 = vpop.f32.mrf.mxu0  ;;  %7566 = vmatmul.mubr.msk.bf16.gmra.mxu0 %vm874_vm1, %v9467_v51 }
 0x265   : > { %v3048_v61 = vpop.f32.mrf.mxu1  ;;  %7500 = vmatmul.mubr.msk.bf16.gmra.mxu1 %vm874_vm1, %v9487_v40  ;;  %7569 = vmatprep.mubr.msk.bf16.mxu0 %vm874_vm1, %v9475_v13 }
 0x266   : > { %11284 = vst [vmem:[#allocation2_spill] sm:$0xff] %v9771_v56  ;;  %v3049_v43 = vadd.f32 %v3048_v61, %v11285_v7  ;;  %v3339_v39 = vpop.f32.mrf.mxu0  ;;  %7503 = vmatprep.mubr.msk.bf16.mxu1 %vm874_vm1, %v9495_v23 }
 0x267   : > { %v3050_v45 = vpop.f32.mrf.mxu1 }
 0x268   : > { %v9782_v38 = vadd.f32 %v3337_v1, %v3049_v43  ;;  %v3340_v55 = vpop.f32.mrf.mxu0  ;;  %v11289_v1 = vld [vmem:[#allocation4_spill] sm:$0xff] }
 0x269   : > { %v3051_v11 = vpop.f32.mrf.mxu1 }
 0x26a   : > { %11286 = vst [vmem:[#allocation5_spill] sm:$0xff] %v9782_v38  ;;  %v3052_v63 = vadd.f32 %v3051_v11, %v11287_v36  ;;  %v3342_v25 = vpop.f32.mrf.mxu0  ;;  %v11291_v36 = vld [vmem:[#allocation6_spill] sm:$0xff] }
 0x26b   : > { %v3053_v58 = vpop.f32.mrf.mxu1 }
 0x26c   : > { %v9785_v56 = vadd.f32 %v3340_v55, %v3052_v63  ;;  %v3345_v9 = vpop.f32.mrf.mxu0  ;;  %7570 = vmatmul.mubr.msk.bf16.gmra.mxu0 %vm874_vm1, %v9487_v40 }
 0x26d   : > { %v3056_v61 = vpop.f32.mrf.mxu1  ;;  %7504 = vmatmul.mubr.msk.bf16.gmra.mxu1 %vm874_vm1, %v9507_v3  ;;  %7573 = vmatprep.mubr.msk.bf16.mxu0 %vm874_vm1, %v9495_v23 }
 0x26e   : > { %11288 = vst [vmem:[#allocation7_spill] sm:$0xff] %v9785_v56  ;;  %v3057_v7 = vadd.f32 %v3056_v61, %v11289_v1  ;;  %v3347_v43 = vpop.f32.mrf.mxu0  ;;  %7507 = vmatprep.mubr.msk.bf16.mxu1 %vm874_vm1, %v9515_v19 }
 0x26f   : > { %v3058_v39 = vpop.f32.mrf.mxu1 }
 0x270   : > { %v9796_v45 = vadd.f32 %v3345_v9, %v3057_v7  ;;  %v3348_v55 = vpop.f32.mrf.mxu0  ;;  %v11293_v9 = vld [vmem:[#allocation9_spill] sm:$0xff] }
 0x271   : > { %v3059_v11 = vpop.f32.mrf.mxu1 }
 0x272   : > { %11290 = vst [vmem:[#allocation4_spill] sm:$0xff] %v9796_v45  ;;  %v3060_v63 = vadd.f32 %v3059_v11, %v11291_v36  ;;  %v3350_v25 = vpop.f32.mrf.mxu0  ;;  %v11295_v36 = vld [vmem:[#allocation11_spill] sm:$0xff] }
 0x273   : > { %v3061_v58 = vpop.f32.mrf.mxu1 }
 0x274   : > { %v9799_v56 = vadd.f32 %v3348_v55, %v3060_v63  ;;  %v3353_v38 = vpop.f32.mrf.mxu0  ;;  %7574 = vmatmul.mubr.msk.bf16.gmra.mxu0 %vm874_vm1, %v9507_v3 }
 0x275   : > { %v3064_v61 = vpop.f32.mrf.mxu1  ;;  %7508 = vmatmul.mubr.msk.bf16.gmra.mxu1 %vm874_vm1, %v9527_v52  ;;  %7577 = vmatprep.mubr.msk.bf16.mxu0 %vm874_vm1, %v9515_v19 }
 0x276   : > { %11292 = vst [vmem:[#allocation6_spill] sm:$0xff] %v9799_v56  ;;  %v3065_v1 = vadd.f32 %v3064_v61, %v11293_v9  ;;  %v3355_v7 = vpop.f32.mrf.mxu0  ;;  %7511 = vmatprep.mubr.msk.bf16.mxu1 %vm874_vm1, %v9535_v35 }
 0x277   : > { %v3066_v43 = vpop.f32.mrf.mxu1 }
 0x278   : > { %v9810_v39 = vadd.f32 %v3353_v38, %v3065_v1  ;;  %v3356_v55 = vpop.f32.mrf.mxu0  ;;  %v11297_v38 = vld [vmem:[#allocation8_spill] sm:$0xff] }
 0x279   : > { %v3067_v11 = vpop.f32.mrf.mxu1 }
 0x27a   : > { %11294 = vst [vmem:[#allocation9_spill] sm:$0xff] %v9810_v39  ;;  %v3068_v63 = vadd.f32 %v3067_v11, %v11295_v36  ;;  %v3358_v25 = vpop.f32.mrf.mxu0  ;;  %v11299_v36 = vld [vmem:[#allocation10_spill] sm:$0xff] }
 0x27b   : > { %v3069_v58 = vpop.f32.mrf.mxu1 }
 0x27c   : > { %v9813_v56 = vadd.f32 %v3356_v55, %v3068_v63  ;;  %v3361_v45 = vpop.f32.mrf.mxu0  ;;  %7578 = vmatmul.mubr.msk.bf16.gmra.mxu0 %vm874_vm1, %v9527_v52 }
 0x27d   : > { %v3072_v61 = vpop.f32.mrf.mxu1  ;;  %7512 = vmatmul.mubr.msk.bf16.gmra.mxu1 %vm874_vm1, %v9547_v15  ;;  %7581 = vmatprep.mubr.msk.bf16.mxu0 %vm874_vm1, %v9535_v35 }
 0x27e   : > { %11296 = vst [vmem:[#allocation11_spill] sm:$0xff] %v9813_v56  ;;  %v3073_v9 = vadd.f32 %v3072_v61, %v11297_v38  ;;  %v3363_v1 = vpop.f32.mrf.mxu0  ;;  %7515 = vmatprep.mubr.msk.bf16.mxu1 %vm874_vm1, %v9555_v29 }
 0x27f   : > { %v3074_v7 = vpop.f32.mrf.mxu1 }
 0x280   : > { %v9824_v43 = vadd.f32 %v3361_v45, %v3073_v9  ;;  %v3364_v55 = vpop.f32.mrf.mxu0  ;;  %v11301_v45 = vld [vmem:[#allocation13_spill] sm:$0xff] }
 0x281   : > { %v3075_v11 = vpop.f32.mrf.mxu1 }
 0x282   : > { %11298 = vst [vmem:[#allocation8_spill] sm:$0xff] %v9824_v43  ;;  %v3076_v63 = vadd.f32 %v3075_v11, %v11299_v36  ;;  %v3366_v25 = vpop.f32.mrf.mxu0 }
 0x283   : > { %v3077_v58 = vpop.f32.mrf.mxu1 }
 0x284   : > { %v9827_v56 = vadd.f32 %v3364_v55, %v3076_v63  ;;  %v3369_v39 = vpop.f32.mrf.mxu0  ;;  %7582 = vmatmul.mubr.msk.bf16.gmra.mxu0 %vm874_vm1, %v9547_v15 }
 0x285   : > { %v3080_v61 = vpop.f32.mrf.mxu1  ;;  %7516 = vmatmul.mubr.msk.bf16.gmra.mxu1 %vm874_vm1, %v9567_v0  ;;  %7585 = vmatprep.mubr.msk.bf16.mxu0 %vm874_vm1, %v9555_v29 }
 0x286   : > { %11300 = vst [vmem:[#allocation10_spill] sm:$0xff] %v9827_v56  ;;  %v3081_v38 = vadd.f32 %v3080_v61, %v11301_v45  ;;  %v3371_v9 = vpop.f32.mrf.mxu0  ;;  %7519 = vmatprep.mubr.msk.bf16.mxu1 %vm874_vm1, %v9575_v47 }
 0x287   : > { %v3082_v1 = vpop.f32.mrf.mxu1 }
 0x288   : > { %v9838_v7 = vadd.f32 %v3369_v39, %v3081_v38  ;;  %v3372_v55 = vpop.f32.mrf.mxu0  ;;  %v11304_v39 = vld [vmem:[#allocation12_spill] sm:$0xff] }
 0x289   : > { %v3083_v11 = vpop.f32.mrf.mxu1 }
 0x28a   : > { %11302 = vst [vmem:[#allocation13_spill] sm:$0xff] %v9838_v7  ;;  %v3084_v36 = vadd.f32 %v3083_v11, %v9265_v49  ;;  %v3374_v63 = vpop.f32.mrf.mxu0 }
 0x28b   : > { %v3085_v25 = vpop.f32.mrf.mxu1 }
 0x28c   : > { %v9841_v58 = vadd.f32 %v3372_v55, %v3084_v36  ;;  %v3377_v56 = vpop.f32.mrf.mxu0  ;;  %7586 = vmatmul.mubr.msk.bf16.gmra.mxu0 %vm874_vm1, %v9567_v0 }
 0x28d   : > { %v3088_v61 = vpop.f32.mrf.mxu1  ;;  %7520 = vmatmul.mubr.msk.bf16.gmra.mxu1 %vm874_vm1, %v9587_v48  ;;  %7589 = vmatprep.mubr.msk.bf16.mxu0 %vm874_vm1, %v9575_v47 }
 0x28e   : > { %11303 = vst [vmem:[#allocation54_spill] sm:$0xff] %v9841_v58  ;;  %v3089_v45 = vadd.f32 %v3088_v61, %v11304_v39  ;;  %v3379_v38 = vpop.f32.mrf.mxu0  ;;  %7523 = vmatprep.mubr.msk.bf16.mxu1 %vm874_vm1, %v9595_v4 }
 0x28f   : > { %v3090_v49 = vpop.f32.mrf.mxu1 }
 0x290   : > { %v9852_v9 = vadd.f32 %v3377_v56, %v3089_v45  ;;  %v3380_v1 = vpop.f32.mrf.mxu0 }
 0x291   : > { %v3091_v55 = vpop.f32.mrf.mxu1 }
 0x292   : > { %11305 = vst [vmem:[#allocation12_spill] sm:$0xff] %v9852_v9  ;;  %v3092_v11 = vadd.f32 %v3091_v55, %v9261_v34  ;;  %v3382_v36 = vpop.f32.mrf.mxu0 }
 0x293   : > { %v3093_v63 = vpop.f32.mrf.mxu1 }
 0x294   : > { %v9855_v25 = vadd.f32 %v3380_v1, %v3092_v11  ;;  %v7427_v58 = vpop.f32.mrf.mxu0  ;;  %7590 = vmatmul.mubr.msk.bf16.gmra.mxu0 %vm874_vm1, %v9587_v48 }
 0x295   : > { %v7361_v61 = vpop.f32.mrf.mxu1  ;;  %7524 = vmatmul.mubr.msk.bf16.gmra.mxu1 %vm874_vm1, %v9607_v14  ;;  %7593 = vmatprep.mubr.msk.bf16.mxu0 %vm874_vm1, %v9595_v4 }
 0x296   : > { %11306 = vst [vmem:[#allocation55_spill] sm:$0xff] %v9855_v25  ;;  %v9863_v56 = vadd.f32 %v7427_v58, %v7361_v61  ;;  %v3717_v39 = vpop.f32.mrf.mxu0  ;;  %7527 = vmatprep.mubr.msk.bf16.mxu1 %vm874_vm1, %v9615_v28 }
 0x297   : > { %v3425_v34 = vpop.f32.mrf.mxu1 }
 0x298   : > { %v9867_v45 = vadd.f32 %v3717_v39, %v3425_v34  ;;  %v7428_v38 = vpop.f32.mrf.mxu0 }
 0x299   : > { %v7362_v49 = vpop.f32.mrf.mxu1 }
 0x29a   : > { %v9869_v1 = vadd.f32 %v7428_v38, %v7362_v49  ;;  %v3720_v55 = vpop.f32.mrf.mxu0 }
 0x29b   : > { %v3428_v11 = vpop.f32.mrf.mxu1 }
 0x29c   : > { %v9871_v36 = vadd.f32 %v3720_v55, %v3428_v11  ;;  %v7431_v63 = vpop.f32.mrf.mxu0  ;;  %7594 = vmatmul.mubr.msk.bf16.gmra.mxu0 %vm874_vm1, %v9607_v14 }
 0x29d   : > { %v7365_v58 = vpop.f32.mrf.mxu1  ;;  %7528 = vmatmul.mubr.msk.bf16.gmra.mxu1 %vm874_vm1, %v9627_v2  ;;  %7597 = vmatprep.mubr.msk.bf16.mxu0 %vm874_vm1, %v9615_v28 }
 0x29e   : > { %v9879_v61 = vadd.f32 %v7431_v63, %v7365_v58  ;;  %v3733_v39 = vpop.f32.mrf.mxu0  ;;  %7531 = vmatprep.mubr.msk.bf16.mxu1 %vm874_vm1, %v9635_v26 }
 0x29f   : > { %v3441_v34 = vpop.f32.mrf.mxu1 }
 0x2a0   : > { %v9883_v38 = vadd.f32 %v3733_v39, %v3441_v34  ;;  %v7432_v49 = vpop.f32.mrf.mxu0 }
 0x2a1   : > { %v7366_v55 = vpop.f32.mrf.mxu1 }
 0x2a2   : > { %v9885_v11 = vadd.f32 %v7432_v49, %v7366_v55  ;;  %v3736_v7 = vpop.f32.mrf.mxu0 }
 0x2a3   : > { %v3444_v25 = vpop.f32.mrf.mxu1 }
 0x2a4   : > { %v9887_v9 = vadd.f32 %v3736_v7, %v3444_v25  ;;  %v7435_v43 = vpop.f32.mrf.mxu0  ;;  %7598 = vmatmul.mubr.msk.bf16.gmra.mxu0 %vm874_vm1, %v9627_v2 }
 0x2a5   : > { %v7369_v63 = vpop.f32.mrf.mxu1  ;;  %7532 = vmatmul.mubr.msk.bf16.gmra.mxu1 %vm874_vm1, %v9647_v12  ;;  %7601 = vmatprep.mubr.msk.bf16.mxu0 %vm874_vm1, %v9635_v26 }
 0x2a6   : > { %v9895_v58 = vadd.f32 %v7435_v43, %v7369_v63  ;;  %v3749_v39 = vpop.f32.mrf.mxu0  ;;  %7535 = vmatprep.mubr.msk.bf16.mxu1 %vm874_vm1, %v9655_v33 }
 0x2a7   : > { %v3457_v34 = vpop.f32.mrf.mxu1 }
 0x2a8   : > { %v9899_v7 = vadd.f32 %v3749_v39, %v3457_v34  ;;  %v7436_v25 = vpop.f32.mrf.mxu0 }
 0x2a9   : > { %v7370_v49 = vpop.f32.mrf.mxu1 }
 0x2aa   : > { %v9901_v55 = vadd.f32 %v7436_v25, %v7370_v49  ;;  %v3752_v57 = vpop.f32.mrf.mxu0 }
 0x2ab   : > { %v3460_v44 = vpop.f32.mrf.mxu1 }
 0x2ac   : > { %v9903_v59 = vadd.f32 %v3752_v57, %v3460_v44  ;;  %v7439_v42 = vpop.f32.mrf.mxu0  ;;  %7602 = vmatmul.mubr.msk.bf16.gmra.mxu0 %vm874_vm1, %v9647_v12 }
 0x2ad   : > { %v7373_v43 = vpop.f32.mrf.mxu1  ;;  %7536 = vmatmul.mubr.msk.bf16.gmra.mxu1 %vm874_vm1, %v9667_v6  ;;  %7605 = vmatprep.mubr.msk.bf16.mxu0 %vm874_vm1, %v9655_v33 }
 0x2ae   : > { %v9911_v63 = vadd.f32 %v7439_v42, %v7373_v43  ;;  %v3765_v39 = vpop.f32.mrf.mxu0  ;;  %7539 = vmatprep.mubr.msk.bf16.mxu1 %vm874_vm1, %v9675_v8 }
 0x2af   : > { %v3473_v34 = vpop.f32.mrf.mxu1 }
 0x2b0   : > { %v9915_v44 = vadd.f32 %v3765_v39, %v3473_v34  ;;  %v7440_v57 = vpop.f32.mrf.mxu0 }
 0x2b1   : > { %v7374_v25 = vpop.f32.mrf.mxu1 }
 0x2b2   : > { %v9917_v49 = vadd.f32 %v7440_v57, %v7374_v25  ;;  %v3768_v12 = vpop.f32.mrf.mxu0 }
 0x2b3   : > { %v3476_v10 = vpop.f32.mrf.mxu1 }
 0x2b4   : > { %11307 = vst [vmem:[#allocation56_spill] sm:$0xff] %v9917_v49  ;;  %v9919_v50 = vadd.f32 %v3768_v12, %v3476_v10  ;;  %v7443_v18 = vpop.f32.mrf.mxu0  ;;  %7606 = vmatmul.mubr.msk.bf16.gmra.mxu0 %vm874_vm1, %v9667_v6 }
 0x2b5   : > { %v7377_v42 = vpop.f32.mrf.mxu1  ;;  %7540 = vmatmul.mubr.msk.bf16.gmra.mxu1 %vm874_vm1, %v9687_v22  ;;  %7609 = vmatprep.mubr.msk.bf16.mxu0 %vm874_vm1, %v9675_v8 }
 0x2b6   : > { %11308 = vst [vmem:[#allocation57_spill] sm:$0xff] %v9919_v50  ;;  %v9927_v33 = vadd.f32 %v7443_v18, %v7377_v42  ;;  %v3781_v43 = vpop.f32.mrf.mxu0  ;;  %7543 = vmatprep.mubr.msk.bf16.mxu1 %vm874_vm1, %v9695_v24 }
 0x2b7   : > { %v3489_v39 = vpop.f32.mrf.mxu1 }
 0x2b8   : > { %v9931_v10 = vadd.f32 %v3781_v43, %v3489_v39  ;;  %v7444_v34 = vpop.f32.mrf.mxu0 }
 0x2b9   : > { %v7378_v57 = vpop.f32.mrf.mxu1 }
 0x2ba   : > { %v9933_v25 = vadd.f32 %v7444_v34, %v7378_v57  ;;  %v3784_v6 = vpop.f32.mrf.mxu0 }
 0x2bb   : > { %v3492_v12 = vpop.f32.mrf.mxu1 }
 0x2bc   : > { %11309 = vst [vmem:[#allocation58_spill] sm:$0xff] %v9933_v25  ;;  %v9935_v50 = vadd.f32 %v3784_v6, %v3492_v12  ;;  %v7447_v49 = vpop.f32.mrf.mxu0  ;;  %7610 = vmatmul.mubr.msk.bf16.gmra.mxu0 %vm874_vm1, %v9687_v22 }
 0x2bd   : > { %v7381_v18 = vpop.f32.mrf.mxu1  ;;  %7544 = vmatmul.mubr.msk.bf16.gmra.mxu1 %vm874_vm1, %v9707_v32  ;;  %7613 = vmatprep.mubr.msk.bf16.mxu0 %vm874_vm1, %v9695_v24 }
 0x2be   : > { %11310 = vst [vmem:[#allocation59_spill] sm:$0xff] %v9935_v50  ;;  %v9943_v8 = vadd.f32 %v7447_v49, %v7381_v18  ;;  %v3797_v42 = vpop.f32.mrf.mxu0  ;;  %7547 = vmatprep.mubr.msk.bf16.mxu1 %vm874_vm1, %v9715_v20 }
 0x2bf   : > { %v3505_v43 = vpop.f32.mrf.mxu1 }
 0x2c0   : > { %v9947_v39 = vadd.f32 %v3797_v42, %v3505_v43  ;;  %v7448_v34 = vpop.f32.mrf.mxu0  ;;  %v9962_v42 = vld [vmem:[%s8323_s18 + $0x10] sm:$0xff]  }
 0x2c1   : > { %v7382_v57 = vpop.f32.mrf.mxu1 }
 0x2c2   : > { %v9949_v22 = vadd.f32 %v7448_v34, %v7382_v57  ;;  %v3800_v6 = vpop.f32.mrf.mxu0 }
 0x2c3   : > { %v3508_v12 = vpop.f32.mrf.mxu1 }
 0x2c4   : > { %v9951_v50 = vadd.f32 %v3800_v6, %v3508_v12  ;;  %v7451_v25 = vpop.f32.mrf.mxu0  ;;  %7614 = vmatmul.mubr.msk.bf16.gmra.mxu0 %vm874_vm1, %v9707_v32 }
 0x2c5   : > { %v7385_v24 = vpop.f32.mrf.mxu1  ;;  %7548 = vmatmul.mubr.msk.bf16.gmra.mxu1 %vm874_vm1, %v9727_v53  ;;  %7617 = vmatprep.mubr.msk.bf16.mxu0 %vm874_vm1, %v9715_v20 }
 0x2c6   : > { %11311 = vst [vmem:[#allocation60_spill] sm:$0xff] %v9951_v50  ;;  %v9959_v49 = vadd.f32 %v7451_v25, %v7385_v24  ;;  %v3813_v18 = vpop.f32.mrf.mxu0  ;;  %7551 = vmatprep.mubr.msk.bf16.mxu1 %vm874_vm1, %v9962_v42 }
 0x2c7   : > { %v3521_v43 = vpop.f32.mrf.mxu1 }
 0x2c8   : > { %11312 = vst [vmem:[#allocation61_spill] sm:$0xff] %v9959_v49  ;;  %v9966_v34 = vadd.f32 %v3813_v18, %v3521_v43  ;;  %v7452_v32 = vpop.f32.mrf.mxu0  ;;  %v9975_v49 = vld [vmem:[%s8323_s18 + $0x18] sm:$0xff]  }
 0x2c9   : > { %v7386_v57 = vpop.f32.mrf.mxu1  ;;  %11316 = vst [vmem:[#allocation65_spill] sm:$0xff] %v9975_v49 }
 0x2ca   : > { %11313 = vst [vmem:[#allocation62_spill] sm:$0xff] %v9966_v34  ;;  %v9968_v6 = vadd.f32 %v7452_v32, %v7386_v57  ;;  %v3816_v12 = vpop.f32.mrf.mxu0  ;;  %v8087_v32 = vld [vmem:[%s8228_s14] sm:$0xff]  }
 0x2cb   : > { %v3524_v50 = vpop.f32.mrf.mxu1 }
 0x2cc   : > { %11314 = vst [vmem:[#allocation63_spill] sm:$0xff] %v9968_v6  ;;  %v9970_v20 = vadd.f32 %v3816_v12, %v3524_v50  ;;  %v7455_v25 = vpop.f32.mrf.mxu0  ;;  %7618 = vmatmul.mubr.msk.bf16.gmra.mxu0 %vm874_vm1, %v9727_v53 }
 0x2cd   : > { %v7389_v24 = vpop.f32.mrf.mxu1  ;;  %7552 = vmatmul.mubr.msk.bf16.gmra.mxu1 %vm874_vm1, %v9975_v49  ;;  %7689 = vmatprep.mubr.msk.bf16.mxu0 %vm874_vm1, %v9424_v30 }
 0x2ce   : > { %11315 = vst [vmem:[#allocation64_spill] sm:$0xff] %v9970_v20  ;;  %v9981_v18 = vadd.f32 %v7455_v25, %v7389_v24  ;;  %v3829_v43 = vpop.f32.mrf.mxu0  ;;  %7623 = vmatprep.mubr.msk.bf16.mxu1 %vm874_vm1, %v8087_v32  ;;  %v8088_v24 = vld [vmem:[%s8228_s14 + $0x8] sm:$0xff]  }
 0x2cf   : > { %v3537_v50 = vpop.f32.mrf.mxu1 }
 0x2d0   : > { %v9985_v57 = vadd.f32 %v3829_v43, %v3537_v50  ;;  %v7456_v53 = vpop.f32.mrf.mxu0  ;;  %v8089_v50 = vld [vmem:[%s8228_s14 + $0x10] sm:$0xff]  }
 0x2d1   : > { %v7390_v12 = vpop.f32.mrf.mxu1 }
 0x2d2   : > { %v9987_v20 = vadd.f32 %v7456_v53, %v7390_v12  ;;  %v3832_v6 = vpop.f32.mrf.mxu0 }
 0x2d3   : > { %v3540_v49 = vpop.f32.mrf.mxu1 }
 0x2d4   : > { %11317 = vst [vmem:[#allocation66_spill] sm:$0xff] %v9987_v20  ;;  %v9989_v34 = vadd.f32 %v3832_v6, %v3540_v49  ;;  %v7459_v30 = vpop.f32.mrf.mxu0  ;;  %7690 = vmatmul.mubr.msk.bf16.vlgmr.msra.gmra.mxu0 %vm874_vm1, %v9447_v31 }
 0x2d5   : > { %v7393_v25 = vpop.f32.mrf.mxu1  ;;  %7624 = vmatmul.mubr.msk.bf16.vlgmr.msra.gmra.mxu1 %vm874_vm1, %v8088_v24  ;;  %7693 = vmatprep.mubr.msk.bf16.mxu0 %vm874_vm1, %v9455_v60 }
 0x2d6   : > { %11318 = vst [vmem:[#allocation67_spill] sm:$0xff] %v9989_v34  ;;  %v9997_v43 = vadd.f32 %v7459_v30, %v7393_v25  ;;  %v3845_v32 = vpop.f32.mrf.mxu0  ;;  %7627 = vmatprep.mubr.msk.bf16.mxu1 %vm874_vm1, %v8089_v50  ;;  %v8090_v25 = vld [vmem:[%s8228_s14 + $0x18] sm:$0xff]  }
 0x2d7   : > { %v3553_v49 = vpop.f32.mrf.mxu1 }
 0x2d8   : > { %v10001_v6 = vadd.f32 %v3845_v32, %v3553_v49  ;;  %v7460_v53 = vpop.f32.mrf.mxu0  ;;  %v8091_v49 = vld [vmem:[%s8228_s14 + $0x20] sm:$0xff]  }
 0x2d9   : > { %v7394_v31 = vpop.f32.mrf.mxu1 }
 0x2da   : > { %v10003_v12 = vadd.f32 %v7460_v53, %v7394_v31  ;;  %v3848_v34 = vpop.f32.mrf.mxu0 }
 0x2db   : > { %v3556_v24 = vpop.f32.mrf.mxu1 }
 0x2dc   : > { %11319 = vst [vmem:[#allocation68_spill] sm:$0xff] %v10003_v12  ;;  %v10005_v20 = vadd.f32 %v3848_v34, %v3556_v24  ;;  %v7463_v60 = vpop.f32.mrf.mxu0  ;;  %7694 = vmatmul.mubr.msk.bf16.gmra.mxu0 %vm874_vm1, %v9467_v51 }
 0x2dd   : > { %v7397_v30 = vpop.f32.mrf.mxu1  ;;  %7628 = vmatmul.mubr.msk.bf16.gmra.mxu1 %vm874_vm1, %v8090_v25  ;;  %7697 = vmatprep.mubr.msk.bf16.mxu0 %vm874_vm1, %v9475_v13 }
 0x2de   : > { %11320 = vst [vmem:[#allocation69_spill] sm:$0xff] %v10005_v20  ;;  %v10013_v32 = vadd.f32 %v7463_v60, %v7397_v30  ;;  %v3861_v50 = vpop.f32.mrf.mxu0  ;;  %7631 = vmatprep.mubr.msk.bf16.mxu1 %vm874_vm1, %v8091_v49  ;;  %v8092_v30 = vld [vmem:[%s8228_s14 + $0x28] sm:$0xff]  }
 0x2df   : > { %v3569_v34 = vpop.f32.mrf.mxu1 }
 0x2e0   : > { %v10017_v53 = vadd.f32 %v3861_v50, %v3569_v34  ;;  %v7464_v31 = vpop.f32.mrf.mxu0  ;;  %v8093_v34 = vld [vmem:[%s8228_s14 + $0x30] sm:$0xff]  }
 0x2e1   : > { %v7398_v51 = vpop.f32.mrf.mxu1 }
 0x2e2   : > { %v10019_v24 = vadd.f32 %v7464_v31, %v7398_v51  ;;  %v3864_v20 = vpop.f32.mrf.mxu0 }
 0x2e3   : > { %v3572_v25 = vpop.f32.mrf.mxu1 }
 0x2e4   : > { %11321 = vst [vmem:[#allocation70_spill] sm:$0xff] %v10019_v24  ;;  %v10021_v12 = vadd.f32 %v3864_v20, %v3572_v25  ;;  %v7467_v13 = vpop.f32.mrf.mxu0  ;;  %7698 = vmatmul.mubr.msk.bf16.gmra.mxu0 %vm874_vm1, %v9487_v40 }
 0x2e5   : > { %v7401_v60 = vpop.f32.mrf.mxu1  ;;  %7632 = vmatmul.mubr.msk.bf16.gmra.mxu1 %vm874_vm1, %v8092_v30  ;;  %7701 = vmatprep.mubr.msk.bf16.mxu0 %vm874_vm1, %v9495_v23 }
 0x2e6   : > { %11322 = vst [vmem:[#allocation71_spill] sm:$0xff] %v10021_v12  ;;  %v10029_v50 = vadd.f32 %v7467_v13, %v7401_v60  ;;  %v3877_v49 = vpop.f32.mrf.mxu0  ;;  %7635 = vmatprep.mubr.msk.bf16.mxu1 %vm874_vm1, %v8093_v34  ;;  %v8094_v60 = vld [vmem:[%s8228_s14 + $0x38] sm:$0xff]  }
 0x2e7   : > { %v3585_v20 = vpop.f32.mrf.mxu1 }
 0x2e8   : > { %v10033_v31 = vadd.f32 %v3877_v49, %v3585_v20  ;;  %v7468_v51 = vpop.f32.mrf.mxu0  ;;  %v8095_v20 = vld [vmem:[%s8228_s14 + $0x40] sm:$0xff]  }
 0x2e9   : > { %v7402_v40 = vpop.f32.mrf.mxu1 }
 0x2ea   : > { %v10035_v25 = vadd.f32 %v7468_v51, %v7402_v40  ;;  %v3880_v12 = vpop.f32.mrf.mxu0 }
 0x2eb   : > { %v3588_v30 = vpop.f32.mrf.mxu1 }
 0x2ec   : > { %11323 = vst [vmem:[#allocation72_spill] sm:$0xff] %v10035_v25  ;;  %v10037_v24 = vadd.f32 %v3880_v12, %v3588_v30  ;;  %v7471_v23 = vpop.f32.mrf.mxu0  ;;  %7702 = vmatmul.mubr.msk.bf16.gmra.mxu0 %vm874_vm1, %v9507_v3 }
 0x2ed   : > { %v7405_v13 = vpop.f32.mrf.mxu1  ;;  %7636 = vmatmul.mubr.msk.bf16.gmra.mxu1 %vm874_vm1, %v8094_v60  ;;  %7705 = vmatprep.mubr.msk.bf16.mxu0 %vm874_vm1, %v9515_v19 }
 0x2ee   : > { %11324 = vst [vmem:[#allocation73_spill] sm:$0xff] %v10037_v24  ;;  %v10045_v49 = vadd.f32 %v7471_v23, %v7405_v13  ;;  %v3893_v34 = vpop.f32.mrf.mxu0  ;;  %7639 = vmatprep.mubr.msk.bf16.mxu1 %vm874_vm1, %v8095_v20  ;;  %v8096_v13 = vld [vmem:[%s8228_s14 + $0x48] sm:$0xff]  }
 0x2ef   : > { %v3601_v12 = vpop.f32.mrf.mxu1 }
 0x2f0   : > { %v10049_v51 = vadd.f32 %v3893_v34, %v3601_v12  ;;  %v7472_v40 = vpop.f32.mrf.mxu0  ;;  %v8097_v12 = vld [vmem:[%s8228_s14 + $0x50] sm:$0xff]  }
 0x2f1   : > { %v7406_v3 = vpop.f32.mrf.mxu1 }
 0x2f2   : > { %v10051_v30 = vadd.f32 %v7472_v40, %v7406_v3  ;;  %v3896_v24 = vpop.f32.mrf.mxu0 }
 0x2f3   : > { %v3604_v60 = vpop.f32.mrf.mxu1 }
 0x2f4   : > { %11325 = vst [vmem:[#allocation74_spill] sm:$0xff] %v10051_v30  ;;  %v10053_v25 = vadd.f32 %v3896_v24, %v3604_v60  ;;  %v7475_v19 = vpop.f32.mrf.mxu0  ;;  %7706 = vmatmul.mubr.msk.bf16.gmra.mxu0 %vm874_vm1, %v9527_v52 }
 0x2f5   : > { %v7409_v23 = vpop.f32.mrf.mxu1  ;;  %7640 = vmatmul.mubr.msk.bf16.gmra.mxu1 %vm874_vm1, %v8096_v13  ;;  %7709 = vmatprep.mubr.msk.bf16.mxu0 %vm874_vm1, %v9535_v35 }
 0x2f6   : > { %11326 = vst [vmem:[#allocation75_spill] sm:$0xff] %v10053_v25  ;;  %v10061_v34 = vadd.f32 %v7475_v19, %v7409_v23  ;;  %v3909_v20 = vpop.f32.mrf.mxu0  ;;  %7643 = vmatprep.mubr.msk.bf16.mxu1 %vm874_vm1, %v8097_v12  ;;  %v8098_v23 = vld [vmem:[%s8228_s14 + $0x58] sm:$0xff]  }
 0x2f7   : > { %v3617_v24 = vpop.f32.mrf.mxu1 }
 0x2f8   : > { %v10065_v40 = vadd.f32 %v3909_v20, %v3617_v24  ;;  %v7476_v3 = vpop.f32.mrf.mxu0  ;;  %v8099_v24 = vld [vmem:[%s8228_s14 + $0x60] sm:$0xff]  }
 0x2f9   : > { %v7410_v52 = vpop.f32.mrf.mxu1 }
 0x2fa   : > { %v10067_v60 = vadd.f32 %v7476_v3, %v7410_v52  ;;  %v3912_v25 = vpop.f32.mrf.mxu0 }
 0x2fb   : > { %v3620_v13 = vpop.f32.mrf.mxu1 }
 0x2fc   : > { %11327 = vst [vmem:[#allocation76_spill] sm:$0xff] %v10067_v60  ;;  %v10069_v30 = vadd.f32 %v3912_v25, %v3620_v13  ;;  %v7479_v35 = vpop.f32.mrf.mxu0  ;;  %7710 = vmatmul.mubr.msk.bf16.gmra.mxu0 %vm874_vm1, %v9547_v15 }
 0x2fd   : > { %v7413_v19 = vpop.f32.mrf.mxu1  ;;  %7644 = vmatmul.mubr.msk.bf16.gmra.mxu1 %vm874_vm1, %v8098_v23  ;;  %7713 = vmatprep.mubr.msk.bf16.mxu0 %vm874_vm1, %v9555_v29 }
 0x2fe   : > { %11328 = vst [vmem:[#allocation77_spill] sm:$0xff] %v10069_v30  ;;  %v10077_v20 = vadd.f32 %v7479_v35, %v7413_v19  ;;  %v3925_v12 = vpop.f32.mrf.mxu0  ;;  %7647 = vmatprep.mubr.msk.bf16.mxu1 %vm874_vm1, %v8099_v24  ;;  %v8100_v19 = vld [vmem:[%s8228_s14 + $0x68] sm:$0xff]  }
 0x2ff   : > { %v3633_v25 = vpop.f32.mrf.mxu1 }
 0x300   : > { %v10081_v3 = vadd.f32 %v3925_v12, %v3633_v25  ;;  %v7480_v52 = vpop.f32.mrf.mxu0  ;;  %v8101_v25 = vld [vmem:[%s8228_s14 + $0x70] sm:$0xff]  }
 0x301   : > { %v7414_v15 = vpop.f32.mrf.mxu1 }
 0x302   : > { %v10083_v13 = vadd.f32 %v7480_v52, %v7414_v15  ;;  %v3928_v30 = vpop.f32.mrf.mxu0 }
 0x303   : > { %v3636_v23 = vpop.f32.mrf.mxu1 }
 0x304   : > { %11329 = vst [vmem:[#allocation78_spill] sm:$0xff] %v10083_v13  ;;  %v10085_v60 = vadd.f32 %v3928_v30, %v3636_v23  ;;  %v7483_v29 = vpop.f32.mrf.mxu0  ;;  %7714 = vmatmul.mubr.msk.bf16.gmra.mxu0 %vm874_vm1, %v9567_v0 }
 0x305   : > { %v7417_v35 = vpop.f32.mrf.mxu1  ;;  %7648 = vmatmul.mubr.msk.bf16.gmra.mxu1 %vm874_vm1, %v8100_v19  ;;  %7717 = vmatprep.mubr.msk.bf16.mxu0 %vm874_vm1, %v9575_v47 }
 0x306   : > { %11330 = vst [vmem:[#allocation79_spill] sm:$0xff] %v10085_v60  ;;  %v10093_v12 = vadd.f32 %v7483_v29, %v7417_v35  ;;  %v3941_v24 = vpop.f32.mrf.mxu0  ;;  %7651 = vmatprep.mubr.msk.bf16.mxu1 %vm874_vm1, %v8101_v25  ;;  %v8102_v35 = vld [vmem:[%s8228_s14 + $0x78] sm:$0xff]  }
 0x307   : > { %v3649_v30 = vpop.f32.mrf.mxu1 }
 0x308   : > { %v10097_v52 = vadd.f32 %v3941_v24, %v3649_v30  ;;  %v7484_v15 = vpop.f32.mrf.mxu0  ;;  %v8103_v30 = vld [vmem:[%s8228_s14 + $0x80] sm:$0xff]  }
 0x309   : > { %v7418_v0 = vpop.f32.mrf.mxu1 }
 0x30a   : > { %v10099_v23 = vadd.f32 %v7484_v15, %v7418_v0  ;;  %v3944_v60 = vpop.f32.mrf.mxu0 }
 0x30b   : > { %v3652_v19 = vpop.f32.mrf.mxu1 }
 0x30c   : > { %11331 = vst [vmem:[#allocation80_spill] sm:$0xff] %v10099_v23  ;;  %v10101_v13 = vadd.f32 %v3944_v60, %v3652_v19  ;;  %v7487_v47 = vpop.f32.mrf.mxu0  ;;  %7718 = vmatmul.mubr.msk.bf16.gmra.mxu0 %vm874_vm1, %v9587_v48 }
 0x30d   : > { %v7421_v29 = vpop.f32.mrf.mxu1  ;;  %7652 = vmatmul.mubr.msk.bf16.gmra.mxu1 %vm874_vm1, %v8102_v35  ;;  %7721 = vmatprep.mubr.msk.bf16.mxu0 %vm874_vm1, %v9595_v4 }
 0x30e   : > { %11332 = vst [vmem:[#allocation81_spill] sm:$0xff] %v10101_v13  ;;  %v10109_v24 = vadd.f32 %v7487_v47, %v7421_v29  ;;  %v3957_v25 = vpop.f32.mrf.mxu0  ;;  %7655 = vmatprep.mubr.msk.bf16.mxu1 %vm874_vm1, %v8103_v30  ;;  %v8104_v29 = vld [vmem:[%s8228_s14 + $0x88] sm:$0xff]  }
 0x30f   : > { %v3665_v60 = vpop.f32.mrf.mxu1 }
 0x310   : > { %v10113_v15 = vadd.f32 %v3957_v25, %v3665_v60  ;;  %v7488_v0 = vpop.f32.mrf.mxu0  ;;  %v8105_v60 = vld [vmem:[%s8228_s14 + $0x90] sm:$0xff]  }
 0x311   : > { %v7422_v48 = vpop.f32.mrf.mxu1 }
 0x312   : > { %v10115_v19 = vadd.f32 %v7488_v0, %v7422_v48  ;;  %v3960_v13 = vpop.f32.mrf.mxu0 }
 0x313   : > { %v3668_v35 = vpop.f32.mrf.mxu1 }
 0x314   : > { %v10117_v23 = vadd.f32 %v3960_v13, %v3668_v35  ;;  %v10119_v4 = vpop.f32.mrf.mxu0  ;;  %7722 = vmatmul.mubr.msk.bf16.gmra.mxu0 %vm874_vm1, %v9607_v14 }
 0x315   : > { %11333 = vst [vmem:[#allocation82_spill] sm:$0xff] %v10119_v4  ;;  %v7493_v47 = vpop.f32.mrf.mxu1  ;;  %7656 = vmatmul.mubr.msk.bf16.gmra.mxu1 %vm874_vm1, %v8104_v29  ;;  %7725 = vmatprep.mubr.msk.bf16.mxu0 %vm874_vm1, %v9615_v28 }
 0x316   : > { %v4268_v25 = vadd.f32 %v7493_v47, %v9863_v56  ;;  %v10128_v30 = vpop.f32.mrf.mxu0  ;;  %7659 = vmatprep.mubr.msk.bf16.mxu1 %vm874_vm1, %v8105_v60  ;;  %v8106_v60 = vld [vmem:[%s8228_s14 + $0x98] sm:$0xff]  }
 0x317   : > { %11334 = vst [vmem:[#allocation83_spill] sm:$0xff] %v10128_v30  ;;  %v4011_v13 = vpop.f32.mrf.mxu1 }
 0x318   : > { %v10133_v0 = vadd.f32 %v4011_v13, %v9867_v45  ;;  %v10135_v14 = vpop.f32.mrf.mxu0  ;;  %v4398_v56 = vrot.slane %v4268_v25, 1 }
 0x319   : > { %v7494_v48 = vpop.f32.mrf.mxu1 }
 0x31a   : > { %v4269_v35 = vadd.f32 %v7494_v48, %v9869_v1  ;;  %v10138_v29 = vpop.f32.mrf.mxu0  ;;  %v11183_v1 = vrot.slane %v10133_v0, 1 }
 0x31b   : > { %v4014_v28 = vpop.f32.mrf.mxu1 }
 0x31c   : > { %v4400_v47 = vrot.slane %v4269_v35, 1  ;;  %v4267_v30 = vadd.f32 %v4014_v28, %v9871_v36  ;;  %v10141_v4 = vpop.f32.mrf.mxu0  ;;  %7726 = vmatmul.mubr.msk.bf16.gmra.mxu0 %vm874_vm1, %v9627_v2  ;;  %v8107_v35 = vld [vmem:[%s8228_s14 + $0xa0] sm:$0xff]  }
 0x31d   : > { %11335 = vst [vmem:[#allocation84_spill] sm:$0xff] %v10141_v4  ;;  %v7497_v45 = vpop.f32.mrf.mxu1  ;;  %7660 = vmatmul.mubr.msk.bf16.gmra.mxu1 %vm874_vm1, %v8106_v60  ;;  %7729 = vmatprep.mubr.msk.bf16.mxu0 %vm874_vm1, %v9635_v26 }
 0x31e   : > { %v4401_v13 = vsel %vm4394_vm4, %v4398_v56, %v4400_v47  ;;  %v4396_v25 = vrot.slane %v4267_v30, 1  ;;  %v4272_v48 = vadd.f32 %v7497_v45, %v9879_v61  ;;  %v10152_v36 = vpop.f32.mrf.mxu0  ;;  %7663 = vmatprep.mubr.msk.bf16.mxu1 %vm874_vm1, %v8107_v35 }
 0x31f   : > { %v10157_v2 = vadd.f32 %v4401_v13, %v9287_v16  ;;  %v4027_v28 = vpop.f32.mrf.mxu1 }
 0x320   : > { %v4397_v26 = vsel %vm4394_vm4, %v11183_v1, %v4396_v25  ;;  %v4399_v60 = vsel %vm4394_vm4, %v4396_v25, %v4398_v56  ;;  %v4270_v30 = vadd.f32 %v4027_v28, %v9883_v38  ;;  %v10164_v4 = vpop.f32.mrf.mxu0  ;;  %v4406_v56 = vrot.slane %v4272_v48, 1  ;;  %v10190_v48 = vld [vmem:[%s8228_s14 + $0xd0] sm:$0xff]  }
 0x321   : > { %11336 = vst [vmem:[#allocation85_spill] sm:$0xff] %v10157_v2  ;;  %v10167_v61 = vadd.f32 %v4397_v26, %v9268_v21  ;;  %v10170_v45 = vadd.f32 %v4399_v60, %v9283_v46  ;;  %v7498_v16 = vpop.f32.mrf.mxu1  ;;  %v10180_v26 = vld [vmem:[%s8228_s14 + $0xc8] sm:$0xff]  }
 0x322   : > { %v4402_v13 = vrot.slane %v4270_v30, 1  ;;  %v4273_v35 = vadd.f32 %v7498_v16, %v9885_v11  ;;  %v10173_v1 = vpop.f32.mrf.mxu0  ;;  %v8109_v60 = vld [vmem:[%s8228_s14 + $0xa8] sm:$0xff]   ;;  %v8111_v16 = vld [vmem:[%s8228_s14 + $0xb0] sm:$0xff]  }
 0x323   : > { %v4030_v2 = vpop.f32.mrf.mxu1 }
 0x324   : > { %v4403_v38 = vsel %vm4394_vm4, %v4400_v47, %v4402_v13  ;;  %v4408_v25 = vrot.slane %v4273_v35, 1  ;;  %v4271_v21 = vadd.f32 %v4030_v2, %v9887_v9  ;;  %v10177_v28 = vpop.f32.mrf.mxu0  ;;  %7730 = vmatmul.mubr.msk.bf16.gmra.mxu0 %vm874_vm1, %v10180_v26 }
 0x325   : > { %11337 = vst [vmem:[#allocation86_spill] sm:$0xff] %v10177_v28  ;;  %v10185_v46 = vadd.f32 %v4403_v38, %v9302_v54  ;;  %v7501_v11 = vpop.f32.mrf.mxu1  ;;  %7664 = vmatmul.mubr.msk.bf16.gmra.mxu1 %vm874_vm1, %v8109_v60  ;;  %7733 = vmatprep.mubr.msk.bf16.mxu0 %vm874_vm1, %v10190_v48 }
 0x326   : > { %v4409_v9 = vsel %vm4394_vm4, %v4406_v56, %v4408_v25  ;;  %v4404_v47 = vrot.slane %v4271_v21, 1  ;;  %v4276_v2 = vadd.f32 %v7501_v11, %v9895_v58  ;;  %v10196_v30 = vpop.f32.mrf.mxu0  ;;  %7667 = vmatprep.mubr.msk.bf16.mxu1 %vm874_vm1, %v8111_v16 }
 0x327   : > { %11338 = vst [vmem:[#allocation87_spill] sm:$0xff] %v10185_v46  ;;  %v10201_v54 = vadd.f32 %v4409_v9, %v9325_v5  ;;  %v4043_v35 = vpop.f32.mrf.mxu1 }
 0x328   : > { %v4405_v38 = vsel %vm4394_vm4, %v4402_v13, %v4404_v47  ;;  %v4407_v60 = vsel %vm4394_vm4, %v4404_v47, %v4406_v56  ;;  %v4274_v46 = vadd.f32 %v4043_v35, %v9899_v7  ;;  %v10206_v28 = vpop.f32.mrf.mxu0  ;;  %v4414_v56 = vrot.slane %v4276_v2, 1  ;;  %v10232_v2 = vld [vmem:[%s8228_s14 + $0xe0] sm:$0xff]  }
 0x329   : > { %v10209_v58 = vadd.f32 %v4405_v38, %v9306_v62  ;;  %v10212_v21 = vadd.f32 %v4407_v60, %v9321_v37  ;;  %v7502_v11 = vpop.f32.mrf.mxu1  ;;  %v10222_v38 = vld [vmem:[%s8228_s14 + $0xd8] sm:$0xff]  }
 0x32a   : > { %v4410_v5 = vrot.slane %v4274_v46, 1  ;;  %v4277_v9 = vadd.f32 %v7502_v11, %v9901_v55  ;;  %v10215_v13 = vpop.f32.mrf.mxu0  ;;  %v8113_v46 = vld [vmem:[%s8228_s14 + $0xb8] sm:$0xff]  }
 0x32b   : > { %11339 = vst [vmem:[#allocation88_spill] sm:$0xff] %v10215_v13  ;;  %v4046_v16 = vpop.f32.mrf.mxu1 }
 0x32c   : > { %v4411_v7 = vsel %vm4394_vm4, %v4408_v25, %v4410_v5  ;;  %v4416_v47 = vrot.slane %v4277_v9, 1  ;;  %v4275_v62 = vadd.f32 %v4046_v16, %v9903_v59  ;;  %v10219_v35 = vpop.f32.mrf.mxu0  ;;  %7734 = vmatmul.mubr.msk.bf16.gmra.mxu0 %vm874_vm1, %v10222_v38  ;;  %v8115_v9 = vld [vmem:[%s8228_s14 + $0xc0] sm:$0xff]  }
 0x32d   : > { %11340 = vst [vmem:[#allocation89_spill] sm:$0xff] %v10219_v35  ;;  %v10227_v37 = vadd.f32 %v4411_v7, %v9340_v17  ;;  %v7505_v55 = vpop.f32.mrf.mxu1  ;;  %7668 = vmatmul.mubr.msk.bf16.gmra.mxu1 %vm874_vm1, %v8113_v46  ;;  %7737 = vmatprep.mubr.msk.bf16.mxu0 %vm874_vm1, %v10232_v2 }
 0x32e   : > { %v4417_v59 = vsel %vm4394_vm4, %v4414_v56, %v4416_v47  ;;  %v4412_v25 = vrot.slane %v4275_v62, 1  ;;  %v4280_v60 = vadd.f32 %v7505_v55, %v9911_v63  ;;  %v10238_v11 = vpop.f32.mrf.mxu0  ;;  %7671 = vmatprep.mubr.msk.bf16.mxu1 %vm874_vm1, %v8115_v9  ;;  %v11345_v62 = vld [vmem:[#allocation14_spill] sm:$0xff] }
 0x32f   : > { %11341 = vst [vmem:[#allocation90_spill] sm:$0xff] %v10227_v37  ;;  %11342 = vst [vmem:[#allocation91_spill] sm:$0xff] %v10238_v11  ;;  %v10243_v17 = vadd.f32 %v4417_v59, %v9363_v41  ;;  %v4059_v16 = vpop.f32.mrf.mxu1  ;;  %v11346_v59 = vld [vmem:[#allocation56_spill] sm:$0xff] }
 0x330   : > { %v4413_v7 = vsel %vm4394_vm4, %v4410_v5, %v4412_v25  ;;  %v4415_v46 = vsel %vm4394_vm4, %v4412_v25, %v4414_v56  ;;  %v4278_v37 = vadd.f32 %v4059_v16, %v9915_v44  ;;  %v10248_v35 = vpop.f32.mrf.mxu0  ;;  %v4422_v13 = vrot.slane %v4280_v60, 1  ;;  %v11348_v25 = vld [vmem:[#allocation57_spill] sm:$0xff] }
 0x331   : > { %11343 = vst [vmem:[#allocation92_spill] sm:$0xff] %v10243_v17  ;;  %11344 = vst [vmem:[#allocation93_spill] sm:$0xff] %v10248_v35  ;;  %v10251_v63 = vadd.f32 %v4413_v7, %v9344_v27  ;;  %v10254_v55 = vadd.f32 %v4415_v46, %v11345_v62  ;;  %v7506_v9 = vpop.f32.mrf.mxu1  ;;  %v10264_v27 = vld [vmem:[%s8228_s14 + $0xe8] sm:$0xff]   ;;  %v11350_v7 = vld [vmem:[#allocation15_spill] sm:$0xff] }
 0x332   : > { %v4418_v41 = vrot.slane %v4278_v37, 1  ;;  %v4281_v11 = vadd.f32 %v7506_v9, %v11346_v59  ;;  %v10257_v17 = vpop.f32.mrf.mxu0  ;;  %v10274_v60 = vld [vmem:[%s8228_s14 + $0xf0] sm:$0xff]   ;;  %v11353_v59 = vld [vmem:[#allocation24_spill] sm:$0xff] }
 0x333   : > { %11347 = vst [vmem:[#allocation14_spill] sm:$0xff] %v10257_v17  ;;  %v4062_v5 = vpop.f32.mrf.mxu1 }
 0x334   : > { %v4419_v56 = vsel %vm4394_vm4, %v4416_v47, %v4418_v41  ;;  %v4424_v44 = vrot.slane %v4281_v11, 1  ;;  %v4279_v16 = vadd.f32 %v4062_v5, %v11348_v25  ;;  %v10261_v35 = vpop.f32.mrf.mxu0  ;;  %7738 = vmatmul.mubr.msk.bf16.gmra.mxu0 %vm874_vm1, %v10264_v27 }
 0x335   : > { %11349 = vst [vmem:[#allocation56_spill] sm:$0xff] %v10261_v35  ;;  %v10269_v37 = vadd.f32 %v4419_v56, %v11350_v7  ;;  %v7509_v46 = vpop.f32.mrf.mxu1  ;;  %7672 = vmatmul.mubr.msk.bf16.gmra.mxu1 %vm874_vm1, %v10180_v26  ;;  %7741 = vmatprep.mubr.msk.bf16.mxu0 %vm874_vm1, %v10274_v60 }
 0x336   : > { %v4425_v47 = vsel %vm4394_vm4, %v4422_v13, %v4424_v44  ;;  %v4420_v11 = vrot.slane %v4279_v16, 1  ;;  %v4284_v62 = vadd.f32 %v7509_v46, %v9927_v33  ;;  %v10280_v9 = vpop.f32.mrf.mxu0  ;;  %7675 = vmatprep.mubr.msk.bf16.mxu1 %vm874_vm1, %v10190_v48  ;;  %v11356_v16 = vld [vmem:[#allocation17_spill] sm:$0xff]  ;;  %v11357_v46 = vld [vmem:[#allocation16_spill] sm:$0xff] }
 0x337   : > { %11351 = vst [vmem:[#allocation57_spill] sm:$0xff] %v10269_v37  ;;  %11352 = vst [vmem:[#allocation15_spill] sm:$0xff] %v10280_v9  ;;  %v10285_v5 = vadd.f32 %v4425_v47, %v11353_v59  ;;  %v4075_v56 = vpop.f32.mrf.mxu1  ;;  %v11358_v59 = vld [vmem:[#allocation58_spill] sm:$0xff] }
 0x338   : > { %v4421_v26 = vsel %vm4394_vm4, %v4418_v41, %v4420_v11  ;;  %v4423_v25 = vsel %vm4394_vm4, %v4420_v11, %v4422_v13  ;;  %v4282_v7 = vadd.f32 %v4075_v56, %v9931_v10  ;;  %v10290_v37 = vpop.f32.mrf.mxu0  ;;  %v4430_v17 = vrot.slane %v4284_v62, 1  ;;  %v11359_v11 = vld [vmem:[#allocation59_spill] sm:$0xff] }
 0x339   : > { %11354 = vst [vmem:[#allocation24_spill] sm:$0xff] %v10285_v5  ;;  %11355 = vst [vmem:[#allocation94_spill] sm:$0xff] %v10290_v37  ;;  %v10293_v33 = vadd.f32 %v4421_v26, %v11356_v16  ;;  %v10296_v9 = vadd.f32 %v4423_v25, %v11357_v46  ;;  %v7510_v48 = vpop.f32.mrf.mxu1  ;;  %v8118_v26 = vld [vmem:[%s8228_s14 + $0xf8] sm:$0xff]   ;;  %v11360_v25 = vld [vmem:[#allocation25_spill] sm:$0xff] }
 0x33a   : > { %v4426_v47 = vrot.slane %v4282_v7, 1  ;;  %v4285_v5 = vadd.f32 %v7510_v48, %v11358_v59  ;;  %v10299_v35 = vpop.f32.mrf.mxu0  ;;  %v8119_v46 = vld [vmem:[%s8323_s18] sm:$0xff]   ;;  %v11363_v59 = vld [vmem:[#allocation28_spill] sm:$0xff] }
 0x33b   : > { %v4078_v41 = vpop.f32.mrf.mxu1 }
 0x33c   : > { %v4427_v13 = vsel %vm4394_vm4, %v4424_v44, %v4426_v47  ;;  %v4432_v10 = vrot.slane %v4285_v5, 1  ;;  %v4283_v56 = vadd.f32 %v4078_v41, %v11359_v11  ;;  %v10303_v37 = vpop.f32.mrf.mxu0  ;;  %7742 = vmatmul.mubr.msk.bf16.gmra.mxu0 %vm874_vm1, %v8118_v26 }
 0x33d   : > { %v10308_v16 = vadd.f32 %v4427_v13, %v11360_v25  ;;  %v7513_v7 = vpop.f32.mrf.mxu1  ;;  %7676 = vmatmul.mubr.msk.bf16.gmra.mxu1 %vm874_vm1, %v10222_v38  ;;  %7745 = vmatprep.mubr.msk.bf16.mxu0 %vm874_vm1, %v8119_v46 }
 0x33e   : > { %v4433_v44 = vsel %vm4394_vm4, %v4430_v17, %v4432_v10  ;;  %v4428_v62 = vrot.slane %v4283_v56, 1  ;;  %v4288_v5 = vadd.f32 %v7513_v7, %v9943_v8  ;;  %v10316_v48 = vpop.f32.mrf.mxu0  ;;  %7679 = vmatprep.mubr.msk.bf16.mxu1 %vm874_vm1, %v10232_v2  ;;  %v11366_v56 = vld [vmem:[#allocation26_spill] sm:$0xff]  ;;  %v11367_v7 = vld [vmem:[#allocation27_spill] sm:$0xff] }
 0x33f   : > { %11361 = vst [vmem:[#allocation17_spill] sm:$0xff] %v10308_v16  ;;  %11362 = vst [vmem:[#allocation16_spill] sm:$0xff] %v10316_v48  ;;  %v10321_v41 = vadd.f32 %v4433_v44, %v11363_v59  ;;  %v4091_v13 = vpop.f32.mrf.mxu1 }
 0x340   : > { %v4429_v11 = vsel %vm4394_vm4, %v4426_v47, %v4428_v62  ;;  %v4431_v38 = vsel %vm4394_vm4, %v4428_v62, %v4430_v17  ;;  %v4286_v25 = vadd.f32 %v4091_v13, %v9947_v39  ;;  %v10326_v46 = vpop.f32.mrf.mxu0  ;;  %v11368_v39 = vld [vmem:[#allocation60_spill] sm:$0xff] }
 0x341   : > { %11364 = vst [vmem:[#allocation58_spill] sm:$0xff] %v10321_v41  ;;  %11365 = vst [vmem:[#allocation59_spill] sm:$0xff] %v10326_v46  ;;  %v10329_v8 = vadd.f32 %v4429_v11, %v11366_v56  ;;  %v10332_v48 = vadd.f32 %v4431_v38, %v11367_v7  ;;  %v7514_v2 = vpop.f32.mrf.mxu1  ;;  %v4438_v41 = vrot.slane %v4288_v5, 1  ;;  %v8120_v11 = vld [vmem:[%s8323_s18 + $0x8] sm:$0xff]   ;;  %v11370_v38 = vld [vmem:[#allocation29_spill] sm:$0xff] }
 0x342   : > { %v4434_v16 = vrot.slane %v4286_v25, 1  ;;  %v4289_v44 = vadd.f32 %v7514_v2, %v9949_v22  ;;  %v10335_v59 = vpop.f32.mrf.mxu0  ;;  %v11372_v5 = vld [vmem:[#allocation61_spill] sm:$0xff] }
 0x343   : > { %v4094_v47 = vpop.f32.mrf.mxu1 }
 0x344   : > { %v4435_v17 = vsel %vm4394_vm4, %v4432_v10, %v4434_v16  ;;  %v4440_v62 = vrot.slane %v4289_v44, 1  ;;  %v4287_v13 = vadd.f32 %v4094_v47, %v11368_v39  ;;  %v10339_v46 = vpop.f32.mrf.mxu0  ;;  %7746 = vmatmul.mubr.msk.bf16.gmra.mxu0 %vm874_vm1, %v8120_v11  ;;  %v11374_v44 = vld [vmem:[#allocation32_spill] sm:$0xff]  ;;  %v11376_v11 = vld [vmem:[#allocation62_spill] sm:$0xff] }
 0x345   : > { %11369 = vst [vmem:[#allocation25_spill] sm:$0xff] %v10339_v46  ;;  %v10344_v56 = vadd.f32 %v4435_v17, %v11370_v38  ;;  %v7517_v25 = vpop.f32.mrf.mxu1  ;;  %7680 = vmatmul.mubr.msk.bf16.gmra.mxu1 %vm874_vm1, %v10264_v27  ;;  %7749 = vmatprep.mubr.msk.bf16.mxu0 %vm874_vm1, %v9962_v42  ;;  %v11380_v46 = vld [vmem:[#allocation63_spill] sm:$0xff] }
 0x346   : > { %v4441_v22 = vsel %vm4394_vm4, %v4438_v41, %v4440_v62  ;;  %v4436_v10 = vrot.slane %v4287_v13, 1  ;;  %v4292_v7 = vadd.f32 %v7517_v25, %v11372_v5  ;;  %v10352_v2 = vpop.f32.mrf.mxu0  ;;  %7683 = vmatprep.mubr.msk.bf16.mxu1 %vm874_vm1, %v10274_v60  ;;  %v11378_v13 = vld [vmem:[#allocation30_spill] sm:$0xff]  ;;  %v11379_v25 = vld [vmem:[#allocation31_spill] sm:$0xff] }
 0x347   : > { %11371 = vst [vmem:[#allocation28_spill] sm:$0xff] %v10344_v56  ;;  %11373 = vst [vmem:[#allocation26_spill] sm:$0xff] %v10352_v2  ;;  %v10357_v47 = vadd.f32 %v4441_v22, %v11374_v44  ;;  %v4107_v17 = vpop.f32.mrf.mxu1 }
 0x348   : > { %v4437_v39 = vsel %vm4394_vm4, %v4434_v16, %v4436_v10  ;;  %v4439_v27 = vsel %vm4394_vm4, %v4436_v10, %v4438_v41  ;;  %v4290_v42 = vadd.f32 %v4107_v17, %v11376_v11  ;;  %v10362_v38 = vpop.f32.mrf.mxu0  ;;  %v4446_v16 = vrot.slane %v4292_v7, 1  ;;  %v11381_v17 = vld [vmem:[#allocation64_spill] sm:$0xff] }
 0x349   : > { %11375 = vst [vmem:[#allocation27_spill] sm:$0xff] %v10357_v47  ;;  %11377 = vst [vmem:[#allocation60_spill] sm:$0xff] %v10362_v38  ;;  %v10365_v56 = vadd.f32 %v4437_v39, %v11378_v13  ;;  %v10368_v5 = vadd.f32 %v4439_v27, %v11379_v25  ;;  %v7518_v2 = vpop.f32.mrf.mxu1  ;;  %v11383_v39 = vld [vmem:[#allocation65_spill] sm:$0xff]  ;;  %v11387_v25 = vld [vmem:[#allocation36_spill] sm:$0xff] }
 0x34a   : > { %v4442_v60 = vrot.slane %v4290_v42, 1  ;;  %v4293_v22 = vadd.f32 %v7518_v2, %v11380_v46  ;;  %v10371_v44 = vpop.f32.mrf.mxu0  ;;  %v11384_v27 = vld [vmem:[#allocation33_spill] sm:$0xff] }
 0x34b   : > { %v4110_v47 = vpop.f32.mrf.mxu1 }
 0x34c   : > { %v4443_v41 = vsel %vm4394_vm4, %v4440_v62, %v4442_v60  ;;  %v4448_v10 = vrot.slane %v4293_v22, 1  ;;  %v4291_v11 = vadd.f32 %v4110_v47, %v11381_v17  ;;  %v10375_v38 = vpop.f32.mrf.mxu0  ;;  %7750 = vmatmul.mubr.msk.bf16.gmra.mxu0 %vm874_vm1, %v11383_v39 }
 0x34d   : > { %11382 = vst [vmem:[#allocation29_spill] sm:$0xff] %v10375_v38  ;;  %v10380_v13 = vadd.f32 %v4443_v41, %v11384_v27  ;;  %v7521_v42 = vpop.f32.mrf.mxu1  ;;  %7684 = vmatmul.mubr.msk.bf16.gmra.mxu1 %vm874_vm1, %v8118_v26  ;;  %v11390_v26 = vld [vmem:[#allocation34_spill] sm:$0xff] }
 0x34e   : > { %v4449_v46 = vsel %vm4394_vm4, %v4446_v16, %v4448_v10  ;;  %v4444_v2 = vrot.slane %v4291_v11, 1  ;;  %v4296_v7 = vadd.f32 %v7521_v42, %v9981_v18  ;;  %v10385_v62 = vpop.f32.mrf.mxu0  ;;  %v11391_v11 = vld [vmem:[#allocation35_spill] sm:$0xff] }
 0x34f   : > { %11385 = vst [vmem:[#allocation61_spill] sm:$0xff] %v10380_v13  ;;  %11386 = vst [vmem:[#allocation32_spill] sm:$0xff] %v10385_v62  ;;  %v10388_v47 = vadd.f32 %v4449_v46, %v11387_v25  ;;  %v4123_v22 = vpop.f32.mrf.mxu1  ;;  %v11392_v62 = vld [vmem:[#allocation66_spill] sm:$0xff] }
 0x350   : > { %v4445_v17 = vsel %vm4394_vm4, %v4442_v60, %v4444_v2  ;;  %v4447_v39 = vsel %vm4394_vm4, %v4444_v2, %v4446_v16  ;;  %v4294_v41 = vadd.f32 %v4123_v22, %v9985_v57  ;;  %v10393_v27 = vpop.f32.mrf.mxu0  ;;  %v4454_v60 = vrot.slane %v4296_v7, 1  ;;  %v11394_v57 = vld [vmem:[#allocation67_spill] sm:$0xff] }
 0x351   : > { %11388 = vst [vmem:[#allocation62_spill] sm:$0xff] %v10388_v47  ;;  %11389 = vst [vmem:[#allocation30_spill] sm:$0xff] %v10393_v27  ;;  %v10396_v13 = vadd.f32 %v4445_v17, %v11390_v26  ;;  %v10399_v38 = vadd.f32 %v4447_v39, %v11391_v11  ;;  %v7522_v18 = vpop.f32.mrf.mxu1  ;;  %v11396_v17 = vld [vmem:[#allocation37_spill] sm:$0xff] }
 0x352   : > { %v4450_v42 = vrot.slane %v4294_v41, 1  ;;  %v4297_v46 = vadd.f32 %v7522_v18, %v11392_v62  ;;  %v10402_v25 = vpop.f32.mrf.mxu0 }
 0x353   : > { %11393 = vst [vmem:[#allocation31_spill] sm:$0xff] %v10402_v25  ;;  %v4126_v47 = vpop.f32.mrf.mxu1  ;;  %v11399_v25 = vld [vmem:[#allocation40_spill] sm:$0xff] }
 0x354   : > { %v4451_v16 = vsel %vm4394_vm4, %v4448_v10, %v4450_v42  ;;  %v4456_v2 = vrot.slane %v4297_v46, 1  ;;  %v4295_v22 = vadd.f32 %v4126_v47, %v11394_v57  ;;  %v10406_v27 = vpop.f32.mrf.mxu0 }
 0x355   : > { %11395 = vst [vmem:[#allocation63_spill] sm:$0xff] %v10406_v27  ;;  %v10409_v26 = vadd.f32 %v4451_v16, %v11396_v17  ;;  %v7525_v39 = vpop.f32.mrf.mxu1  ;;  %v11402_v17 = vld [vmem:[#allocation38_spill] sm:$0xff] }
 0x356   : > { %v4457_v11 = vsel %vm4394_vm4, %v4454_v60, %v4456_v2  ;;  %v4452_v41 = vrot.slane %v4295_v22, 1  ;;  %v4300_v62 = vadd.f32 %v7525_v39, %v9997_v43  ;;  %v10413_v18 = vpop.f32.mrf.mxu0  ;;  %v11403_v22 = vld [vmem:[#allocation39_spill] sm:$0xff] }
 0x357   : > { %11397 = vst [vmem:[#allocation64_spill] sm:$0xff] %v10409_v26  ;;  %11398 = vst [vmem:[#allocation65_spill] sm:$0xff] %v10413_v18  ;;  %v10416_v7 = vadd.f32 %v4457_v11, %v11399_v25  ;;  %v4139_v10 = vpop.f32.mrf.mxu1  ;;  %v11404_v18 = vld [vmem:[#allocation68_spill] sm:$0xff] }
 0x358   : > { %v4453_v46 = vsel %vm4394_vm4, %v4450_v42, %v4452_v41  ;;  %v4455_v47 = vsel %vm4394_vm4, %v4452_v41, %v4454_v60  ;;  %v4298_v57 = vadd.f32 %v4139_v10, %v10001_v6  ;;  %v10421_v16 = vpop.f32.mrf.mxu0  ;;  %v4462_v42 = vrot.slane %v4300_v62, 1  ;;  %v11406_v6 = vld [vmem:[#allocation69_spill] sm:$0xff] }
 0x359   : > { %11400 = vst [vmem:[#allocation33_spill] sm:$0xff] %v10416_v7  ;;  %11401 = vst [vmem:[#allocation36_spill] sm:$0xff] %v10421_v16  ;;  %v10424_v26 = vadd.f32 %v4453_v46, %v11402_v17  ;;  %v10427_v27 = vadd.f32 %v4455_v47, %v11403_v22  ;;  %v7526_v43 = vpop.f32.mrf.mxu1  ;;  %v11408_v46 = vld [vmem:[#allocation41_spill] sm:$0xff] }
 0x35a   : > { %v4458_v39 = vrot.slane %v4298_v57, 1  ;;  %v4301_v25 = vadd.f32 %v7526_v43, %v11404_v18  ;;  %v10430_v11 = vpop.f32.mrf.mxu0 }
 0x35b   : > { %11405 = vst [vmem:[#allocation34_spill] sm:$0xff] %v10430_v11  ;;  %v4142_v7 = vpop.f32.mrf.mxu1  ;;  %v11411_v11 = vld [vmem:[#allocation18_spill] sm:$0xff] }
 0x35c   : > { %v4459_v60 = vsel %vm4394_vm4, %v4456_v2, %v4458_v39  ;;  %v4464_v41 = vrot.slane %v4301_v25, 1  ;;  %v4299_v10 = vadd.f32 %v4142_v7, %v11406_v6  ;;  %v10434_v16 = vpop.f32.mrf.mxu0 }
 0x35d   : > { %11407 = vst [vmem:[#allocation35_spill] sm:$0xff] %v10434_v16  ;;  %v10437_v17 = vadd.f32 %v4459_v60, %v11408_v46  ;;  %v7529_v47 = vpop.f32.mrf.mxu1  ;;  %v11414_v46 = vld [vmem:[#allocation19_spill] sm:$0xff] }
 0x35e   : > { %v4465_v22 = vsel %vm4394_vm4, %v4462_v42, %v4464_v41  ;;  %v4460_v57 = vrot.slane %v4299_v10, 1  ;;  %v4304_v18 = vadd.f32 %v7529_v47, %v10013_v32  ;;  %v10441_v43 = vpop.f32.mrf.mxu0  ;;  %v11415_v10 = vld [vmem:[#allocation42_spill] sm:$0xff] }
 0x35f   : > { %11409 = vst [vmem:[#allocation66_spill] sm:$0xff] %v10437_v17  ;;  %11410 = vst [vmem:[#allocation67_spill] sm:$0xff] %v10441_v43  ;;  %v10444_v62 = vadd.f32 %v4465_v22, %v11411_v11  ;;  %v4155_v2 = vpop.f32.mrf.mxu1  ;;  %v11416_v43 = vld [vmem:[#allocation70_spill] sm:$0xff] }
 0x360   : > { %v4461_v25 = vsel %vm4394_vm4, %v4458_v39, %v4460_v57  ;;  %v4463_v7 = vsel %vm4394_vm4, %v4460_v57, %v4462_v42  ;;  %v4302_v6 = vadd.f32 %v4155_v2, %v10017_v53  ;;  %v10449_v60 = vpop.f32.mrf.mxu0  ;;  %v4470_v39 = vrot.slane %v4304_v18, 1  ;;  %v11418_v53 = vld [vmem:[#allocation71_spill] sm:$0xff] }
 0x361   : > { %11412 = vst [vmem:[#allocation37_spill] sm:$0xff] %v10444_v62  ;;  %11413 = vst [vmem:[#allocation40_spill] sm:$0xff] %v10449_v60  ;;  %v10452_v17 = vadd.f32 %v4461_v25, %v11414_v46  ;;  %v10455_v16 = vadd.f32 %v4463_v7, %v11415_v10  ;;  %v7530_v32 = vpop.f32.mrf.mxu1  ;;  %v11420_v25 = vld [vmem:[#allocation43_spill] sm:$0xff] }
 0x362   : > { %v4466_v47 = vrot.slane %v4302_v6, 1  ;;  %v4305_v11 = vadd.f32 %v7530_v32, %v11416_v43  ;;  %v10458_v22 = vpop.f32.mrf.mxu0 }
 0x363   : > { %11417 = vst [vmem:[#allocation38_spill] sm:$0xff] %v10458_v22  ;;  %v4158_v62 = vpop.f32.mrf.mxu1  ;;  %v11423_v22 = vld [vmem:[#allocation46_spill] sm:$0xff] }
 0x364   : > { %v4467_v42 = vsel %vm4394_vm4, %v4464_v41, %v4466_v47  ;;  %v4472_v57 = vrot.slane %v4305_v11, 1  ;;  %v4303_v2 = vadd.f32 %v4158_v62, %v11418_v53  ;;  %v10462_v60 = vpop.f32.mrf.mxu0 }
 0x365   : > { %11419 = vst [vmem:[#allocation39_spill] sm:$0xff] %v10462_v60  ;;  %v10465_v46 = vadd.f32 %v4467_v42, %v11420_v25  ;;  %v7533_v7 = vpop.f32.mrf.mxu1  ;;  %v11426_v25 = vld [vmem:[#allocation44_spill] sm:$0xff] }
 0x366   : > { %v4473_v10 = vsel %vm4394_vm4, %v4470_v39, %v4472_v57  ;;  %v4468_v6 = vrot.slane %v4303_v2, 1  ;;  %v4308_v43 = vadd.f32 %v7533_v7, %v10029_v50  ;;  %v10469_v32 = vpop.f32.mrf.mxu0  ;;  %v11427_v2 = vld [vmem:[#allocation45_spill] sm:$0xff] }
 0x367   : > { %11421 = vst [vmem:[#allocation68_spill] sm:$0xff] %v10465_v46  ;;  %11422 = vst [vmem:[#allocation69_spill] sm:$0xff] %v10469_v32  ;;  %v10472_v18 = vadd.f32 %v4473_v10, %v11423_v22  ;;  %v4171_v41 = vpop.f32.mrf.mxu1  ;;  %v11428_v32 = vld [vmem:[#allocation72_spill] sm:$0xff] }
 0x368   : > { %v4469_v11 = vsel %vm4394_vm4, %v4466_v47, %v4468_v6  ;;  %v4471_v62 = vsel %vm4394_vm4, %v4468_v6, %v4470_v39  ;;  %v4306_v53 = vadd.f32 %v4171_v41, %v10033_v31  ;;  %v10477_v42 = vpop.f32.mrf.mxu0  ;;  %v4478_v47 = vrot.slane %v4308_v43, 1  ;;  %v11430_v31 = vld [vmem:[#allocation73_spill] sm:$0xff] }
 0x369   : > { %11424 = vst [vmem:[#allocation41_spill] sm:$0xff] %v10472_v18  ;;  %11425 = vst [vmem:[#allocation18_spill] sm:$0xff] %v10477_v42  ;;  %v10480_v46 = vadd.f32 %v4469_v11, %v11426_v25  ;;  %v10483_v60 = vadd.f32 %v4471_v62, %v11427_v2  ;;  %v7534_v50 = vpop.f32.mrf.mxu1  ;;  %v11432_v11 = vld [vmem:[#allocation47_spill] sm:$0xff] }
 0x36a   : > { %v4474_v7 = vrot.slane %v4306_v53, 1  ;;  %v4309_v22 = vadd.f32 %v7534_v50, %v11428_v32  ;;  %v10486_v10 = vpop.f32.mrf.mxu0 }
 0x36b   : > { %11429 = vst [vmem:[#allocation19_spill] sm:$0xff] %v10486_v10  ;;  %v4174_v18 = vpop.f32.mrf.mxu1  ;;  %v11435_v10 = vld [vmem:[#allocation50_spill] sm:$0xff] }
 0x36c   : > { %v4475_v39 = vsel %vm4394_vm4, %v4472_v57, %v4474_v7  ;;  %v4480_v6 = vrot.slane %v4309_v22, 1  ;;  %v4307_v41 = vadd.f32 %v4174_v18, %v11430_v31  ;;  %v10490_v42 = vpop.f32.mrf.mxu0 }
 0x36d   : > { %11431 = vst [vmem:[#allocation42_spill] sm:$0xff] %v10490_v42  ;;  %v10493_v25 = vadd.f32 %v4475_v39, %v11432_v11  ;;  %v7537_v62 = vpop.f32.mrf.mxu1  ;;  %v11438_v11 = vld [vmem:[#allocation48_spill] sm:$0xff] }
 0x36e   : > { %v4481_v2 = vsel %vm4394_vm4, %v4478_v47, %v4480_v6  ;;  %v4476_v53 = vrot.slane %v4307_v41, 1  ;;  %v4312_v32 = vadd.f32 %v7537_v62, %v10045_v49  ;;  %v10497_v50 = vpop.f32.mrf.mxu0  ;;  %v11439_v41 = vld [vmem:[#allocation49_spill] sm:$0xff] }
 0x36f   : > { %11433 = vst [vmem:[#allocation70_spill] sm:$0xff] %v10493_v25  ;;  %11434 = vst [vmem:[#allocation71_spill] sm:$0xff] %v10497_v50  ;;  %v10500_v43 = vadd.f32 %v4481_v2, %v11435_v10  ;;  %v4187_v57 = vpop.f32.mrf.mxu1  ;;  %v11440_v50 = vld [vmem:[#allocation74_spill] sm:$0xff] }
 0x370   : > { %v4477_v22 = vsel %vm4394_vm4, %v4474_v7, %v4476_v53  ;;  %v4479_v18 = vsel %vm4394_vm4, %v4476_v53, %v4478_v47  ;;  %v4310_v31 = vadd.f32 %v4187_v57, %v10049_v51  ;;  %v10505_v39 = vpop.f32.mrf.mxu0  ;;  %v4486_v7 = vrot.slane %v4312_v32, 1  ;;  %v11442_v51 = vld [vmem:[#allocation75_spill] sm:$0xff] }
 0x371   : > { %11436 = vst [vmem:[#allocation43_spill] sm:$0xff] %v10500_v43  ;;  %11437 = vst [vmem:[#allocation46_spill] sm:$0xff] %v10505_v39  ;;  %v10508_v25 = vadd.f32 %v4477_v22, %v11438_v11  ;;  %v10511_v42 = vadd.f32 %v4479_v18, %v11439_v41  ;;  %v7538_v49 = vpop.f32.mrf.mxu1  ;;  %v11444_v22 = vld [vmem:[#allocation51_spill] sm:$0xff] }
 0x372   : > { %v4482_v62 = vrot.slane %v4310_v31, 1  ;;  %v4313_v10 = vadd.f32 %v7538_v49, %v11440_v50  ;;  %v10514_v2 = vpop.f32.mrf.mxu0 }
 0x373   : > { %11441 = vst [vmem:[#allocation44_spill] sm:$0xff] %v10514_v2  ;;  %v4190_v43 = vpop.f32.mrf.mxu1  ;;  %v11447_v2 = vld [vmem:[#allocation20_spill] sm:$0xff] }
 0x374   : > { %v4483_v47 = vsel %vm4394_vm4, %v4480_v6, %v4482_v62  ;;  %v4488_v53 = vrot.slane %v4313_v10, 1  ;;  %v4311_v57 = vadd.f32 %v4190_v43, %v11442_v51  ;;  %v10518_v39 = vpop.f32.mrf.mxu0 }
 0x375   : > { %11443 = vst [vmem:[#allocation45_spill] sm:$0xff] %v10518_v39  ;;  %v10521_v11 = vadd.f32 %v4483_v47, %v11444_v22  ;;  %v7541_v18 = vpop.f32.mrf.mxu1  ;;  %v11450_v22 = vld [vmem:[#allocation52_spill] sm:$0xff] }
 0x376   : > { %v4489_v41 = vsel %vm4394_vm4, %v4486_v7, %v4488_v53  ;;  %v4484_v31 = vrot.slane %v4311_v57, 1  ;;  %v4316_v50 = vadd.f32 %v7541_v18, %v10061_v34  ;;  %v10525_v49 = vpop.f32.mrf.mxu0  ;;  %v11451_v57 = vld [vmem:[#allocation53_spill] sm:$0xff] }
 0x377   : > { %11445 = vst [vmem:[#allocation72_spill] sm:$0xff] %v10521_v11  ;;  %11446 = vst [vmem:[#allocation73_spill] sm:$0xff] %v10525_v49  ;;  %v10528_v32 = vadd.f32 %v4489_v41, %v11447_v2  ;;  %v4203_v6 = vpop.f32.mrf.mxu1  ;;  %v11452_v49 = vld [vmem:[#allocation76_spill] sm:$0xff] }
 0x378   : > { %v4485_v10 = vsel %vm4394_vm4, %v4482_v62, %v4484_v31  ;;  %v4487_v43 = vsel %vm4394_vm4, %v4484_v31, %v4486_v7  ;;  %v4314_v51 = vadd.f32 %v4203_v6, %v10065_v40  ;;  %v10533_v47 = vpop.f32.mrf.mxu0  ;;  %v4494_v62 = vrot.slane %v4316_v50, 1  ;;  %v11454_v40 = vld [vmem:[#allocation77_spill] sm:$0xff] }
 0x379   : > { %11448 = vst [vmem:[#allocation47_spill] sm:$0xff] %v10528_v32  ;;  %11449 = vst [vmem:[#allocation50_spill] sm:$0xff] %v10533_v47  ;;  %v10536_v11 = vadd.f32 %v4485_v10, %v11450_v22  ;;  %v10539_v39 = vadd.f32 %v4487_v43, %v11451_v57  ;;  %v7542_v34 = vpop.f32.mrf.mxu1  ;;  %v11456_v10 = vld [vmem:[#allocation21_spill] sm:$0xff] }
 0x37a   : > { %v4490_v18 = vrot.slane %v4314_v51, 1  ;;  %v4317_v2 = vadd.f32 %v7542_v34, %v11452_v49  ;;  %v10542_v41 = vpop.f32.mrf.mxu0 }
 0x37b   : > { %11453 = vst [vmem:[#allocation48_spill] sm:$0xff] %v10542_v41  ;;  %v4206_v32 = vpop.f32.mrf.mxu1  ;;  %v11459_v41 = vld [vmem:[#allocation22_spill] sm:$0xff] }
 0x37c   : > { %v4491_v7 = vsel %vm4394_vm4, %v4488_v53, %v4490_v18  ;;  %v4496_v31 = vrot.slane %v4317_v2, 1  ;;  %v4315_v6 = vadd.f32 %v4206_v32, %v11454_v40  ;;  %v10546_v47 = vpop.f32.mrf.mxu0 }
 0x37d   : > { %11455 = vst [vmem:[#allocation49_spill] sm:$0xff] %v10546_v47  ;;  %v10549_v22 = vadd.f32 %v4491_v7, %v11456_v10  ;;  %v7545_v43 = vpop.f32.mrf.mxu1  ;;  %v11462_v10 = vld [vmem:[#allocation23_spill] sm:$0xff] }
 0x37e   : > { %v4497_v57 = vsel %vm4394_vm4, %v4494_v62, %v4496_v31  ;;  %v4492_v51 = vrot.slane %v4315_v6, 1  ;;  %v4320_v49 = vadd.f32 %v7545_v43, %v10077_v20  ;;  %v10553_v34 = vpop.f32.mrf.mxu0  ;;  %v11463_v6 = vld [vmem:[#allocation3_spill] sm:$0xff] }
 0x37f   : > { %11457 = vst [vmem:[#allocation74_spill] sm:$0xff] %v10549_v22  ;;  %11458 = vst [vmem:[#allocation75_spill] sm:$0xff] %v10553_v34  ;;  %v10556_v50 = vadd.f32 %v4497_v57, %v11459_v41  ;;  %v4219_v53 = vpop.f32.mrf.mxu1  ;;  %v11464_v34 = vld [vmem:[#allocation78_spill] sm:$0xff] }
 0x380   : > { %v4493_v2 = vsel %vm4394_vm4, %v4490_v18, %v4492_v51  ;;  %v4495_v32 = vsel %vm4394_vm4, %v4492_v51, %v4494_v62  ;;  %v4318_v40 = vadd.f32 %v4219_v53, %v10081_v3  ;;  %v10561_v7 = vpop.f32.mrf.mxu0  ;;  %v4502_v18 = vrot.slane %v4320_v49, 1  ;;  %v11466_v3 = vld [vmem:[#allocation79_spill] sm:$0xff] }
 0x381   : > { %11460 = vst [vmem:[#allocation51_spill] sm:$0xff] %v10556_v50  ;;  %11461 = vst [vmem:[#allocation20_spill] sm:$0xff] %v10561_v7  ;;  %v10564_v22 = vadd.f32 %v4493_v2, %v11462_v10  ;;  %v10567_v47 = vadd.f32 %v4495_v32, %v11463_v6  ;;  %v7546_v20 = vpop.f32.mrf.mxu1  ;;  %v11468_v2 = vld [vmem:[#allocation2_spill] sm:$0xff] }
 0x382   : > { %v4498_v43 = vrot.slane %v4318_v40, 1  ;;  %v4321_v41 = vadd.f32 %v7546_v20, %v11464_v34  ;;  %v10570_v57 = vpop.f32.mrf.mxu0 }
 0x383   : > { %11465 = vst [vmem:[#allocation52_spill] sm:$0xff] %v10570_v57  ;;  %v4222_v50 = vpop.f32.mrf.mxu1  ;;  %v11471_v57 = vld [vmem:[#allocation4_spill] sm:$0xff] }
 0x384   : > { %v4499_v62 = vsel %vm4394_vm4, %v4496_v31, %v4498_v43  ;;  %v4504_v51 = vrot.slane %v4321_v41, 1  ;;  %v4319_v53 = vadd.f32 %v4222_v50, %v11466_v3  ;;  %v10574_v7 = vpop.f32.mrf.mxu0 }
 0x385   : > { %11467 = vst [vmem:[#allocation53_spill] sm:$0xff] %v10574_v7  ;;  %v10577_v10 = vadd.f32 %v4499_v62, %v11468_v2  ;;  %v7549_v32 = vpop.f32.mrf.mxu1  ;;  %v11474_v2 = vld [vmem:[#allocation5_spill] sm:$0xff] }
 0x386   : > { %v4505_v6 = vsel %vm4394_vm4, %v4502_v18, %v4504_v51  ;;  %v4500_v40 = vrot.slane %v4319_v53, 1  ;;  %v4324_v34 = vadd.f32 %v7549_v32, %v10093_v12  ;;  %v10581_v20 = vpop.f32.mrf.mxu0  ;;  %v11475_v53 = vld [vmem:[#allocation7_spill] sm:$0xff] }
 0x387   : > { %11469 = vst [vmem:[#allocation76_spill] sm:$0xff] %v10577_v10  ;;  %11470 = vst [vmem:[#allocation77_spill] sm:$0xff] %v10581_v20  ;;  %v10584_v49 = vadd.f32 %v4505_v6, %v11471_v57  ;;  %v4235_v31 = vpop.f32.mrf.mxu1  ;;  %v11476_v20 = vld [vmem:[#allocation80_spill] sm:$0xff] }
 0x388   : > { %v4501_v41 = vsel %vm4394_vm4, %v4498_v43, %v4500_v40  ;;  %v4503_v50 = vsel %vm4394_vm4, %v4500_v40, %v4502_v18  ;;  %v4322_v3 = vadd.f32 %v4235_v31, %v10097_v52  ;;  %v10589_v62 = vpop.f32.mrf.mxu0  ;;  %v4510_v43 = vrot.slane %v4324_v34, 1  ;;  %v11478_v52 = vld [vmem:[#allocation81_spill] sm:$0xff] }
 0x389   : > { %11472 = vst [vmem:[#allocation21_spill] sm:$0xff] %v10584_v49  ;;  %11473 = vst [vmem:[#allocation22_spill] sm:$0xff] %v10589_v62  ;;  %v10592_v10 = vadd.f32 %v4501_v41, %v11474_v2  ;;  %v10595_v7 = vadd.f32 %v4503_v50, %v11475_v53  ;;  %v7550_v12 = vpop.f32.mrf.mxu1  ;;  %v11480_v41 = vld [vmem:[#allocation6_spill] sm:$0xff] }
 0x38a   : > { %v4506_v32 = vrot.slane %v4322_v3, 1  ;;  %v4325_v57 = vadd.f32 %v7550_v12, %v11476_v20  ;;  %v10598_v6 = vpop.f32.mrf.mxu0 }
 0x38b   : > { %11477 = vst [vmem:[#allocation23_spill] sm:$0xff] %v10598_v6  ;;  %v4238_v49 = vpop.f32.mrf.mxu1  ;;  %v11483_v6 = vld [vmem:[#allocation8_spill] sm:$0xff] }
 0x38c   : > { %v4507_v18 = vsel %vm4394_vm4, %v4504_v51, %v4506_v32  ;;  %v4512_v40 = vrot.slane %v4325_v57, 1  ;;  %v4323_v31 = vadd.f32 %v4238_v49, %v11478_v52  ;;  %v10602_v62 = vpop.f32.mrf.mxu0 }
 0x38d   : > { %11479 = vst [vmem:[#allocation3_spill] sm:$0xff] %v10602_v62  ;;  %v10605_v2 = vadd.f32 %v4507_v18, %v11480_v41  ;;  %v7553_v50 = vpop.f32.mrf.mxu1  ;;  %v11486_v41 = vld [vmem:[#allocation9_spill] sm:$0xff] }
 0x38e   : > { %v4513_v53 = vsel %vm4394_vm4, %v4510_v43, %v4512_v40  ;;  %v4508_v3 = vrot.slane %v4323_v31, 1  ;;  %v4328_v20 = vadd.f32 %v7553_v50, %v10109_v24  ;;  %v10609_v12 = vpop.f32.mrf.mxu0  ;;  %v11488_v31 = vld [vmem:[#allocation11_spill] sm:$0xff] }
 0x38f   : > { %11481 = vst [vmem:[#allocation78_spill] sm:$0xff] %v10605_v2  ;;  %11482 = vst [vmem:[#allocation79_spill] sm:$0xff] %v10609_v12  ;;  %v10612_v34 = vadd.f32 %v4513_v53, %v11483_v6  ;;  %v4251_v51 = vpop.f32.mrf.mxu1 }
 0x390   : > { %v4509_v57 = vsel %vm4394_vm4, %v4506_v32, %v4508_v3  ;;  %v4511_v49 = vsel %vm4394_vm4, %v4508_v3, %v4510_v43  ;;  %v4326_v52 = vadd.f32 %v4251_v51, %v10113_v15  ;;  %v10617_v18 = vpop.f32.mrf.mxu0  ;;  %v4518_v32 = vrot.slane %v4328_v20, 1 }
 0x391   : > { %11484 = vst [vmem:[#allocation2_spill] sm:$0xff] %v10612_v34  ;;  %11485 = vst [vmem:[#allocation4_spill] sm:$0xff] %v10617_v18  ;;  %v10620_v2 = vadd.f32 %v4509_v57, %v11486_v41  ;;  %v10623_v62 = vadd.f32 %v4511_v49, %v11488_v31  ;;  %v7554_v24 = vpop.f32.mrf.mxu1  ;;  %v11491_v18 = vld [vmem:[#allocation10_spill] sm:$0xff]  ;;  %v11500_v34 = vld [vmem:[#allocation13_spill] sm:$0xff] }
 0x392   : > { %v4514_v50 = vrot.slane %v4326_v52, 1  ;;  %v4329_v6 = vadd.f32 %v7554_v24, %v10115_v19  ;;  %v10626_v53 = vpop.f32.mrf.mxu0  ;;  %v11493_v52 = vrot.slane %v10133_v0, 1  ;;  %v11494_v24 = vld [vmem:[#allocation82_spill] sm:$0xff] }
 0x393   : > { %11487 = vst [vmem:[#allocation5_spill] sm:$0xff] %v10620_v2  ;;  %11489 = vst [vmem:[#allocation7_spill] sm:$0xff] %v10623_v62  ;;  %v4254_v12 = vpop.f32.mrf.mxu1  ;;  %v11495_v62 = vld [vmem:[#allocation12_spill] sm:$0xff] }
 0x394   : > { %11490 = vst [vmem:[#allocation80_spill] sm:$0xff] %v10626_v53  ;;  %v4515_v43 = vsel %vm4394_vm4, %v4512_v40, %v4514_v50  ;;  %v4520_v3 = vrot.slane %v4329_v6, 1  ;;  %v4327_v15 = vadd.f32 %v4254_v12, %v10117_v23  ;;  %v7691_v51 = vpop.f32.mrf.mxu0  ;;  %v11497_v6 = vld [vmem:[#allocation55_spill] sm:$0xff] }
 0x395   : > { %v10631_v57 = vadd.f32 %v4515_v43, %v11491_v18  ;;  %v7625_v41 = vpop.f32.mrf.mxu1 }
 0x396   : > { %v4521_v49 = vsel %vm4394_vm4, %v4518_v32, %v4520_v3  ;;  %v4587_v19 = vsel %vm4394_vm4, %v4520_v3, %v11493_v52  ;;  %v4516_v31 = vrot.slane %v4327_v15, 1  ;;  %v4994_v53 = vadd.f32 %v7625_v41, %v11494_v24  ;;  %v5279_v20 = vpop.f32.mrf.mxu0  ;;  %v11502_v15 = vld [vmem:[#allocation54_spill] sm:$0xff] }
 0x397   : > { %11492 = vst [vmem:[#allocation81_spill] sm:$0xff] %v10631_v57  ;;  %v10639_v40 = vadd.f32 %v4521_v49, %v11495_v62  ;;  %v10642_v23 = vadd.f32 %v4587_v19, %v11497_v6  ;;  %v4985_v12 = vpop.f32.mrf.mxu1  ;;  %v11499_v57 = vld [vmem:[#allocation83_spill] sm:$0xff] }
 0x398   : > { %v4517_v18 = vsel %vm4394_vm4, %v4514_v50, %v4516_v31  ;;  %v4519_v43 = vsel %vm4394_vm4, %v4516_v31, %v4518_v32  ;;  %v4986_v2 = vadd.f32 %v4985_v12, %v11499_v57  ;;  %v7692_v0 = vpop.f32.mrf.mxu0  ;;  %v5536_v62 = vadd.f32 %v7691_v51, %v4994_v53 }
 0x399   : > { %11496 = vst [vmem:[#allocation6_spill] sm:$0xff] %v10639_v40  ;;  %11498 = vst [vmem:[#allocation8_spill] sm:$0xff] %v10642_v23  ;;  %v10648_v3 = vadd.f32 %v4517_v18, %v11500_v34  ;;  %v10651_v41 = vadd.f32 %v4519_v43, %v11502_v15  ;;  %v7626_v52 = vpop.f32.mrf.mxu1 }
 0x39a   : > { %v4997_v49 = vadd.f32 %v7626_v52, %v10135_v14  ;;  %v5282_v19 = vpop.f32.mrf.mxu0  ;;  %v10654_v24 = vadd.f32 %v5279_v20, %v4986_v2  ;;  %v5666_v12 = vrot.slane %v5536_v62, 2  ;;  %v10662_v2 = vld [vmem:[%s11179_s5] ss:$0 sm:$0xff]  ;;  %v11505_v52 = vld [vmem:[#allocation85_spill] sm:$0xff] }
 0x39b   : > { %11501 = vst [vmem:[#allocation9_spill] sm:$0xff] %v10648_v3  ;;  %11503 = vst [vmem:[#allocation11_spill] sm:$0xff] %v10651_v41  ;;  %v4988_v6 = vpop.f32.mrf.mxu1 }
 0x39c   : > { %v5537_v50 = vadd.f32 %v7692_v0, %v4997_v49  ;;  %v4989_v32 = vadd.f32 %v4988_v6, %v10138_v29  ;;  %v7695_v31 = vpop.f32.mrf.mxu0  ;;  %v11184_v43 = vrot.slane %v10654_v24, 2  ;;  %v11504_v29 = vld [vmem:[#allocation84_spill] sm:$0xff] }
 0x39d   : > { %v7629_v57 = vpop.f32.mrf.mxu1 }
 0x39e   : > { %v5668_v34 = vrot.slane %v5537_v50, 2  ;;  %v5535_v18 = vadd.f32 %v5282_v19, %v4989_v32  ;;  %v5295_v3 = vpop.f32.mrf.mxu0  ;;  %v5010_v20 = vadd.f32 %v7629_v57, %v11504_v29  ;;  %v10670_v19 = vld [vmem:[%s11180_s6] ss:$0 sm:$0xff] }
 0x39f   : > { %v5001_v53 = vpop.f32.mrf.mxu1 }
 0x3a0   : > { %v5669_v14 = vsel %vm5662_vm5, %v5666_v12, %v5668_v34  ;;  %v5664_v51 = vrot.slane %v5535_v18, 2  ;;  %v5002_v0 = vadd.f32 %v5001_v53, %v10152_v36  ;;  %v7696_v15 = vpop.f32.mrf.mxu0 }
 0x3a1   : > { %v5858_v62 = vadd.f32 %v5669_v14, %v11505_v52  ;;  %v7630_v49 = vpop.f32.mrf.mxu1  ;;  %v5540_v52 = vadd.f32 %v7695_v31, %v5010_v20 }
 0x3a2   : > { %v5665_v6 = vsel %vm5662_vm5, %v11184_v43, %v5664_v51  ;;  %v5667_v50 = vsel %vm5662_vm5, %v5664_v51, %v5666_v12  ;;  %v5538_v32 = vadd.f32 %v5295_v3, %v5002_v0  ;;  %v5298_v18 = vpop.f32.mrf.mxu0  ;;  %v5013_v14 = vadd.f32 %v7630_v49, %v10164_v4 }
 0x3a3   : > { %v5929_v36 = vmul.f32 %v10662_v2, %v5858_v62  ;;  %v5856_v57 = vadd.f32 %v5665_v6, %v10167_v61  ;;  %v5857_v53 = vadd.f32 %v5667_v50, %v10170_v45  ;;  %v5004_v29 = vpop.f32.mrf.mxu1 }
 0x3a4   : > { %v5670_v41 = vrot.slane %v5538_v32, 2  ;;  %v5005_v23 = vadd.f32 %v5004_v29, %v10173_v1  ;;  %v7699_v40 = vpop.f32.mrf.mxu0  ;;  %v5541_v51 = vadd.f32 %v7696_v15, %v5013_v14  ;;  %v11506_v1 = vld [vmem:[#allocation86_spill] sm:$0xff]  ;;  %v11507_v15 = vld [vmem:[#allocation87_spill] sm:$0xff]  ;;  %v5674_v32 = vrot.slane %v5540_v52, 2 }
 0x3a5   : > { %v6000_v43 = vadd.f32 %v10670_v19, %v5929_v36  ;;  %v5927_v3 = vmul.f32 %v10662_v2, %v5856_v57  ;;  %v5928_v12 = vmul.f32 %v10662_v2, %v5857_v53  ;;  %v7633_v0 = vpop.f32.mrf.mxu1 }
 0x3a6   : > { %v5671_v4 = vsel %vm5662_vm5, %v5668_v34, %v5670_v41  ;;  %v5539_v61 = vadd.f32 %v5298_v18, %v5005_v23  ;;  %v5026_v45 = vadd.f32 %v7633_v0, %v11506_v1  ;;  %v5311_v31 = vpop.f32.mrf.mxu0  ;;  %v5676_v36 = vrot.slane %v5541_v51, 2 }
 0x3a7   : > { %v6064_v20 = vmax.f32 %v6000_v43, 0.0  ;;  %v5998_v62 = vadd.f32 %v10670_v19, %v5927_v3  ;;  %v5999_v49 = vadd.f32 %v10670_v19, %v5928_v12  ;;  %v5859_v6 = vadd.f32 %v5671_v4, %v11507_v15  ;;  %v5017_v50 = vpop.f32.mrf.mxu1 }
 0x3a8   : > { %v5672_v57 = vrot.slane %v5539_v61, 2  ;;  %v5018_v53 = vadd.f32 %v5017_v50, %v10196_v30  ;;  %v7700_v34 = vpop.f32.mrf.mxu0  ;;  %v5677_v29 = vsel %vm5662_vm5, %v5674_v32, %v5676_v36  ;;  %v5544_v52 = vadd.f32 %v7699_v40, %v5026_v45 }
 0x3a9   : > { %6129 = vst.msk [vmem:[%s10688_s23 + $0x10] sm:$0xff] %vm6126_vm6, %v6064_v20  ;;  %v6062_v23 = vmax.f32 %v5998_v62, 0.0  ;;  %v6063_v18 = vmax.f32 %v5999_v49, 0.0  ;;  %v5930_v43 = vmul.f32 %v10662_v2, %v5859_v6  ;;  %v7634_v14 = vpop.f32.mrf.mxu1  ;;  %v5862_v51 = vadd.f32 %v5677_v29, %v10201_v54  ;;  %v11508_v62 = vld [vmem:[#allocation88_spill] sm:$0xff] }
 0x3aa   : > { %v5673_v3 = vsel %vm5662_vm5, %v5670_v41, %v5672_v57  ;;  %v5675_v12 = vsel %vm5662_vm5, %v5672_v57, %v5674_v32  ;;  %v5314_v0 = vpop.f32.mrf.mxu0  ;;  %v5542_v20 = vadd.f32 %v5311_v31, %v5018_v53  ;;  %v5029_v41 = vadd.f32 %v7634_v14, %v10206_v28  ;;  %v11509_v57 = vld [vmem:[#allocation89_spill] sm:$0xff] }
 0x3ab   : > { %6127 = vst.msk [vmem:[%s10688_s23] sm:$0xff] %vm6126_vm6, %v6062_v23  ;;  %6128 = vst.msk [vmem:[%s10688_s23 + $0x8] sm:$0xff] %vm6126_vm6, %v6063_v18  ;;  %v6001_v30 = vadd.f32 %v10670_v19, %v5930_v43  ;;  %v5860_v4 = vadd.f32 %v5673_v3, %v10209_v58  ;;  %v5861_v61 = vadd.f32 %v5675_v12, %v10212_v21  ;;  %v5020_v1 = vpop.f32.mrf.mxu1  ;;  %v5682_v43 = vrot.slane %v5544_v52, 2 }
 0x3ac   : > { %v5021_v40 = vadd.f32 %v5020_v1, %v11508_v62  ;;  %v7703_v45 = vpop.f32.mrf.mxu0  ;;  %v5933_v15 = vmul.f32 %v10662_v2, %v5862_v51  ;;  %v5678_v32 = vrot.slane %v5542_v20, 2  ;;  %v10715_v58 = vadd.f32 %v7700_v34, %v5029_v41 }
 0x3ad   : > { %v6065_v49 = vmax.f32 %v6001_v30, 0.0  ;;  %v5931_v6 = vmul.f32 %v10662_v2, %v5860_v4  ;;  %v5932_v50 = vmul.f32 %v10662_v2, %v5861_v61  ;;  %v7637_v54 = vpop.f32.mrf.mxu1  ;;  %v11510_v61 = vld [vmem:[#allocation90_spill] sm:$0xff] }
 0x3ae   : > { %v5543_v21 = vadd.f32 %v5314_v0, %v5021_v40  ;;  %v5042_v23 = vadd.f32 %v7637_v54, %v11509_v57  ;;  %v5327_v31 = vpop.f32.mrf.mxu0  ;;  %v6004_v28 = vadd.f32 %v10670_v19, %v5933_v15  ;;  %v5679_v29 = vsel %vm5662_vm5, %v5676_v36, %v5678_v32 }
 0x3af   : > { %6130 = vst.msk [vmem:[%s10688_s23 + $0x18] sm:$0xff] %vm6126_vm6, %v6065_v49  ;;  %v6002_v53 = vadd.f32 %v10670_v19, %v5931_v6  ;;  %v6003_v18 = vadd.f32 %v10670_v19, %v5932_v50  ;;  %v5033_v14 = vpop.f32.mrf.mxu1  ;;  %v5684_v34 = vrot.slane %v10715_v58, 2  ;;  %v5863_v1 = vadd.f32 %v5679_v29, %v11510_v61 }
 0x3b0   : > { %v5680_v3 = vrot.slane %v5543_v21, 2  ;;  %v5548_v12 = vadd.f32 %v7703_v45, %v5042_v23  ;;  %v7704_v0 = vpop.f32.mrf.mxu0  ;;  %v6068_v30 = vmax.f32 %v6004_v28, 0.0  ;;  %v11511_v45 = vld [vmem:[#allocation92_spill] sm:$0xff]  ;;  %v11513_v21 = vld [vmem:[#allocation93_spill] sm:$0xff]  ;;  %v11514_v23 = vld [vmem:[#allocation14_spill] sm:$0xff] }
 0x3b1   : > { %v6066_v51 = vmax.f32 %v6002_v53, 0.0  ;;  %v6067_v4 = vmax.f32 %v6003_v18, 0.0  ;;  %v7638_v20 = vpop.f32.mrf.mxu1  ;;  %v5685_v41 = vsel %vm5662_vm5, %v5682_v43, %v5684_v34  ;;  %v5934_v36 = vmul.f32 %v10662_v2, %v5863_v1 }
 0x3b2   : > { %v5681_v52 = vsel %vm5662_vm5, %v5678_v32, %v5680_v3  ;;  %v5683_v62 = vsel %vm5662_vm5, %v5680_v3, %v5682_v43  ;;  %v5330_v40 = vpop.f32.mrf.mxu0  ;;  %6133 = vst.msk [vmem:[%s10688_s23 + $0x30] sm:$0xff] %vm6126_vm6, %v6068_v30  ;;  %v5866_v49 = vadd.f32 %v5685_v41, %v11511_v45  ;;  %v5690_v54 = vrot.slane %v5548_v12, 2  ;;  %v11512_v32 = vld [vmem:[#allocation91_spill] sm:$0xff] }
 0x3b3   : > { %6131 = vst.msk [vmem:[%s10688_s23 + $0x20] sm:$0xff] %vm6126_vm6, %v6066_v51  ;;  %6132 = vst.msk [vmem:[%s10688_s23 + $0x28] sm:$0xff] %vm6126_vm6, %v6067_v4  ;;  %v5864_v15 = vadd.f32 %v5681_v52, %v10251_v63  ;;  %v5865_v6 = vadd.f32 %v5683_v62, %v10254_v55  ;;  %v5036_v50 = vpop.f32.mrf.mxu1  ;;  %v5034_v58 = vadd.f32 %v5033_v14, %v11512_v32  ;;  %v11515_v51 = vld [vmem:[#allocation56_spill] sm:$0xff] }
 0x3b4   : > { %v5045_v57 = vadd.f32 %v7638_v20, %v11513_v21  ;;  %v5037_v28 = vadd.f32 %v5036_v50, %v11514_v23  ;;  %v7707_v53 = vpop.f32.mrf.mxu0  ;;  %v6005_v18 = vadd.f32 %v10670_v19, %v5934_v36  ;;  %v5937_v43 = vmul.f32 %v10662_v2, %v5866_v49 }
 0x3b5   : > { %v5935_v29 = vmul.f32 %v10662_v2, %v5864_v15  ;;  %v5936_v3 = vmul.f32 %v10662_v2, %v5865_v6  ;;  %v7641_v63 = vpop.f32.mrf.mxu1  ;;  %v5546_v55 = vadd.f32 %v5327_v31, %v5034_v58  ;;  %v11516_v6 = vld [vmem:[#allocation15_spill] sm:$0xff] }
 0x3b6   : > { %v5549_v30 = vadd.f32 %v7704_v0, %v5045_v57  ;;  %v5547_v12 = vadd.f32 %v5330_v40, %v5037_v28  ;;  %v5058_v14 = vadd.f32 %v7641_v63, %v11515_v51  ;;  %v5343_v4 = vpop.f32.mrf.mxu0  ;;  %v6069_v61 = vmax.f32 %v6005_v18, 0.0 }
 0x3b7   : > { %v6008_v1 = vadd.f32 %v10670_v19, %v5937_v43  ;;  %v6006_v20 = vadd.f32 %v10670_v19, %v5935_v29  ;;  %v6007_v41 = vadd.f32 %v10670_v19, %v5936_v3  ;;  %v5049_v52 = vpop.f32.mrf.mxu1  ;;  %v5686_v62 = vrot.slane %v5546_v55, 2  ;;  %v11518_v43 = vld [vmem:[#allocation24_spill] sm:$0xff] }
 0x3b8   : > { %v5692_v36 = vrot.slane %v5549_v30, 2  ;;  %v5688_v45 = vrot.slane %v5547_v12, 2  ;;  %v5552_v31 = vadd.f32 %v7707_v53, %v5058_v14  ;;  %v7708_v0 = vpop.f32.mrf.mxu0  ;;  %6134 = vst.msk [vmem:[%s10688_s23 + $0x38] sm:$0xff] %vm6126_vm6, %v6069_v61  ;;  %v5050_v50 = vadd.f32 %v5049_v52, %v11516_v6  ;;  %v11517_v53 = vld [vmem:[#allocation57_spill] sm:$0xff]  ;;  %v11519_v12 = vld [vmem:[#allocation94_spill] sm:$0xff] }
 0x3b9   : > { %v6072_v40 = vmax.f32 %v6008_v1, 0.0  ;;  %v6070_v49 = vmax.f32 %v6006_v20, 0.0  ;;  %v6071_v15 = vmax.f32 %v6007_v41, 0.0  ;;  %v7642_v32 = vpop.f32.mrf.mxu1  ;;  %v5687_v58 = vsel %vm5662_vm5, %v5684_v34, %v5686_v62 }
 0x3ba   : > { %v5693_v21 = vsel %vm5662_vm5, %v5690_v54, %v5692_v36  ;;  %v5689_v57 = vsel %vm5662_vm5, %v5686_v62, %v5688_v45  ;;  %v5691_v23 = vsel %vm5662_vm5, %v5688_v45, %v5690_v54  ;;  %v5346_v28 = vpop.f32.mrf.mxu0  ;;  %v5867_v18 = vadd.f32 %v5687_v58, %v11517_v53  ;;  %v11520_v53 = vld [vmem:[#allocation17_spill] sm:$0xff] }
 0x3bb   : > { %6137 = vst.msk [vmem:[%s10688_s23 + $0x50] sm:$0xff] %vm6126_vm6, %v6072_v40  ;;  %6135 = vst.msk [vmem:[%s10688_s23 + $0x40] sm:$0xff] %vm6126_vm6, %v6070_v49  ;;  %v5870_v29 = vadd.f32 %v5693_v21, %v11518_v43  ;;  %v5868_v3 = vadd.f32 %v5689_v57, %v10293_v33  ;;  %v5869_v34 = vadd.f32 %v5691_v23, %v10296_v9  ;;  %v5052_v63 = vpop.f32.mrf.mxu1  ;;  %v5698_v55 = vrot.slane %v5552_v31, 2 }
 0x3bc   : > { %6136 = vst.msk [vmem:[%s10688_s23 + $0x48] sm:$0xff] %vm6126_vm6, %v6071_v15  ;;  %v5550_v30 = vadd.f32 %v5343_v4, %v5050_v50  ;;  %v5061_v54 = vadd.f32 %v7642_v32, %v11519_v12  ;;  %v5053_v51 = vadd.f32 %v5052_v63, %v10299_v35  ;;  %v7711_v14 = vpop.f32.mrf.mxu0  ;;  %v5938_v61 = vmul.f32 %v10662_v2, %v5867_v18 }
 0x3bd   : > { %v5941_v1 = vmul.f32 %v10662_v2, %v5870_v29  ;;  %v5939_v20 = vmul.f32 %v10662_v2, %v5868_v3  ;;  %v5940_v41 = vmul.f32 %v10662_v2, %v5869_v34  ;;  %v7645_v52 = vpop.f32.mrf.mxu1  ;;  %v11521_v34 = vld [vmem:[#allocation58_spill] sm:$0xff] }
 0x3be   : > { %v5694_v33 = vrot.slane %v5550_v30, 2  ;;  %v10773_v62 = vadd.f32 %v7708_v0, %v5061_v54  ;;  %v5551_v9 = vadd.f32 %v5346_v28, %v5053_v51  ;;  %v5074_v4 = vadd.f32 %v7645_v52, %v10303_v37  ;;  %v5359_v45 = vpop.f32.mrf.mxu0 }
 0x3bf   : > { %v6009_v31 = vadd.f32 %v10670_v19, %v5938_v61  ;;  %v6012_v35 = vadd.f32 %v10670_v19, %v5941_v1  ;;  %v6010_v40 = vadd.f32 %v10670_v19, %v5939_v20  ;;  %v6011_v49 = vadd.f32 %v10670_v19, %v5940_v41  ;;  %v5065_v15 = vpop.f32.mrf.mxu1  ;;  %v11523_v61 = vld [vmem:[#allocation59_spill] sm:$0xff] }
 0x3c0   : > { %v5695_v6 = vsel %vm5662_vm5, %v5692_v36, %v5694_v33  ;;  %v5700_v0 = vrot.slane %v10773_v62, 2  ;;  %v5696_v50 = vrot.slane %v5551_v9, 2  ;;  %v5556_v37 = vadd.f32 %v7711_v14, %v5074_v4  ;;  %v7712_v32 = vpop.f32.mrf.mxu0  ;;  %v11522_v14 = vld [vmem:[#allocation16_spill] sm:$0xff] }
 0x3c1   : > { %v6073_v58 = vmax.f32 %v6009_v31, 0.0  ;;  %v6076_v21 = vmax.f32 %v6012_v35, 0.0  ;;  %v6074_v57 = vmax.f32 %v6010_v40, 0.0  ;;  %v6075_v23 = vmax.f32 %v6011_v49, 0.0  ;;  %v7646_v28 = vpop.f32.mrf.mxu1 }
 0x3c2   : > { %v5871_v18 = vadd.f32 %v5695_v6, %v11520_v53  ;;  %v5701_v43 = vsel %vm5662_vm5, %v5698_v55, %v5700_v0  ;;  %v5697_v29 = vsel %vm5662_vm5, %v5694_v33, %v5696_v50  ;;  %v5699_v36 = vsel %vm5662_vm5, %v5696_v50, %v5698_v55  ;;  %v5362_v3 = vpop.f32.mrf.mxu0  ;;  %v11524_v6 = vld [vmem:[#allocation25_spill] sm:$0xff] }
 0x3c3   : > { %6138 = vst.msk [vmem:[%s10688_s23 + $0x58] sm:$0xff] %vm6126_vm6, %v6073_v58  ;;  %6141 = vst.msk [vmem:[%s10688_s23 + $0x70] sm:$0xff] %vm6126_vm6, %v6076_v21  ;;  %v5874_v63 = vadd.f32 %v5701_v43, %v11521_v34  ;;  %v5872_v30 = vadd.f32 %v5697_v29, %v10329_v8  ;;  %v5873_v12 = vadd.f32 %v5699_v36, %v10332_v48  ;;  %v5068_v54 = vpop.f32.mrf.mxu1  ;;  %v5706_v9 = vrot.slane %v5556_v37, 2 }
 0x3c4   : > { %6139 = vst.msk [vmem:[%s10688_s23 + $0x60] sm:$0xff] %vm6126_vm6, %v6074_v57  ;;  %6140 = vst.msk [vmem:[%s10688_s23 + $0x68] sm:$0xff] %vm6126_vm6, %v6075_v23  ;;  %v5942_v51 = vmul.f32 %v10662_v2, %v5871_v18  ;;  %v5066_v55 = vadd.f32 %v5065_v15, %v11522_v14  ;;  %v5077_v1 = vadd.f32 %v7646_v28, %v11523_v61  ;;  %v7715_v41 = vpop.f32.mrf.mxu0 }
 0x3c5   : > { %v5069_v20 = vadd.f32 %v5068_v54, %v10335_v59  ;;  %v5945_v52 = vmul.f32 %v10662_v2, %v5874_v63  ;;  %v5943_v33 = vmul.f32 %v10662_v2, %v5872_v30  ;;  %v5944_v62 = vmul.f32 %v10662_v2, %v5873_v12  ;;  %v7649_v8 = vpop.f32.mrf.mxu1  ;;  %v11525_v30 = vld [vmem:[#allocation28_spill] sm:$0xff]  ;;  %v11526_v54 = vld [vmem:[#allocation27_spill] sm:$0xff] }
 0x3c6   : > { %v6013_v48 = vadd.f32 %v10670_v19, %v5942_v51  ;;  %v5554_v4 = vadd.f32 %v5359_v45, %v5066_v55  ;;  %v10805_v31 = vadd.f32 %v7712_v32, %v5077_v1  ;;  %v5375_v40 = vpop.f32.mrf.mxu0  ;;  %v5090_v50 = vadd.f32 %v7649_v8, %v11524_v6  ;;  %v11527_v1 = vld [vmem:[#allocation26_spill] sm:$0xff] }
 0x3c7   : > { %v5555_v35 = vadd.f32 %v5362_v3, %v5069_v20  ;;  %v6016_v49 = vadd.f32 %v10670_v19, %v5945_v52  ;;  %v6014_v59 = vadd.f32 %v10670_v19, %v5943_v33  ;;  %v6015_v15 = vadd.f32 %v10670_v19, %v5944_v62  ;;  %v5081_v58 = vpop.f32.mrf.mxu1 }
 0x3c8   : > { %v6077_v21 = vmax.f32 %v6013_v48, 0.0  ;;  %v5702_v37 = vrot.slane %v5554_v4, 2  ;;  %v5708_v45 = vrot.slane %v10805_v31, 2  ;;  %v7716_v57 = vpop.f32.mrf.mxu0  ;;  %v5560_v18 = vadd.f32 %v7715_v41, %v5090_v50  ;;  %v11528_v41 = vld [vmem:[#allocation60_spill] sm:$0xff] }
 0x3c9   : > { %v5704_v32 = vrot.slane %v5555_v35, 2  ;;  %v6080_v23 = vmax.f32 %v6016_v49, 0.0  ;;  %v6078_v28 = vmax.f32 %v6014_v59, 0.0  ;;  %v6079_v53 = vmax.f32 %v6015_v15, 0.0  ;;  %v7650_v43 = vpop.f32.mrf.mxu1  ;;  %v11529_v49 = vld [vmem:[#allocation29_spill] sm:$0xff] }
 0x3ca   : > { %6142 = vst.msk [vmem:[%s10688_s23 + $0x78] sm:$0xff] %vm6126_vm6, %v6077_v21  ;;  %v5703_v29 = vsel %vm5662_vm5, %v5700_v0, %v5702_v37  ;;  %v5709_v36 = vsel %vm5662_vm5, %v5706_v9, %v5708_v45  ;;  %v5378_v63 = vpop.f32.mrf.mxu0  ;;  %v5714_v61 = vrot.slane %v5560_v18, 2  ;;  %v5082_v20 = vadd.f32 %v5081_v58, %v11527_v1 }
 0x3cb   : > { %v5705_v3 = vsel %vm5662_vm5, %v5702_v37, %v5704_v32  ;;  %v5707_v34 = vsel %vm5662_vm5, %v5704_v32, %v5706_v9  ;;  %6145 = vst.msk [vmem:[%s10688_s23 + $0x90] sm:$0xff] %vm6126_vm6, %v6080_v23  ;;  %6143 = vst.msk [vmem:[%s10688_s23 + $0x80] sm:$0xff] %vm6126_vm6, %v6078_v28  ;;  %v5875_v12 = vadd.f32 %v5703_v29, %v11525_v30  ;;  %v5084_v55 = vpop.f32.mrf.mxu1 }
 0x3cc   : > { %6144 = vst.msk [vmem:[%s10688_s23 + $0x88] sm:$0xff] %vm6126_vm6, %v6079_v53  ;;  %v5878_v51 = vadd.f32 %v5709_v36, %v11526_v54  ;;  %v5876_v14 = vadd.f32 %v5705_v3, %v10365_v56  ;;  %v5877_v0 = vadd.f32 %v5707_v34, %v10368_v5  ;;  %v5093_v52 = vadd.f32 %v7650_v43, %v11528_v41  ;;  %v7719_v62 = vpop.f32.mrf.mxu0  ;;  %v11533_v41 = vld [vmem:[#allocation30_spill] sm:$0xff] }
 0x3cd   : > { %v5085_v33 = vadd.f32 %v5084_v55, %v10371_v44  ;;  %v5946_v9 = vmul.f32 %v10662_v2, %v5875_v12  ;;  %v7653_v56 = vpop.f32.mrf.mxu1  ;;  %v5558_v31 = vadd.f32 %v5375_v40, %v5082_v20  ;;  %v11530_v12 = vld [vmem:[#allocation61_spill] sm:$0xff] }
 0x3ce   : > { %v5949_v8 = vmul.f32 %v10662_v2, %v5878_v51  ;;  %v5947_v48 = vmul.f32 %v10662_v2, %v5876_v14  ;;  %v5948_v4 = vmul.f32 %v10662_v2, %v5877_v0  ;;  %v10835_v5 = vadd.f32 %v7716_v57, %v5093_v52  ;;  %v5391_v15 = vpop.f32.mrf.mxu0  ;;  %v11531_v51 = vld [vmem:[#allocation62_spill] sm:$0xff] }
 0x3cf   : > { %v5559_v35 = vadd.f32 %v5378_v63, %v5085_v33  ;;  %v5106_v59 = vadd.f32 %v7653_v56, %v11529_v49  ;;  %v6017_v6 = vadd.f32 %v10670_v19, %v5946_v9  ;;  %v5097_v21 = vpop.f32.mrf.mxu1  ;;  %v5710_v37 = vrot.slane %v5558_v31, 2  ;;  %v11534_v33 = vld [vmem:[#allocation31_spill] sm:$0xff] }
 0x3d0   : > { %v6020_v44 = vadd.f32 %v10670_v19, %v5949_v8  ;;  %v6018_v50 = vadd.f32 %v10670_v19, %v5947_v48  ;;  %v6019_v58 = vadd.f32 %v10670_v19, %v5948_v4  ;;  %v5716_v40 = vrot.slane %v10835_v5, 2  ;;  %v7720_v23 = vpop.f32.mrf.mxu0 }
 0x3d1   : > { %v5712_v32 = vrot.slane %v5559_v35, 2  ;;  %v5564_v57 = vadd.f32 %v7719_v62, %v5106_v59  ;;  %v6081_v28 = vmax.f32 %v6017_v6, 0.0  ;;  %v7654_v29 = vpop.f32.mrf.mxu1  ;;  %v5711_v36 = vsel %vm5662_vm5, %v5708_v45, %v5710_v37  ;;  %v11535_v35 = vld [vmem:[#allocation63_spill] sm:$0xff] }
 0x3d2   : > { %v6084_v53 = vmax.f32 %v6020_v44, 0.0  ;;  %v6082_v18 = vmax.f32 %v6018_v50, 0.0  ;;  %v6083_v43 = vmax.f32 %v6019_v58, 0.0  ;;  %v5717_v3 = vsel %vm5662_vm5, %v5714_v61, %v5716_v40  ;;  %v5394_v30 = vpop.f32.mrf.mxu0 }
 0x3d3   : > { %v5713_v34 = vsel %vm5662_vm5, %v5710_v37, %v5712_v32  ;;  %v5715_v63 = vsel %vm5662_vm5, %v5712_v32, %v5714_v61  ;;  %6146 = vst.msk [vmem:[%s10688_s23 + $0x98] sm:$0xff] %vm6126_vm6, %v6081_v28  ;;  %v5879_v54 = vadd.f32 %v5711_v36, %v11530_v12  ;;  %v5882_v14 = vadd.f32 %v5717_v3, %v11531_v51  ;;  %v5100_v55 = vpop.f32.mrf.mxu1  ;;  %v11532_v61 = vld [vmem:[#allocation32_spill] sm:$0xff]  ;;  %v11537_v51 = vld [vmem:[#allocation33_spill] sm:$0xff] }
 0x3d4   : > { %6149 = vst.msk [vmem:[%s10688_s23 + $0xb0] sm:$0xff] %vm6126_vm6, %v6084_v53  ;;  %6147 = vst.msk [vmem:[%s10688_s23 + $0xa0] sm:$0xff] %vm6126_vm6, %v6082_v18  ;;  %v5880_v45 = vadd.f32 %v5713_v34, %v10396_v13  ;;  %v5881_v0 = vadd.f32 %v5715_v63, %v10399_v38  ;;  %v5722_v1 = vrot.slane %v5564_v57, 2  ;;  %v5098_v20 = vadd.f32 %v5097_v21, %v11532_v61  ;;  %v7723_v9 = vpop.f32.mrf.mxu0  ;;  %v11536_v12 = vld [vmem:[#allocation64_spill] sm:$0xff] }
 0x3d5   : > { %6148 = vst.msk [vmem:[%s10688_s23 + $0xa8] sm:$0xff] %vm6126_vm6, %v6083_v43  ;;  %v5109_v52 = vadd.f32 %v7654_v29, %v11533_v41  ;;  %v5101_v62 = vadd.f32 %v5100_v55, %v11534_v33  ;;  %v5950_v8 = vmul.f32 %v10662_v2, %v5879_v54  ;;  %v5953_v48 = vmul.f32 %v10662_v2, %v5882_v14  ;;  %v7657_v13 = vpop.f32.mrf.mxu1 }
 0x3d6   : > { %v5951_v4 = vmul.f32 %v10662_v2, %v5880_v45  ;;  %v5952_v56 = vmul.f32 %v10662_v2, %v5881_v0  ;;  %v5562_v31 = vadd.f32 %v5391_v15, %v5098_v20  ;;  %v5122_v49 = vadd.f32 %v7657_v13, %v11535_v35  ;;  %v5407_v59 = vpop.f32.mrf.mxu0  ;;  %v11539_v20 = vld [vmem:[#allocation36_spill] sm:$0xff] }
 0x3d7   : > { %v10866_v38 = vadd.f32 %v7720_v23, %v5109_v52  ;;  %v5563_v5 = vadd.f32 %v5394_v30, %v5101_v62  ;;  %v6021_v6 = vadd.f32 %v10670_v19, %v5950_v8  ;;  %v6024_v44 = vadd.f32 %v10670_v19, %v5953_v48  ;;  %v5113_v21 = vpop.f32.mrf.mxu1  ;;  %v11540_v52 = vld [vmem:[#allocation34_spill] sm:$0xff] }
 0x3d8   : > { %v6022_v50 = vadd.f32 %v10670_v19, %v5951_v4  ;;  %v6023_v58 = vadd.f32 %v10670_v19, %v5952_v56  ;;  %v5718_v37 = vrot.slane %v5562_v31, 2  ;;  %v5568_v57 = vadd.f32 %v7723_v9, %v5122_v49  ;;  %v7724_v23 = vpop.f32.mrf.mxu0  ;;  %v11541_v31 = vld [vmem:[#allocation35_spill] sm:$0xff] }
 0x3d9   : > { %v5724_v15 = vrot.slane %v10866_v38, 2  ;;  %v5720_v32 = vrot.slane %v5563_v5, 2  ;;  %v6085_v28 = vmax.f32 %v6021_v6, 0.0  ;;  %v6088_v53 = vmax.f32 %v6024_v44, 0.0  ;;  %v7658_v29 = vpop.f32.mrf.mxu1 }
 0x3da   : > { %v6086_v18 = vmax.f32 %v6022_v50, 0.0  ;;  %v6087_v43 = vmax.f32 %v6023_v58, 0.0  ;;  %v5719_v36 = vsel %vm5662_vm5, %v5716_v40, %v5718_v37  ;;  %v5410_v30 = vpop.f32.mrf.mxu0  ;;  %v5730_v55 = vrot.slane %v5568_v57, 2 }
 0x3db   : > { %v5725_v3 = vsel %vm5662_vm5, %v5722_v1, %v5724_v15  ;;  %v5721_v34 = vsel %vm5662_vm5, %v5718_v37, %v5720_v32  ;;  %v5723_v63 = vsel %vm5662_vm5, %v5720_v32, %v5722_v1  ;;  %6150 = vst.msk [vmem:[%s10688_s23 + $0xb8] sm:$0xff] %vm6126_vm6, %v6085_v28  ;;  %6153 = vst.msk [vmem:[%s10688_s23 + $0xd0] sm:$0xff] %vm6126_vm6, %v6088_v53  ;;  %v5116_v0 = vpop.f32.mrf.mxu1  ;;  %v11538_v1 = vld [vmem:[#allocation65_spill] sm:$0xff] }
 0x3dc   : > { %6151 = vst.msk [vmem:[%s10688_s23 + $0xc0] sm:$0xff] %vm6126_vm6, %v6086_v18  ;;  %6152 = vst.msk [vmem:[%s10688_s23 + $0xc8] sm:$0xff] %vm6126_vm6, %v6087_v43  ;;  %v5883_v54 = vadd.f32 %v5719_v36, %v11536_v12  ;;  %v5886_v14 = vadd.f32 %v5725_v3, %v11537_v51  ;;  %v5884_v40 = vadd.f32 %v5721_v34, %v10424_v26  ;;  %v7727_v62 = vpop.f32.mrf.mxu0  ;;  %v11543_v12 = vld [vmem:[#allocation37_spill] sm:$0xff] }
 0x3dd   : > { %v5885_v45 = vadd.f32 %v5723_v63, %v10427_v27  ;;  %v5114_v61 = vadd.f32 %v5113_v21, %v11538_v1  ;;  %v5125_v41 = vadd.f32 %v7658_v29, %v11539_v20  ;;  %v5117_v33 = vadd.f32 %v5116_v0, %v11540_v52  ;;  %v7661_v26 = vpop.f32.mrf.mxu1  ;;  %v11542_v63 = vld [vmem:[#allocation66_spill] sm:$0xff] }
 0x3de   : > { %v5954_v9 = vmul.f32 %v10662_v2, %v5883_v54  ;;  %v5957_v8 = vmul.f32 %v10662_v2, %v5886_v14  ;;  %v5955_v48 = vmul.f32 %v10662_v2, %v5884_v40  ;;  %v5138_v38 = vadd.f32 %v7661_v26, %v11541_v31  ;;  %v5423_v5 = vpop.f32.mrf.mxu0 }
 0x3df   : > { %v5956_v4 = vmul.f32 %v10662_v2, %v5885_v45  ;;  %v5566_v56 = vadd.f32 %v5407_v59, %v5114_v61  ;;  %v10897_v27 = vadd.f32 %v7724_v23, %v5125_v41  ;;  %v5567_v13 = vadd.f32 %v5410_v30, %v5117_v33  ;;  %v5129_v50 = vpop.f32.mrf.mxu1  ;;  %v11544_v45 = vld [vmem:[#allocation67_spill] sm:$0xff]  ;;  %v11546_v61 = vld [vmem:[#allocation38_spill] sm:$0xff] }
 0x3e0   : > { %v6025_v35 = vadd.f32 %v10670_v19, %v5954_v9  ;;  %v6028_v49 = vadd.f32 %v10670_v19, %v5957_v8  ;;  %v6026_v6 = vadd.f32 %v10670_v19, %v5955_v48  ;;  %v5572_v37 = vadd.f32 %v7727_v62, %v5138_v38  ;;  %v7728_v32 = vpop.f32.mrf.mxu0 }
 0x3e1   : > { %v6027_v44 = vadd.f32 %v10670_v19, %v5956_v4  ;;  %v5726_v58 = vrot.slane %v5566_v56, 2  ;;  %v5732_v59 = vrot.slane %v10897_v27, 2  ;;  %v5728_v21 = vrot.slane %v5567_v13, 2  ;;  %v7662_v18 = vpop.f32.mrf.mxu1  ;;  %v11547_v4 = vld [vmem:[#allocation39_spill] sm:$0xff] }
 0x3e2   : > { %v6089_v57 = vmax.f32 %v6025_v35, 0.0  ;;  %v6092_v23 = vmax.f32 %v6028_v49, 0.0  ;;  %v6090_v28 = vmax.f32 %v6026_v6, 0.0  ;;  %v5426_v34 = vpop.f32.mrf.mxu0  ;;  %v5738_v40 = vrot.slane %v5572_v37, 2 }
 0x3e3   : > { %v6091_v53 = vmax.f32 %v6027_v44, 0.0  ;;  %v5727_v43 = vsel %vm5662_vm5, %v5724_v15, %v5726_v58  ;;  %v5733_v29 = vsel %vm5662_vm5, %v5730_v55, %v5732_v59  ;;  %v5729_v36 = vsel %vm5662_vm5, %v5726_v58, %v5728_v21  ;;  %v5132_v14 = vpop.f32.mrf.mxu1 }
 0x3e4   : > { %v5731_v3 = vsel %vm5662_vm5, %v5728_v21, %v5730_v55  ;;  %6154 = vst.msk [vmem:[%s10688_s23 + $0xd8] sm:$0xff] %vm6126_vm6, %v6089_v57  ;;  %6157 = vst.msk [vmem:[%s10688_s23 + $0xf0] sm:$0xff] %vm6126_vm6, %v6092_v23  ;;  %v5887_v30 = vadd.f32 %v5727_v43, %v11542_v63  ;;  %v5890_v54 = vadd.f32 %v5733_v29, %v11543_v12  ;;  %v11545_v55 = vld [vmem:[#allocation40_spill] sm:$0xff]  ;;  %v7731_v41 = vpop.f32.mrf.mxu0 }
 0x3e5   : > { %6155 = vst.msk [vmem:[%s10688_s23 + $0xe0] sm:$0xff] %vm6126_vm6, %v6090_v28  ;;  %6156 = vst.msk [vmem:[%s10688_s23 + $0xe8] sm:$0xff] %vm6126_vm6, %v6091_v53  ;;  %v5888_v15 = vadd.f32 %v5729_v36, %v10452_v17  ;;  %v5889_v51 = vadd.f32 %v5731_v3, %v10455_v16  ;;  %v5130_v0 = vadd.f32 %v5129_v50, %v11544_v45  ;;  %v7665_v17 = vpop.f32.mrf.mxu1  ;;  %v11548_v29 = vld [vmem:[#allocation68_spill] sm:$0xff]  ;;  %v11549_v3 = vld [vmem:[#allocation41_spill] sm:$0xff] }
 0x3e6   : > { %v5141_v1 = vadd.f32 %v7662_v18, %v11545_v55  ;;  %v5133_v20 = vadd.f32 %v5132_v14, %v11546_v61  ;;  %v5958_v52 = vmul.f32 %v10662_v2, %v5887_v30  ;;  %v5961_v33 = vmul.f32 %v10662_v2, %v5890_v54  ;;  %v5439_v56 = vpop.f32.mrf.mxu0  ;;  %v11550_v54 = vld [vmem:[#allocation69_spill] sm:$0xff] }
 0x3e7   : > { %v5959_v62 = vmul.f32 %v10662_v2, %v5888_v15  ;;  %v5960_v9 = vmul.f32 %v10662_v2, %v5889_v51  ;;  %v5570_v8 = vadd.f32 %v5423_v5, %v5130_v0  ;;  %v5154_v26 = vadd.f32 %v7665_v17, %v11547_v4  ;;  %v5145_v35 = vpop.f32.mrf.mxu1  ;;  %v11551_v51 = vld [vmem:[#allocation18_spill] sm:$0xff] }
 0x3e8   : > { %v10928_v16 = vadd.f32 %v7728_v32, %v5141_v1  ;;  %v5571_v48 = vadd.f32 %v5426_v34, %v5133_v20  ;;  %v6029_v27 = vadd.f32 %v10670_v19, %v5958_v52  ;;  %v6032_v13 = vadd.f32 %v10670_v19, %v5961_v33  ;;  %v7732_v50 = vpop.f32.mrf.mxu0  ;;  %v11553_v33 = vld [vmem:[#allocation42_spill] sm:$0xff] }
 0x3e9   : > { %v6030_v31 = vadd.f32 %v10670_v19, %v5959_v62  ;;  %v6031_v38 = vadd.f32 %v10670_v19, %v5960_v9  ;;  %v5734_v49 = vrot.slane %v5570_v8, 2  ;;  %v5576_v44 = vadd.f32 %v7731_v41, %v5154_v26  ;;  %v7666_v57 = vpop.f32.mrf.mxu1 }
 0x3ea   : > { %v5740_v5 = vrot.slane %v10928_v16, 2  ;;  %v5736_v6 = vrot.slane %v5571_v48, 2  ;;  %v6093_v58 = vmax.f32 %v6029_v27, 0.0  ;;  %v6096_v21 = vmax.f32 %v6032_v13, 0.0  ;;  %v5442_v43 = vpop.f32.mrf.mxu0 }
 0x3eb   : > { %v6094_v37 = vmax.f32 %v6030_v31, 0.0  ;;  %v6095_v32 = vmax.f32 %v6031_v38, 0.0  ;;  %v5735_v23 = vsel %vm5662_vm5, %v5732_v59, %v5734_v49  ;;  %v5148_v30 = vpop.f32.mrf.mxu1  ;;  %v5746_v12 = vrot.slane %v5576_v44, 2 }
 0x3ec   : > { %v5741_v28 = vsel %vm5662_vm5, %v5738_v40, %v5740_v5  ;;  %v5737_v53 = vsel %vm5662_vm5, %v5734_v49, %v5736_v6  ;;  %v5739_v18 = vsel %vm5662_vm5, %v5736_v6, %v5738_v40  ;;  %6158 = vst.msk [vmem:[%s10688_s23 + $0xf8] sm:$0xff] %vm6126_vm6, %v6093_v58  ;;  %6161 = vst.msk [vmem:[%s10688_s23 + $0x110] sm:$0xff] %vm6126_vm6, %v6096_v21  ;;  %v11552_v40 = vld [vmem:[#allocation19_spill] sm:$0xff]  ;;  %v7735_v0 = vpop.f32.mrf.mxu0 }
 0x3ed   : > { %6159 = vst.msk [vmem:[%s10688_s23 + $0x100] sm:$0xff] %vm6126_vm6, %v6094_v37  ;;  %6160 = vst.msk [vmem:[%s10688_s23 + $0x108] sm:$0xff] %vm6126_vm6, %v6095_v32  ;;  %v5891_v36 = vadd.f32 %v5735_v23, %v11548_v29  ;;  %v5894_v34 = vadd.f32 %v5741_v28, %v11549_v3  ;;  %v5892_v59 = vadd.f32 %v5737_v53, %v10480_v46  ;;  %v7669_v46 = vpop.f32.mrf.mxu1  ;;  %v11555_v28 = vld [vmem:[#allocation43_spill] sm:$0xff] }
 0x3ee   : > { %v5893_v63 = vadd.f32 %v5739_v18, %v10483_v60  ;;  %v5146_v15 = vadd.f32 %v5145_v35, %v11550_v54  ;;  %v5157_v14 = vadd.f32 %v7666_v57, %v11551_v51  ;;  %v5149_v45 = vadd.f32 %v5148_v30, %v11552_v40  ;;  %v5455_v9 = vpop.f32.mrf.mxu0  ;;  %v11554_v57 = vld [vmem:[#allocation70_spill] sm:$0xff] }
 0x3ef   : > { %v5962_v55 = vmul.f32 %v10662_v2, %v5891_v36  ;;  %v5965_v1 = vmul.f32 %v10662_v2, %v5894_v34  ;;  %v5963_v61 = vmul.f32 %v10662_v2, %v5892_v59  ;;  %v5170_v62 = vadd.f32 %v7669_v46, %v11553_v33  ;;  %v5161_v4 = vpop.f32.mrf.mxu1  ;;  %v11556_v36 = vld [vmem:[#allocation71_spill] sm:$0xff]  ;;  %v11557_v34 = vld [vmem:[#allocation46_spill] sm:$0xff] }
 0x3f0   : > { %v5964_v20 = vmul.f32 %v10662_v2, %v5893_v63  ;;  %v5574_v41 = vadd.f32 %v5439_v56, %v5146_v15  ;;  %v10959_v60 = vadd.f32 %v7732_v50, %v5157_v14  ;;  %v5575_v52 = vadd.f32 %v5442_v43, %v5149_v45  ;;  %v7736_v31 = vpop.f32.mrf.mxu0  ;;  %v11558_v63 = vld [vmem:[#allocation44_spill] sm:$0xff] }
 0x3f1   : > { %v6033_v17 = vadd.f32 %v10670_v19, %v5962_v55  ;;  %v6036_v8 = vadd.f32 %v10670_v19, %v5965_v1  ;;  %v6034_v16 = vadd.f32 %v10670_v19, %v5963_v61  ;;  %v5580_v13 = vadd.f32 %v7735_v0, %v5170_v62  ;;  %v7670_v44 = vpop.f32.mrf.mxu1  ;;  %v11559_v0 = vld [vmem:[#allocation45_spill] sm:$0xff] }
 0x3f2   : > { %v6035_v48 = vadd.f32 %v10670_v19, %v5964_v20  ;;  %v5742_v26 = vrot.slane %v5574_v41, 2  ;;  %v5748_v56 = vrot.slane %v10959_v60, 2  ;;  %v5744_v27 = vrot.slane %v5575_v52, 2  ;;  %v5458_v32 = vpop.f32.mrf.mxu0 }
 0x3f3   : > { %v6097_v38 = vmax.f32 %v6033_v17, 0.0  ;;  %v6100_v35 = vmax.f32 %v6036_v8, 0.0  ;;  %v6098_v49 = vmax.f32 %v6034_v16, 0.0  ;;  %v5164_v43 = vpop.f32.mrf.mxu1  ;;  %v5754_v29 = vrot.slane %v5580_v13, 2 }
 0x3f4   : > { %v6099_v6 = vmax.f32 %v6035_v48, 0.0  ;;  %v5743_v50 = vsel %vm5662_vm5, %v5740_v5, %v5742_v26  ;;  %v5749_v58 = vsel %vm5662_vm5, %v5746_v12, %v5748_v56  ;;  %v5745_v21 = vsel %vm5662_vm5, %v5742_v26, %v5744_v27 }
 0x3f5   : > { %v5747_v37 = vsel %vm5662_vm5, %v5744_v27, %v5746_v12  ;;  %6162 = vst.msk [vmem:[%s10688_s23 + $0x118] sm:$0xff] %vm6126_vm6, %v6097_v38  ;;  %6165 = vst.msk [vmem:[%s10688_s23 + $0x130] sm:$0xff] %vm6126_vm6, %v6100_v35  ;;  %v5895_v23 = vadd.f32 %v5743_v50, %v11554_v57  ;;  %v5898_v53 = vadd.f32 %v5749_v58, %v11555_v28  ;;  %v7739_v12 = vpop.f32.mrf.mxu0 }
 0x3f6   : > { %6163 = vst.msk [vmem:[%s10688_s23 + $0x120] sm:$0xff] %vm6126_vm6, %v6098_v49  ;;  %6164 = vst.msk [vmem:[%s10688_s23 + $0x128] sm:$0xff] %vm6126_vm6, %v6099_v6  ;;  %v5896_v5 = vadd.f32 %v5745_v21, %v10508_v25  ;;  %v5897_v18 = vadd.f32 %v5747_v37, %v10511_v42  ;;  %v5162_v3 = vadd.f32 %v5161_v4, %v11556_v36  ;;  %v7673_v25 = vpop.f32.mrf.mxu1  ;;  %v11560_v49 = vld [vmem:[#allocation72_spill] sm:$0xff] }
 0x3f7   : > { %v5173_v59 = vadd.f32 %v7670_v44, %v11557_v34  ;;  %v5165_v30 = vadd.f32 %v5164_v43, %v11558_v63  ;;  %v5966_v54 = vmul.f32 %v10662_v2, %v5895_v23  ;;  %v5969_v15 = vmul.f32 %v10662_v2, %v5898_v53  ;;  %v5471_v1 = vpop.f32.mrf.mxu0  ;;  %v11561_v44 = vld [vmem:[#allocation47_spill] sm:$0xff]  ;;  %v11563_v23 = vld [vmem:[#allocation50_spill] sm:$0xff]  ;;  %v11564_v53 = vld [vmem:[#allocation48_spill] sm:$0xff] }
 0x3f8   : > { %v5967_v51 = vmul.f32 %v10662_v2, %v5896_v5  ;;  %v5968_v14 = vmul.f32 %v10662_v2, %v5897_v18  ;;  %v5578_v40 = vadd.f32 %v5455_v9, %v5162_v3  ;;  %v5186_v55 = vadd.f32 %v7673_v25, %v11559_v0  ;;  %v5177_v60 = vpop.f32.mrf.mxu1  ;;  %v11565_v63 = vld [vmem:[#allocation49_spill] sm:$0xff] }
 0x3f9   : > { %v10990_v42 = vadd.f32 %v7736_v31, %v5173_v59  ;;  %v5579_v45 = vadd.f32 %v5458_v32, %v5165_v30  ;;  %v6037_v61 = vadd.f32 %v10670_v19, %v5966_v54  ;;  %v6040_v20 = vadd.f32 %v10670_v19, %v5969_v15  ;;  %v7740_v17 = vpop.f32.mrf.mxu0  ;;  %v11562_v32 = vld [vmem:[#allocation73_spill] sm:$0xff] }
 0x3fa   : > { %v6038_v46 = vadd.f32 %v10670_v19, %v5967_v51  ;;  %v6039_v41 = vadd.f32 %v10670_v19, %v5968_v14  ;;  %v5750_v52 = vrot.slane %v5578_v40, 2  ;;  %v5584_v9 = vadd.f32 %v7739_v12, %v5186_v55  ;;  %v7674_v26 = vpop.f32.mrf.mxu1 }
 0x3fb   : > { %v5756_v33 = vrot.slane %v10990_v42, 2  ;;  %v5752_v62 = vrot.slane %v5579_v45, 2  ;;  %v6101_v8 = vmax.f32 %v6037_v61, 0.0  ;;  %v6104_v16 = vmax.f32 %v6040_v20, 0.0  ;;  %v5474_v35 = vpop.f32.mrf.mxu0 }
 0x3fc   : > { %v6102_v48 = vmax.f32 %v6038_v46, 0.0  ;;  %v6103_v4 = vmax.f32 %v6039_v41, 0.0  ;;  %v5751_v27 = vsel %vm5662_vm5, %v5748_v56, %v5750_v52  ;;  %v5180_v21 = vpop.f32.mrf.mxu1  ;;  %v5762_v37 = vrot.slane %v5584_v9, 2  ;;  %v11566_v9 = vld [vmem:[#allocation74_spill] sm:$0xff] }
 0x3fd   : > { %v5757_v13 = vsel %vm5662_vm5, %v5754_v29, %v5756_v33  ;;  %v5753_v31 = vsel %vm5662_vm5, %v5750_v52, %v5752_v62  ;;  %v5755_v38 = vsel %vm5662_vm5, %v5752_v62, %v5754_v29  ;;  %6166 = vst.msk [vmem:[%s10688_s23 + $0x138] sm:$0xff] %vm6126_vm6, %v6101_v8  ;;  %6169 = vst.msk [vmem:[%s10688_s23 + $0x150] sm:$0xff] %vm6126_vm6, %v6104_v16  ;;  %v7743_v18 = vpop.f32.mrf.mxu0  ;;  %v11567_v8 = vld [vmem:[#allocation51_spill] sm:$0xff] }
 0x3fe   : > { %6167 = vst.msk [vmem:[%s10688_s23 + $0x140] sm:$0xff] %vm6126_vm6, %v6102_v48  ;;  %6168 = vst.msk [vmem:[%s10688_s23 + $0x148] sm:$0xff] %vm6126_vm6, %v6103_v4  ;;  %v5899_v6 = vadd.f32 %v5751_v27, %v11560_v49  ;;  %v5902_v50 = vadd.f32 %v5757_v13, %v11561_v44  ;;  %v5900_v56 = vadd.f32 %v5753_v31, %v10536_v11  ;;  %v7677_v11 = vpop.f32.mrf.mxu1  ;;  %v11568_v27 = vld [vmem:[#allocation75_spill] sm:$0xff]  ;;  %v11569_v31 = vld [vmem:[#allocation20_spill] sm:$0xff] }
 0x3ff   : > { %v5901_v58 = vadd.f32 %v5755_v38, %v10539_v39  ;;  %v5178_v57 = vadd.f32 %v5177_v60, %v11562_v32  ;;  %v5189_v28 = vadd.f32 %v7674_v26, %v11563_v23  ;;  %v5181_v5 = vadd.f32 %v5180_v21, %v11564_v53  ;;  %v5487_v12 = vpop.f32.mrf.mxu0  ;;  %v11051_v44 = vld [vmem:[%s11179_s5] ss:$0 sm:$0xff] }
 0x400   : > { %v5970_v43 = vmul.f32 %v10662_v2, %v5899_v6  ;;  %v5973_v29 = vmul.f32 %v10662_v2, %v5902_v50  ;;  %v5971_v36 = vmul.f32 %v10662_v2, %v5900_v56  ;;  %v5202_v30 = vadd.f32 %v7677_v11, %v11565_v63  ;;  %v5193_v25 = vpop.f32.mrf.mxu1  ;;  %v11063_v53 = vld [vmem:[%s11180_s6] ss:$0 sm:$0xff] }
 0x401   : > { %v5972_v3 = vmul.f32 %v10662_v2, %v5901_v58  ;;  %v5582_v34 = vadd.f32 %v5471_v1, %v5178_v57  ;;  %v11021_v39 = vadd.f32 %v7740_v17, %v5189_v28  ;;  %v5583_v59 = vadd.f32 %v5474_v35, %v5181_v5  ;;  %v7744_v0 = vpop.f32.mrf.mxu0  ;;  %v11570_v35 = vld [vmem:[#allocation52_spill] sm:$0xff]  ;;  %v11571_v57 = vld [vmem:[#allocation53_spill] sm:$0xff] }
 0x402   : > { %v6041_v54 = vadd.f32 %v10670_v19, %v5970_v43  ;;  %v6044_v15 = vadd.f32 %v10670_v19, %v5973_v29  ;;  %v6042_v51 = vadd.f32 %v10670_v19, %v5971_v36  ;;  %v5588_v45 = vadd.f32 %v7743_v18, %v5202_v30  ;;  %v7678_v46 = vpop.f32.mrf.mxu1 }
 0x403   : > { %v6043_v14 = vadd.f32 %v10670_v19, %v5972_v3  ;;  %v5758_v40 = vrot.slane %v5582_v34, 2  ;;  %v5764_v2 = vrot.slane %v11021_v39, 2  ;;  %v5760_v42 = vrot.slane %v5583_v59, 2  ;;  %v5490_v62 = vpop.f32.mrf.mxu0 }
 0x404   : > { %v6105_v55 = vmax.f32 %v6041_v54, 0.0  ;;  %v6108_v1 = vmax.f32 %v6044_v15, 0.0  ;;  %v6106_v61 = vmax.f32 %v6042_v51, 0.0  ;;  %v5196_v4 = vpop.f32.mrf.mxu1  ;;  %v5770_v26 = vrot.slane %v5588_v45, 2  ;;  %v11572_v45 = vld [vmem:[#allocation76_spill] sm:$0xff] }
 0x405   : > { %v6107_v20 = vmax.f32 %v6043_v14, 0.0  ;;  %v5759_v41 = vsel %vm5662_vm5, %v5756_v33, %v5758_v40  ;;  %v5765_v19 = vsel %vm5662_vm5, %v5762_v37, %v5764_v2  ;;  %v5761_v60 = vsel %vm5662_vm5, %v5758_v40, %v5760_v42  ;;  %v7747_v6 = vpop.f32.mrf.mxu0 }
 0x406   : > { %v5763_v52 = vsel %vm5662_vm5, %v5760_v42, %v5762_v37  ;;  %6170 = vst.msk [vmem:[%s10688_s23 + $0x158] sm:$0xff] %vm6126_vm6, %v6105_v55  ;;  %6173 = vst.msk [vmem:[%s10688_s23 + $0x170] sm:$0xff] %vm6126_vm6, %v6108_v1  ;;  %v5903_v17 = vadd.f32 %v5759_v41, %v11566_v9  ;;  %v5906_v16 = vadd.f32 %v5765_v19, %v11567_v8  ;;  %v7681_v58 = vpop.f32.mrf.mxu1  ;;  %v11573_v55 = vld [vmem:[#allocation21_spill] sm:$0xff]  ;;  %v11575_v19 = vld [vmem:[#allocation22_spill] sm:$0xff] }
 0x407   : > { %6171 = vst.msk [vmem:[%s10688_s23 + $0x160] sm:$0xff] %vm6126_vm6, %v6106_v61  ;;  %6172 = vst.msk [vmem:[%s10688_s23 + $0x168] sm:$0xff] %vm6126_vm6, %v6107_v20  ;;  %v5904_v33 = vadd.f32 %v5761_v60, %v10564_v22  ;;  %v5905_v48 = vadd.f32 %v5763_v52, %v10567_v47  ;;  %v5194_v13 = vadd.f32 %v5193_v25, %v11568_v27  ;;  %v5503_v28 = vpop.f32.mrf.mxu0  ;;  %v11576_v52 = vld [vmem:[#allocation23_spill] sm:$0xff] }
 0x408   : > { %v5205_v38 = vadd.f32 %v7678_v46, %v11569_v31  ;;  %v5197_v49 = vadd.f32 %v5196_v4, %v11570_v35  ;;  %v5974_v50 = vmul.f32 %v11051_v44, %v5903_v17  ;;  %v5977_v22 = vmul.f32 %v11051_v44, %v5906_v16  ;;  %v5209_v36 = vpop.f32.mrf.mxu1  ;;  %v11574_v46 = vld [vmem:[#allocation77_spill] sm:$0xff] }
 0x409   : > { %v5975_v47 = vmul.f32 %v11051_v44, %v5904_v33  ;;  %v5976_v56 = vmul.f32 %v11051_v44, %v5905_v48  ;;  %v5586_v21 = vadd.f32 %v5487_v12, %v5194_v13  ;;  %v5218_v23 = vadd.f32 %v7681_v58, %v11571_v57  ;;  %v7748_v59 = vpop.f32.mrf.mxu0 }
 0x40a   : > { %v11057_v37 = vadd.f32 %v7744_v0, %v5205_v38  ;;  %v5587_v32 = vadd.f32 %v5490_v62, %v5197_v49  ;;  %v6045_v5 = vadd.f32 %v11063_v53, %v5974_v50  ;;  %v6048_v18 = vadd.f32 %v11063_v53, %v5977_v22  ;;  %v7682_v15 = vpop.f32.mrf.mxu1 }
 0x40b   : > { %v6046_v43 = vadd.f32 %v11063_v53, %v5975_v47  ;;  %v6047_v29 = vadd.f32 %v11063_v53, %v5976_v56  ;;  %v5766_v3 = vrot.slane %v5586_v21, 2  ;;  %v5592_v39 = vadd.f32 %v7747_v6, %v5218_v23  ;;  %v5506_v42 = vpop.f32.mrf.mxu0  ;;  %v11577_v47 = vld [vmem:[#allocation3_spill] sm:$0xff] }
 0x40c   : > { %v5772_v11 = vrot.slane %v11057_v37, 2  ;;  %v5768_v34 = vrot.slane %v5587_v32, 2  ;;  %v6109_v63 = vmax.f32 %v6045_v5, 0.0  ;;  %v6112_v30 = vmax.f32 %v6048_v18, 0.0  ;;  %v5212_v20 = vpop.f32.mrf.mxu1 }
 0x40d   : > { %v6110_v12 = vmax.f32 %v6046_v43, 0.0  ;;  %v6111_v54 = vmax.f32 %v6047_v29, 0.0  ;;  %v5767_v51 = vsel %vm5662_vm5, %v5764_v2, %v5766_v3  ;;  %v5210_v41 = vadd.f32 %v5209_v36, %v11574_v46  ;;  %v7751_v9 = vpop.f32.mrf.mxu0  ;;  %v11578_v29 = vld [vmem:[#allocation78_spill] sm:$0xff] }
 0x40e   : > { %v5773_v14 = vsel %vm5662_vm5, %v5770_v26, %v5772_v11  ;;  %v5769_v25 = vsel %vm5662_vm5, %v5766_v3, %v5768_v34  ;;  %v5771_v40 = vsel %vm5662_vm5, %v5768_v34, %v5770_v26  ;;  %6174 = vst.msk [vmem:[%s10688_s23 + $0x178] sm:$0xff] %vm6126_vm6, %v6109_v63  ;;  %6177 = vst.msk [vmem:[%s10688_s23 + $0x190] sm:$0xff] %vm6126_vm6, %v6112_v30  ;;  %v7685_v48 = vpop.f32.mrf.mxu1  ;;  %v11579_v3 = vld [vmem:[#allocation2_spill] sm:$0xff] }
 0x40f   : > { %6175 = vst.msk [vmem:[%s10688_s23 + $0x180] sm:$0xff] %vm6126_vm6, %v6110_v12  ;;  %6176 = vst.msk [vmem:[%s10688_s23 + $0x188] sm:$0xff] %vm6126_vm6, %v6111_v54  ;;  %v5907_v0 = vadd.f32 %v5767_v51, %v11572_v45  ;;  %v5910_v1 = vadd.f32 %v5773_v14, %v11573_v55  ;;  %v5908_v2 = vadd.f32 %v5769_v25, %v10592_v10  ;;  %v5778_v10 = vrot.slane %v5592_v39, 2  ;;  %v5519_v27 = vpop.f32.mrf.mxu0  ;;  %v11580_v39 = vld [vmem:[#allocation5_spill] sm:$0xff]  ;;  %v11582_v54 = vld [vmem:[#allocation79_spill] sm:$0xff] }
 0x410   : > { %v5909_v61 = vadd.f32 %v5771_v40, %v10595_v7  ;;  %v5221_v60 = vadd.f32 %v7682_v15, %v11575_v19  ;;  %v5213_v62 = vadd.f32 %v5212_v20, %v11576_v52  ;;  %v5590_v4 = vadd.f32 %v5503_v28, %v5210_v41  ;;  %v5225_v49 = vpop.f32.mrf.mxu1  ;;  %v11583_v51 = vld [vmem:[#allocation4_spill] sm:$0xff] }
 0x411   : > { %v5978_v17 = vmul.f32 %v11051_v44, %v5907_v0  ;;  %v5981_v8 = vmul.f32 %v11051_v44, %v5910_v1  ;;  %v5979_v16 = vmul.f32 %v11051_v44, %v5908_v2  ;;  %v5234_v56 = vadd.f32 %v7685_v48, %v11577_v47  ;;  %v7752_v23 = vpop.f32.mrf.mxu0  ;;  %v11584_v25 = vld [vmem:[#allocation80_spill] sm:$0xff]  ;;  %v11590_v47 = vld [vmem:[#allocation11_spill] sm:$0xff] }
 0x412   : > { %v5980_v33 = vmul.f32 %v11051_v44, %v5909_v61  ;;  %v5593_v7 = vadd.f32 %v7748_v59, %v5221_v60  ;;  %v5591_v26 = vadd.f32 %v5506_v42, %v5213_v62  ;;  %v5774_v6 = vrot.slane %v5590_v4, 2  ;;  %v7686_v57 = vpop.f32.mrf.mxu1  ;;  %v11581_v59 = vld [vmem:[#allocation7_spill] sm:$0xff] }
 0x413   : > { %v6049_v13 = vadd.f32 %v11063_v53, %v5978_v17  ;;  %v6052_v31 = vadd.f32 %v11063_v53, %v5981_v8  ;;  %v6050_v38 = vadd.f32 %v11063_v53, %v5979_v16  ;;  %v5596_v12 = vadd.f32 %v7751_v9, %v5234_v56  ;;  %v5522_v1 = vpop.f32.mrf.mxu0 }
 0x414   : > { %v6051_v35 = vadd.f32 %v11063_v53, %v5980_v33  ;;  %v5780_v50 = vrot.slane %v5593_v7, 2  ;;  %v5776_v22 = vrot.slane %v5591_v26, 2  ;;  %v5775_v28 = vsel %vm5662_vm5, %v5772_v11, %v5774_v6  ;;  %v5228_v30 = vpop.f32.mrf.mxu1 }
 0x415   : > { %v6113_v58 = vmax.f32 %v6049_v13, 0.0  ;;  %v6116_v21 = vmax.f32 %v6052_v31, 0.0  ;;  %v6114_v37 = vmax.f32 %v6050_v38, 0.0  ;;  %v5911_v36 = vadd.f32 %v5775_v28, %v11578_v29  ;;  %v11586_v13 = vld [vmem:[#allocation81_spill] sm:$0xff]  ;;  %v11587_v38 = vld [vmem:[#allocation6_spill] sm:$0xff] }
 0x416   : > { %v6115_v32 = vmax.f32 %v6051_v35, 0.0  ;;  %v5781_v5 = vsel %vm5662_vm5, %v5778_v10, %v5780_v50  ;;  %v5777_v18 = vsel %vm5662_vm5, %v5774_v6, %v5776_v22  ;;  %v5779_v43 = vsel %vm5662_vm5, %v5776_v22, %v5778_v10 }
 0x417   : > { %6178 = vst.msk [vmem:[%s10688_s23 + $0x198] sm:$0xff] %vm6126_vm6, %v6113_v58  ;;  %6181 = vst.msk [vmem:[%s10688_s23 + $0x1b0] sm:$0xff] %vm6126_vm6, %v6116_v21  ;;  %v5914_v34 = vadd.f32 %v5781_v5, %v11579_v3  ;;  %v5912_v11 = vadd.f32 %v5777_v18, %v11580_v39  ;;  %v5913_v63 = vadd.f32 %v5779_v43, %v11581_v59  ;;  %v5786_v52 = vrot.slane %v5596_v12, 2 }
 0x418   : > { %6179 = vst.msk [vmem:[%s10688_s23 + $0x1a0] sm:$0xff] %vm6126_vm6, %v6114_v37  ;;  %6180 = vst.msk [vmem:[%s10688_s23 + $0x1a8] sm:$0xff] %vm6126_vm6, %v6115_v32  ;;  %v5226_v15 = vadd.f32 %v5225_v49, %v11582_v54  ;;  %v5237_v14 = vadd.f32 %v7686_v57, %v11583_v51  ;;  %v5229_v40 = vadd.f32 %v5228_v30, %v11584_v25  ;;  %v11585_v7 = vrot.slane %v10654_v24, 2  ;;  %v11588_v49 = vld [vmem:[#allocation8_spill] sm:$0xff] }
 0x419   : > { %v5982_v42 = vmul.f32 %v11051_v44, %v5911_v36  ;;  %v5985_v45 = vmul.f32 %v11051_v44, %v5914_v34  ;;  %v5983_v0 = vmul.f32 %v11051_v44, %v5912_v11  ;;  %v5984_v55 = vmul.f32 %v11051_v44, %v5913_v63 }
 0x41a   : > { %v5594_v2 = vadd.f32 %v5519_v27, %v5226_v15  ;;  %v5597_v61 = vadd.f32 %v7752_v23, %v5237_v14  ;;  %v5595_v20 = vadd.f32 %v5522_v1, %v5229_v40 }
 0x41b   : > { %v6053_v46 = vadd.f32 %v11063_v53, %v5982_v42  ;;  %v6056_v41 = vadd.f32 %v11063_v53, %v5985_v45  ;;  %v6054_v19 = vadd.f32 %v11063_v53, %v5983_v0  ;;  %v6055_v60 = vadd.f32 %v11063_v53, %v5984_v55 }
 0x41c   : > { %v5782_v62 = vrot.slane %v5594_v2, 2  ;;  %v5788_v9 = vrot.slane %v5597_v61, 2  ;;  %v5784_v17 = vrot.slane %v5595_v20, 2 }
 0x41d   : > { %v6117_v8 = vmax.f32 %v6053_v46, 0.0  ;;  %v6120_v16 = vmax.f32 %v6056_v41, 0.0  ;;  %v6118_v33 = vmax.f32 %v6054_v19, 0.0  ;;  %v6119_v48 = vmax.f32 %v6055_v60, 0.0 }
 0x41e   : > { %v5783_v10 = vsel %vm5662_vm5, %v5780_v50, %v5782_v62  ;;  %v5789_v4 = vsel %vm5662_vm5, %v5786_v52, %v5788_v9  ;;  %v5855_v26 = vsel %vm5662_vm5, %v5788_v9, %v11585_v7  ;;  %v5785_v27 = vsel %vm5662_vm5, %v5782_v62, %v5784_v17  ;;  %v11589_v50 = vld [vmem:[#allocation9_spill] sm:$0xff] }
 0x41f   : > { %6182 = vst.msk [vmem:[%s10688_s23 + $0x1b8] sm:$0xff] %vm6126_vm6, %v6117_v8  ;;  %6185 = vst.msk [vmem:[%s10688_s23 + $0x1d0] sm:$0xff] %vm6126_vm6, %v6120_v16  ;;  %v5915_v31 = vadd.f32 %v5783_v10, %v11586_v13  ;;  %v5918_v35 = vadd.f32 %v5789_v4, %v11587_v38  ;;  %v5919_v6 = vadd.f32 %v5855_v26, %v11588_v49 }
 0x420   : > { %6183 = vst.msk [vmem:[%s10688_s23 + $0x1c0] sm:$0xff] %vm6126_vm6, %v6118_v33  ;;  %6184 = vst.msk [vmem:[%s10688_s23 + $0x1c8] sm:$0xff] %vm6126_vm6, %v6119_v48  ;;  %v5787_v24 = vsel %vm5662_vm5, %v5784_v17, %v5786_v52  ;;  %v5916_v22 = vadd.f32 %v5785_v27, %v11589_v50 }
 0x421   : > { %v5917_v56 = vadd.f32 %v5787_v24, %v11590_v47  ;;  %v5986_v58 = vmul.f32 %v11051_v44, %v5915_v31  ;;  %v5989_v21 = vmul.f32 %v11051_v44, %v5918_v35  ;;  %v5990_v37 = vmul.f32 %v11051_v44, %v5919_v6 }
 0x422   : > { %v5987_v32 = vmul.f32 %v11051_v44, %v5916_v22 }
 0x423   : > { %v5988_v57 = vmul.f32 %v11051_v44, %v5917_v56  ;;  %v6057_v23 = vadd.f32 %v11063_v53, %v5986_v58  ;;  %v6060_v28 = vadd.f32 %v11063_v53, %v5989_v21  ;;  %v6061_v5 = vadd.f32 %v11063_v53, %v5990_v37 }
 0x424   : > { %v6058_v18 = vadd.f32 %v11063_v53, %v5987_v32 }
 0x425   : > { %v6059_v43 = vadd.f32 %v11063_v53, %v5988_v57  ;;  %v6121_v29 = vmax.f32 %v6057_v23, 0.0  ;;  %v6124_v36 = vmax.f32 %v6060_v28, 0.0  ;;  %v6125_v3 = vmax.f32 %v6061_v5, 0.0 }
 0x426   : > { %v6122_v34 = vmax.f32 %v6058_v18, 0.0 }
 0x427   : > { %v6123_v39 = vmax.f32 %v6059_v43, 0.0  ;;  %6186 = vst.msk [vmem:[%s10688_s23 + $0x1d8] sm:$0xff] %vm6126_vm6, %v6121_v29  ;;  %6189 = vst.msk [vmem:[%s10688_s23 + $0x1f0] sm:$0xff] %vm6126_vm6, %v6124_v36 }
 0x428   : > { %6190 = vst.msk [vmem:[%s10688_s23 + $0x1f8] sm:$0xff] %vm6126_vm6, %v6125_v3  ;;  %6187 = vst.msk [vmem:[%s10688_s23 + $0x1e0] sm:$0xff] %vm6126_vm6, %v6122_v34 }
 0x429   : > { %6188 = vst.msk [vmem:[%s10688_s23 + $0x1e8] sm:$0xff] %vm6126_vm6, %v6123_v39 }
 0x42a PF: > { %s17_s26 = sadd.s32 1, %s8145_s26   ;;  %s11591_s24 = smov %s8141_s25 }
 0x42b   : > { %p14_p5 = scmp.ge.s32.totalorder %s17_s26, 4   ;;  %s11592_s25 = smov %s11594_s27 }
 0x42d   :  { %16 = sbr.rel (!%p14_p5) target bundleno = 2 (0x2), region = 95 }

</bundles_post_ra>
